<compile_context>
chip_gen: v7x
topology: tpu7x:2x2x1
jax: 0.10.0
libtpu: 0.0.40
codegen_flags: <defaults>
</compile_context>

<pallas_src>
import functools

import jax
import jax.numpy as jnp
from jax.experimental import pallas as pl
from jax.experimental.pallas import tpu as pltpu


_SQRT_2_OVER_PI = 0.7978845608028654


def _gelu_tanh(x):
    # tanh-approximate GELU: stays on supported Mosaic transcendentals (EUP tanh).
    # TODO(synk): PyTorch nn.GELU() default is the erf-exact form; the tanh
    # approximation differs by <~1e-3. The in-script reference uses the same
    # formula so the numerical check is apples-to-apples.
    return 0.5 * x * (1.0 + jnp.tanh(_SQRT_2_OVER_PI * (x + 0.044715 * x * x * x)))


def phi_kernel(x_ref,
               w1_ref, b1_ref,
               w2_ref, b2_ref,
               w3_ref, b3_ref,
               o_ref,
               *, matmul_dtype):
    """One (TILE_M, D_IN) row tile -> (TILE_M, D_OUT) output tile."""
    x = x_ref[...]

    def linear(a, w_ref, b_ref):
        # Activations are cast to the matmul dtype here; weights were pre-cast
        # once on the host, so the VMEM-resident copies need no per-step cast.
        a = a.astype(matmul_dtype)
        # MXU matmul with f32 accumulation regardless of operand dtype.
        return jnp.dot(a, w_ref[...], preferred_element_type=jnp.float32) + b_ref[...]

    h = _gelu_tanh(linear(x, w1_ref, b1_ref))   # Linear(in, hidden) + GELU
    # Dropout(p) == identity in eval/inference mode.
    h = _gelu_tanh(linear(h, w2_ref, b2_ref))   # Linear(hidden, hidden) + GELU
    out = linear(h, w3_ref, b3_ref)             # Linear(hidden, out)

    o_ref[...] = out.astype(o_ref.dtype)


def _choose_tile_m(n_rows, tile_m_max):
    """Row tile: multiple of 8, as large as possible (<= tile_m_max), preferring
    (a) >= 2 grid steps (v7x dual TensorCores) and (b) a tile that divides the
    row count so no host-side pad copy of x is needed."""
    n8 = -(-n_rows // 8) * 8
    tile = max(8, (min(tile_m_max, n8) // 8) * 8)

    # Keep >= 2 grid steps while the tile still fills the 256-wide MXU.
    # Costs one extra ~0.35us step on single-TC v5e/v6e, halves idle on v7x.
    if -(-n8 // tile) < 2 and tile >= 256:
        tile = max(128, ((tile // 2) // 8) * 8)

    # Prefer an exact divisor of n_rows (avoids materializing a padded copy of
    # x in HBM), but don't shrink the tile below MXU-filling sizes for it.
    if n_rows % 8 == 0 and n_rows % tile != 0:
        best = None
        for cand in range(tile, 0, -8):
            if n_rows % cand == 0:
                best = cand
                break
        if best is not None and best >= max(128, tile // 4):
            tile = best
    return tile


def _vmem_limit_bytes(tile_m, d_in, d_hidden, d_out, matmul_dtype):
    """Per-call VMEM budget: resident weights (single-buffered) + double-buffered
    x/out row tiles + f32 intermediates, with headroom, clamped to the chip."""
    w_item = jnp.dtype(matmul_dtype).itemsize
    weights = (d_in * d_hidden + d_hidden * d_hidden + d_hidden * d_out) * w_item
    biases = (2 * d_hidden + d_out) * 4
    io = 2 * tile_m * d_in * 4 + 2 * tile_m * d_out * 4
    interm = 3 * tile_m * d_hidden * 4
    need = weights + biases + io + interm
    try:
        cap = int(pltpu.get_tpu_info().vmem_capacity_bytes * 0.85)
    except Exception:
        cap = 56 * 1024 * 1024  # safe on v5e/v6e (128 MiB) and v7x (64 MiB)
    # TODO(synk): if `need` exceeds `cap` (very large d_hidden on v7x), fall
    # back to streaming weight column tiles (grid over N with a K-reduction
    # axis) instead of the fully-resident design.
    return max(32 * 1024 * 1024, min(int(need * 1.5) + (4 << 20), cap))


def phi_forward(x, params, *, tile_m=512, matmul_dtype=jnp.float32):
    """Phi MLP forward. x: (..., D_IN) float32. Linear weights stored (in, out).

    For v6e/v7x production use, pass matmul_dtype=jnp.bfloat16 (weights are
    pre-cast once here; accumulation stays f32) and loosen output tolerance.
    """
    orig_shape = x.shape
    d_in = orig_shape[-1]
    x2d = x.reshape(-1, d_in)
    n = x2d.shape[0]

    w1, b1 = params["w1"], params["b1"]
    w2, b2 = params["w2"], params["b2"]
    w3, b3 = params["w3"], params["b3"]
    d_hidden = w1.shape[1]
    d_out = w3.shape[1]
    assert w2.shape == (d_hidden, d_hidden)
    assert w3.shape == (d_hidden, d_out)

    # Pre-cast weights once on the host: the VMEM-resident copies are already
    # in the matmul dtype (halves footprint/DMA for bf16, no per-step recast).
    if w1.dtype != matmul_dtype:
        w1, w2, w3 = (w.astype(matmul_dtype) for w in (w1, w2, w3))

    tile = _choose_tile_m(n, tile_m)
    n_pad = -(-n // tile) * tile
    if n_pad != n:
        # TODO(synk): for very large non-divisible batches, pad/mask only the
        # last tile instead of materializing a padded HBM copy of x.
        x2d = jnp.pad(x2d, ((0, n_pad - n), (0, 0)))
    grid = (n_pad // tile,)

    # Streaming row tiles for x / out; weights pinned to block (0, 0) so Pallas
    # keeps them resident in VMEM across grid steps (no re-DMA).
    x_spec = pl.BlockSpec((tile, d_in), lambda i: (i, 0))
    out_spec = pl.BlockSpec((tile, d_out), lambda i: (i, 0))

    def resident_spec(arr, single_buffer):
        shape = arr.shape  # bound now, not late-bound in a comprehension
        index_map = lambda i: (0,) * len(shape)
        if single_buffer:
            # Constant blocks never change -> one VMEM buffer is enough.
            return pl.BlockSpec(shape, index_map, pipeline_mode=pl.Buffered(1))
        return pl.BlockSpec(shape, index_map)

    kernel = functools.partial(phi_kernel, matmul_dtype=matmul_dtype)

    flops = 2 * n_pad * (d_in * d_hidden + d_hidden * d_hidden + d_hidden * d_out)
    transcendentals = 2 * n_pad * d_hidden  # one tanh per hidden element, two GELUs
    bytes_accessed = (
        n_pad * d_in * x2d.dtype.itemsize
        + (d_in * d_hidden + d_hidden * d_hidden + d_hidden * d_out)
        * jnp.dtype(matmul_dtype).itemsize
        + (2 * d_hidden + d_out) * 4
        + n_pad * d_out * x.dtype.itemsize
    )
    cost = pl.CostEstimate(flops=flops, transcendentals=transcendentals,
                           bytes_accessed=bytes_accessed)

    vmem_limit = _vmem_limit_bytes(tile, d_in, d_hidden, d_out, matmul_dtype)

    def run(single_buffer_weights):
        in_specs = [x_spec] + [
            resident_spec(a, single_buffer_weights)
            for a in (w1, b1, w2, b2, w3, b3)
        ]
        return pl.pallas_call(
            kernel,
            out_shape=jax.ShapeDtypeStruct((n_pad, d_out), x.dtype),
            grid=grid,
            in_specs=in_specs,
            out_specs=out_spec,
            compiler_params=pltpu.CompilerParams(
                # Row tiles are fully independent -> shard across TensorCores.
                dimension_semantics=("parallel",),
                vmem_limit_bytes=vmem_limit,
            ),
            cost_estimate=cost,
        )(x2d, w1, b1, w2, b2, w3, b3)

    use_buffered = hasattr(pl, "Buffered")
    try:
        out = run(use_buffered)
    except Exception:
        if not use_buffered:
            raise
        out = run(False)  # fall back to default double-buffered weight specs

    out = out[:n]
    return out.reshape(*orig_shape[:-1], d_out)


def init_params(key, d_in, d_hidden, d_out):
    """Matches PyTorch nn.Linear default init; weights stored transposed (in, out)."""
    ks = jax.random.split(key, 6)

    def linear_init(kw, kb, fan_in, fan_out):
        bound = 1.0 / jnp.sqrt(fan_in)
        w = jax.random.uniform(kw, (fan_in, fan_out), jnp.float32, -bound, bound)
        b = jax.random.uniform(kb, (1, fan_out), jnp.float32, -bound, bound)
        return w, b

    w1, b1 = linear_init(ks[0], ks[1], d_in, d_hidden)
    w2, b2 = linear_init(ks[2], ks[3], d_hidden, d_hidden)
    w3, b3 = linear_init(ks[4], ks[5], d_hidden, d_out)
    return {"w1": w1, "b1": b1, "w2": w2, "b2": b2, "w3": w3, "b3": b3}


def reference(x, p):
    """Pure-JAX reference for the Phi forward pass (dropout = identity)."""
    dot = functools.partial(jnp.dot, precision=jax.lax.Precision.HIGHEST,
                            preferred_element_type=jnp.float32)
    h = _gelu_tanh(dot(x, p["w1"]) + p["b1"])
    h = _gelu_tanh(dot(h, p["w2"]) + p["b2"])
    return dot(h, p["w3"]) + p["b3"]


if __name__ == "__main__":
    # Small but lane-dense shapes (multiples of 128 on the feature axes).
    BATCH, D_IN, D_HIDDEN, D_OUT = 256, 128, 256, 128
    DROPOUT_P = 0.5  # inference mode -> identity, unused numerically

    key = jax.random.PRNGKey(0)
    kx, kp = jax.random.split(key)
    x = jax.random.normal(kx, (BATCH, D_IN), jnp.float32)
    params = init_params(kp, D_IN, D_HIDDEN, D_OUT)

    # f32 matmuls by default so the numerical check against the f32 reference
    # stays tight; pass matmul_dtype=jnp.bfloat16 for v6e/v7x throughput.
    out = phi_forward(x, params, tile_m=512, matmul_dtype=jnp.float32)
    out = jax.block_until_ready(out)

    ref = reference(x, params)
    assert out.shape == (BATCH, D_OUT)
    max_err = float(jnp.max(jnp.abs(out - ref)))
    assert jnp.allclose(out, ref, atol=2e-3, rtol=2e-3), \
        f"mismatch vs JAX reference (max abs err {max_err})"

    print("KERNEL_OK")
</pallas_src>

<mosaic_0001>
module attributes {stable_mosaic.version = 11 : i64} {
  func.func @phi_kernel(%arg0: i32, %arg1: memref<128x128xf32, #tpu.memory_space<vmem>>, %arg2: memref<128x256xf32, #tpu.memory_space<vmem>>, %arg3: memref<1x256xf32, #tpu.memory_space<vmem>>, %arg4: memref<256x256xf32, #tpu.memory_space<vmem>>, %arg5: memref<1x256xf32, #tpu.memory_space<vmem>>, %arg6: memref<256x128xf32, #tpu.memory_space<vmem>>, %arg7: memref<1x128xf32, #tpu.memory_space<vmem>>, %arg8: memref<128x128xf32, #tpu.memory_space<vmem>>) attributes {dimension_semantics = [#tpu.dimension_semantics<parallel>], iteration_bounds = array<i64: 2>, scalar_prefetch = 0 : i64, scratch_operands = 0 : i64, tpu.core_type = #tpu.core_type<tc>, window_params = [{transform_indices = @transform_0, window_bounds = array<i64: 128, 128>}, {pipeline_mode = #tpu.pipeline_mode<synchronous>, transform_indices = @transform_1, window_bounds = array<i64: 128, 256>}, {pipeline_mode = #tpu.pipeline_mode<synchronous>, transform_indices = @transform_2, window_bounds = array<i64: 1, 256>}, {pipeline_mode = #tpu.pipeline_mode<synchronous>, transform_indices = @transform_3, window_bounds = array<i64: 256, 256>}, {pipeline_mode = #tpu.pipeline_mode<synchronous>, transform_indices = @transform_4, window_bounds = array<i64: 1, 256>}, {pipeline_mode = #tpu.pipeline_mode<synchronous>, transform_indices = @transform_5, window_bounds = array<i64: 256, 128>}, {pipeline_mode = #tpu.pipeline_mode<synchronous>, transform_indices = @transform_6, window_bounds = array<i64: 1, 128>}, {transform_indices = @transform_7, window_bounds = array<i64: 128, 128>}]} {
    %c0 = arith.constant 0 : index
    %c0_0 = arith.constant 0 : index
    %0 = vector.load %arg1[%c0, %c0_0] : memref<128x128xf32, #tpu.memory_space<vmem>>, vector<128x128xf32>
    %c0_1 = arith.constant 0 : index
    %c0_2 = arith.constant 0 : index
    %1 = vector.load %arg2[%c0_1, %c0_2] : memref<128x256xf32, #tpu.memory_space<vmem>>, vector<128x256xf32>
    %cst = arith.constant dense<0.000000e+00> : vector<128x256xf32>
    %2 = tpu.matmul %0, %1, %cst {dimension_numbers = #tpu.dot_dimension_numbers<[1], [0], [0], [1], [0, 0, 1, 1], [], []>} : vector<128x128xf32>, vector<128x256xf32>, vector<128x256xf32> -> vector<128x256xf32>
    %c0_3 = arith.constant 0 : index
    %c0_4 = arith.constant 0 : index
    %3 = vector.load %arg3[%c0_3, %c0_4] : memref<1x256xf32, #tpu.memory_space<vmem>>, vector<1x256xf32>
    %4 = vector.broadcast %3 : vector<1x256xf32> to vector<128x256xf32>
    %5 = arith.addf %2, %4 : vector<128x256xf32>
    %cst_5 = arith.constant 5.000000e-01 : f32
    %6 = vector.broadcast %cst_5 : f32 to vector<128x256xf32>
    %7 = arith.mulf %6, %5 : vector<128x256xf32>
    %cst_6 = arith.constant 4.471500e-02 : f32
    %8 = vector.broadcast %cst_6 : f32 to vector<128x256xf32>
    %9 = arith.mulf %8, %5 : vector<128x256xf32>
    %10 = arith.mulf %9, %5 : vector<128x256xf32>
    %11 = arith.mulf %10, %5 : vector<128x256xf32>
    %12 = arith.addf %5, %11 : vector<128x256xf32>
    %cst_7 = arith.constant 0.797884583 : f32
    %13 = vector.broadcast %cst_7 : f32 to vector<128x256xf32>
    %14 = arith.mulf %13, %12 : vector<128x256xf32>
    %15 = math.tanh %14 : vector<128x256xf32>
    %cst_8 = arith.constant 1.000000e+00 : f32
    %16 = vector.broadcast %cst_8 : f32 to vector<128x256xf32>
    %17 = arith.addf %16, %15 : vector<128x256xf32>
    %18 = arith.mulf %7, %17 : vector<128x256xf32>
    %c0_9 = arith.constant 0 : index
    %c0_10 = arith.constant 0 : index
    %19 = vector.load %arg4[%c0_9, %c0_10] : memref<256x256xf32, #tpu.memory_space<vmem>>, vector<256x256xf32>
    %cst_11 = arith.constant dense<0.000000e+00> : vector<128x256xf32>
    %20 = tpu.matmul %18, %19, %cst_11 {dimension_numbers = #tpu.dot_dimension_numbers<[1], [0], [0], [1], [0, 0, 1, 1], [], []>} : vector<128x256xf32>, vector<256x256xf32>, vector<128x256xf32> -> vector<128x256xf32>
    %c0_12 = arith.constant 0 : index
    %c0_13 = arith.constant 0 : index
    %21 = vector.load %arg5[%c0_12, %c0_13] : memref<1x256xf32, #tpu.memory_space<vmem>>, vector<1x256xf32>
    %22 = vector.broadcast %21 : vector<1x256xf32> to vector<128x256xf32>
    %23 = arith.addf %20, %22 : vector<128x256xf32>
    %cst_14 = arith.constant 5.000000e-01 : f32
    %24 = vector.broadcast %cst_14 : f32 to vector<128x256xf32>
    %25 = arith.mulf %24, %23 : vector<128x256xf32>
    %cst_15 = arith.constant 4.471500e-02 : f32
    %26 = vector.broadcast %cst_15 : f32 to vector<128x256xf32>
    %27 = arith.mulf %26, %23 : vector<128x256xf32>
    %28 = arith.mulf %27, %23 : vector<128x256xf32>
    %29 = arith.mulf %28, %23 : vector<128x256xf32>
    %30 = arith.addf %23, %29 : vector<128x256xf32>
    %cst_16 = arith.constant 0.797884583 : f32
    %31 = vector.broadcast %cst_16 : f32 to vector<128x256xf32>
    %32 = arith.mulf %31, %30 : vector<128x256xf32>
    %33 = math.tanh %32 : vector<128x256xf32>
    %cst_17 = arith.constant 1.000000e+00 : f32
    %34 = vector.broadcast %cst_17 : f32 to vector<128x256xf32>
    %35 = arith.addf %34, %33 : vector<128x256xf32>
    %36 = arith.mulf %25, %35 : vector<128x256xf32>
    %c0_18 = arith.constant 0 : index
    %c0_19 = arith.constant 0 : index
    %37 = vector.load %arg6[%c0_18, %c0_19] : memref<256x128xf32, #tpu.memory_space<vmem>>, vector<256x128xf32>
    %cst_20 = arith.constant dense<0.000000e+00> : vector<128x128xf32>
    %38 = tpu.matmul %36, %37, %cst_20 {dimension_numbers = #tpu.dot_dimension_numbers<[1], [0], [0], [1], [0, 0, 1, 1], [], []>} : vector<128x256xf32>, vector<256x128xf32>, vector<128x128xf32> -> vector<128x128xf32>
    %c0_21 = arith.constant 0 : index
    %c0_22 = arith.constant 0 : index
    %39 = vector.load %arg7[%c0_21, %c0_22] : memref<1x128xf32, #tpu.memory_space<vmem>>, vector<1x128xf32>
    %40 = vector.broadcast %39 : vector<1x128xf32> to vector<128x128xf32>
    %41 = arith.addf %38, %40 : vector<128x128xf32>
    %c0_23 = arith.constant 0 : index
    %c0_24 = arith.constant 0 : index
    %42 = vector.load %arg8[%c0_23, %c0_24] : memref<128x128xf32, #tpu.memory_space<vmem>>, vector<128x128xf32>
    tpu.vector_store %arg8[%c0_23, %c0_24], %41 {strides = array<i32>} : memref<128x128xf32, #tpu.memory_space<vmem>>, vector<128x128xf32>,
    return
  }
  func.func @transform_0(%arg0: i32) -> (i32, i32) {
    %c0_i32 = arith.constant 0 : i32
    %c0_i32_0 = arith.constant 0 : i32
    return %arg0, %c0_i32 : i32, i32
  }
  func.func @transform_1(%arg0: i32) -> (i32, i32) {
    %c0_i32 = arith.constant 0 : i32
    %c0_i32_0 = arith.constant 0 : i32
    %c0_i32_1 = arith.constant 0 : i32
    return %c0_i32, %c0_i32_0 : i32, i32
  }
  func.func @transform_2(%arg0: i32) -> (i32, i32) {
    %c0_i32 = arith.constant 0 : i32
    %c0_i32_0 = arith.constant 0 : i32
    %c0_i32_1 = arith.constant 0 : i32
    return %c0_i32, %c0_i32_0 : i32, i32
  }
  func.func @transform_3(%arg0: i32) -> (i32, i32) {
    %c0_i32 = arith.constant 0 : i32
    %c0_i32_0 = arith.constant 0 : i32
    %c0_i32_1 = arith.constant 0 : i32
    return %c0_i32, %c0_i32_0 : i32, i32
  }
  func.func @transform_4(%arg0: i32) -> (i32, i32) {
    %c0_i32 = arith.constant 0 : i32
    %c0_i32_0 = arith.constant 0 : i32
    %c0_i32_1 = arith.constant 0 : i32
    return %c0_i32, %c0_i32_0 : i32, i32
  }
  func.func @transform_5(%arg0: i32) -> (i32, i32) {
    %c0_i32 = arith.constant 0 : i32
    %c0_i32_0 = arith.constant 0 : i32
    %c0_i32_1 = arith.constant 0 : i32
    return %c0_i32, %c0_i32_0 : i32, i32
  }
  func.func @transform_6(%arg0: i32) -> (i32, i32) {
    %c0_i32 = arith.constant 0 : i32
    %c0_i32_0 = arith.constant 0 : i32
    %c0_i32_1 = arith.constant 0 : i32
    return %c0_i32, %c0_i32_0 : i32, i32
  }
  func.func @transform_7(%arg0: i32) -> (i32, i32) {
    %c0_i32 = arith.constant 0 : i32
    %c0_i32_0 = arith.constant 0 : i32
    return %arg0, %c0_i32 : i32, i32
  }
}

module attributes {stable_mosaic.version = 11 : i64} {
  func.func @phi_kernel(%arg0: i32, %arg1: memref<128x128xf32, #tpu.memory_space<vmem>>, %arg2: memref<128x256xf32, #tpu.memory_space<vmem>>, %arg3: memref<1x256xf32, #tpu.memory_space<vmem>>, %arg4: memref<256x256xf32, #tpu.memory_space<vmem>>, %arg5: memref<1x256xf32, #tpu.memory_space<vmem>>, %arg6: memref<256x128xf32, #tpu.memory_space<vmem>>, %arg7: memref<1x128xf32, #tpu.memory_space<vmem>>, %arg8: memref<128x128xf32, #tpu.memory_space<vmem>>) attributes {dimension_semantics = [#tpu.dimension_semantics<parallel>], iteration_bounds = array<i64: 2>, scalar_prefetch = 0 : i64, scratch_operands = 0 : i64, tpu.core_type = #tpu.core_type<tc>, window_params = [{transform_indices = @transform_0, window_bounds = array<i64: 128, 128>}, {pipeline_mode = #tpu.pipeline_mode<synchronous>, transform_indices = @transform_1, window_bounds = array<i64: 128, 256>}, {pipeline_mode = #tpu.pipeline_mode<synchronous>, transform_indices = @transform_2, window_bounds = array<i64: 1, 256>}, {pipeline_mode = #tpu.pipeline_mode<synchronous>, transform_indices = @transform_3, window_bounds = array<i64: 256, 256>}, {pipeline_mode = #tpu.pipeline_mode<synchronous>, transform_indices = @transform_4, window_bounds = array<i64: 1, 256>}, {pipeline_mode = #tpu.pipeline_mode<synchronous>, transform_indices = @transform_5, window_bounds = array<i64: 256, 128>}, {pipeline_mode = #tpu.pipeline_mode<synchronous>, transform_indices = @transform_6, window_bounds = array<i64: 1, 128>}, {transform_indices = @transform_7, window_bounds = array<i64: 128, 128>}]} {
    %c0 = arith.constant 0 : index
    %c0_0 = arith.constant 0 : index
    %0 = vector.load %arg1[%c0, %c0_0] : memref<128x128xf32, #tpu.memory_space<vmem>>, vector<128x128xf32>
    %c0_1 = arith.constant 0 : index
    %c0_2 = arith.constant 0 : index
    %1 = vector.load %arg2[%c0_1, %c0_2] : memref<128x256xf32, #tpu.memory_space<vmem>>, vector<128x256xf32>
    %cst = arith.constant dense<0.000000e+00> : vector<128x256xf32>
    %2 = tpu.matmul %0, %1, %cst {dimension_numbers = #tpu.dot_dimension_numbers<[1], [0], [0], [1], [0, 0, 1, 1], [], []>} : vector<128x128xf32>, vector<128x256xf32>, vector<128x256xf32> -> vector<128x256xf32>
    %c0_3 = arith.constant 0 : index
    %c0_4 = arith.constant 0 : index
    %3 = vector.load %arg3[%c0_3, %c0_4] : memref<1x256xf32, #tpu.memory_space<vmem>>, vector<1x256xf32>
    %4 = vector.broadcast %3 : vector<1x256xf32> to vector<128x256xf32>
    %5 = arith.addf %2, %4 : vector<128x256xf32>
    %cst_5 = arith.constant 5.000000e-01 : f32
    %6 = vector.broadcast %cst_5 : f32 to vector<128x256xf32>
    %7 = arith.mulf %6, %5 : vector<128x256xf32>
    %cst_6 = arith.constant 4.471500e-02 : f32
    %8 = vector.broadcast %cst_6 : f32 to vector<128x256xf32>
    %9 = arith.mulf %8, %5 : vector<128x256xf32>
    %10 = arith.mulf %9, %5 : vector<128x256xf32>
    %11 = arith.mulf %10, %5 : vector<128x256xf32>
    %12 = arith.addf %5, %11 : vector<128x256xf32>
    %cst_7 = arith.constant 0.797884583 : f32
    %13 = vector.broadcast %cst_7 : f32 to vector<128x256xf32>
    %14 = arith.mulf %13, %12 : vector<128x256xf32>
    %15 = math.tanh %14 : vector<128x256xf32>
    %cst_8 = arith.constant 1.000000e+00 : f32
    %16 = vector.broadcast %cst_8 : f32 to vector<128x256xf32>
    %17 = arith.addf %16, %15 : vector<128x256xf32>
    %18 = arith.mulf %7, %17 : vector<128x256xf32>
    %c0_9 = arith.constant 0 : index
    %c0_10 = arith.constant 0 : index
    %19 = vector.load %arg4[%c0_9, %c0_10] : memref<256x256xf32, #tpu.memory_space<vmem>>, vector<256x256xf32>
    %cst_11 = arith.constant dense<0.000000e+00> : vector<128x256xf32>
    %20 = tpu.matmul %18, %19, %cst_11 {dimension_numbers = #tpu.dot_dimension_numbers<[1], [0], [0], [1], [0, 0, 1, 1], [], []>} : vector<128x256xf32>, vector<256x256xf32>, vector<128x256xf32> -> vector<128x256xf32>
    %c0_12 = arith.constant 0 : index
    %c0_13 = arith.constant 0 : index
    %21 = vector.load %arg5[%c0_12, %c0_13] : memref<1x256xf32, #tpu.memory_space<vmem>>, vector<1x256xf32>
    %22 = vector.broadcast %21 : vector<1x256xf32> to vector<128x256xf32>
    %23 = arith.addf %20, %22 : vector<128x256xf32>
    %cst_14 = arith.constant 5.000000e-01 : f32
    %24 = vector.broadcast %cst_14 : f32 to vector<128x256xf32>
    %25 = arith.mulf %24, %23 : vector<128x256xf32>
    %cst_15 = arith.constant 4.471500e-02 : f32
    %26 = vector.broadcast %cst_15 : f32 to vector<128x256xf32>
    %27 = arith.mulf %26, %23 : vector<128x256xf32>
    %28 = arith.mulf %27, %23 : vector<128x256xf32>
    %29 = arith.mulf %28, %23 : vector<128x256xf32>
    %30 = arith.addf %23, %29 : vector<128x256xf32>
    %cst_16 = arith.constant 0.797884583 : f32
    %31 = vector.broadcast %cst_16 : f32 to vector<128x256xf32>
    %32 = arith.mulf %31, %30 : vector<128x256xf32>
    %33 = math.tanh %32 : vector<128x256xf32>
    %cst_17 = arith.constant 1.000000e+00 : f32
    %34 = vector.broadcast %cst_17 : f32 to vector<128x256xf32>
    %35 = arith.addf %34, %33 : vector<128x256xf32>
    %36 = arith.mulf %25, %35 : vector<128x256xf32>
    %c0_18 = arith.constant 0 : index
    %c0_19 = arith.constant 0 : index
    %37 = vector.load %arg6[%c0_18, %c0_19] : memref<256x128xf32, #tpu.memory_space<vmem>>, vector<256x128xf32>
    %cst_20 = arith.constant dense<0.000000e+00> : vector<128x128xf32>
    %38 = tpu.matmul %36, %37, %cst_20 {dimension_numbers = #tpu.dot_dimension_numbers<[1], [0], [0], [1], [0, 0, 1, 1], [], []>} : vector<128x256xf32>, vector<256x128xf32>, vector<128x128xf32> -> vector<128x128xf32>
    %c0_21 = arith.constant 0 : index
    %c0_22 = arith.constant 0 : index
    %39 = vector.load %arg7[%c0_21, %c0_22] : memref<1x128xf32, #tpu.memory_space<vmem>>, vector<1x128xf32>
    %40 = vector.broadcast %39 : vector<1x128xf32> to vector<128x128xf32>
    %41 = arith.addf %38, %40 : vector<128x128xf32>
    %c0_23 = arith.constant 0 : index
    %c0_24 = arith.constant 0 : index
    %42 = vector.load %arg8[%c0_23, %c0_24] : memref<128x128xf32, #tpu.memory_space<vmem>>, vector<128x128xf32>
    tpu.vector_store %arg8[%c0_23, %c0_24], %41 {strides = array<i32>} : memref<128x128xf32, #tpu.memory_space<vmem>>, vector<128x128xf32>,
    return
  }
  func.func @transform_0(%arg0: i32) -> (i32, i32) {
    %c0_i32 = arith.constant 0 : i32
    %c0_i32_0 = arith.constant 0 : i32
    return %arg0, %c0_i32 : i32, i32
  }
  func.func @transform_1(%arg0: i32) -> (i32, i32) {
    %c0_i32 = arith.constant 0 : i32
    %c0_i32_0 = arith.constant 0 : i32
    %c0_i32_1 = arith.constant 0 : i32
    return %c0_i32, %c0_i32_0 : i32, i32
  }
  func.func @transform_2(%arg0: i32) -> (i32, i32) {
    %c0_i32 = arith.constant 0 : i32
    %c0_i32_0 = arith.constant 0 : i32
    %c0_i32_1 = arith.constant 0 : i32
    return %c0_i32, %c0_i32_0 : i32, i32
  }
  func.func @transform_3(%arg0: i32) -> (i32, i32) {
    %c0_i32 = arith.constant 0 : i32
    %c0_i32_0 = arith.constant 0 : i32
    %c0_i32_1 = arith.constant 0 : i32
    return %c0_i32, %c0_i32_0 : i32, i32
  }
  func.func @transform_4(%arg0: i32) -> (i32, i32) {
    %c0_i32 = arith.constant 0 : i32
    %c0_i32_0 = arith.constant 0 : i32
    %c0_i32_1 = arith.constant 0 : i32
    return %c0_i32, %c0_i32_0 : i32, i32
  }
  func.func @transform_5(%arg0: i32) -> (i32, i32) {
    %c0_i32 = arith.constant 0 : i32
    %c0_i32_0 = arith.constant 0 : i32
    %c0_i32_1 = arith.constant 0 : i32
    return %c0_i32, %c0_i32_0 : i32, i32
  }
  func.func @transform_6(%arg0: i32) -> (i32, i32) {
    %c0_i32 = arith.constant 0 : i32
    %c0_i32_0 = arith.constant 0 : i32
    %c0_i32_1 = arith.constant 0 : i32
    return %c0_i32, %c0_i32_0 : i32, i32
  }
  func.func @transform_7(%arg0: i32) -> (i32, i32) {
    %c0_i32 = arith.constant 0 : i32
    %c0_i32_0 = arith.constant 0 : i32
    return %arg0, %c0_i32 : i32, i32
  }
}

</mosaic_0001>

<bundles_post_ra>
// kernel: tpu_custom_call.1
= control target key start
LH: loop header
LB: loop body
LE: loop exit
PB: predicated region body
PF: predicated region fallthrough
CT: control target
= control target key end

     0   :  { %12 = vsyncpa [#allocation3], 0  ;;  %s3293_s0 = inlined_call_operand.hbm [shape: f32[256,128], index: 0, kind: input, shape index: {}]   ;;  %s3294_s1 = inlined_call_operand.hbm [shape: f32[128,256], index: 1, kind: input, shape index: {}]   ;;  %s3295_s2 = inlined_call_operand.vmem [shape: f32[1,256], index: 2, kind: input, shape index: {}]   ;;  %s3296_s3 = inlined_call_operand.hbm [shape: f32[256,256], index: 3, kind: input, shape index: {}]   ;;  %s3297_s4 = inlined_call_operand.vmem [shape: f32[1,256], index: 4, kind: input, shape index: {}]   ;;  %s3298_s5 = inlined_call_operand.hbm [shape: f32[256,128], index: 5, kind: input, shape index: {}]   ;;  %s3299_s6 = inlined_call_operand.vmem [shape: f32[1,128], index: 6, kind: input, shape index: {}]   ;;  %s3300_s7 = inlined_call_operand.hbm [shape: f32[256,128], index: 7, kind: output, shape index: {}]  }
   0x1   :  { %14 = vsyncpa [#allocation3 + $0x1], 0 }
   0x2   :  { %15 = vsyncpa [#allocation6], 0 }
   0x3   :  { %16 = vsyncpa [#allocation9], 0 }
   0x4   :  { %17 = vsyncpa [#allocation4], 0 }
   0x5   :  { %19 = vsyncpa [#allocation4 + $0x1], 0  ;;  %s2394_s24 = smov 0   ;;  %s2396_s25 = smov 0  }
   0x6   :  { %s2398_s26 = smov 0   ;;  %s2400_s27 = smov 0  }
   0x7 LB: > { %s2415_s28 = sadd.s32 4294967295, %s2340_s27   ;;  %s1693_s29 = sadd.s32 4294967294, %s2340_s27   ;;  %s2340_s27 = sphi %s2400_s27, %s3326_s27   ;;  %s2336_s26 = sphi %s2398_s26, %s3325_s26   ;;  %s2332_s25 = sphi %s2396_s25, %s3324_s25   ;;  %s2328_s24 = sphi %s2394_s24, %s3323_s24  }
   0x8   : > { %p45_p0 = scmp.ne.s32.totalorder %s2332_s25, %s2328_s24  ;;  %p3301_p1 = scmp.eq.s32.totalorder %s2415_s28, 0 }
   0x9   : > { %p201_p3 = scmp.eq.s32.totalorder %s1693_s29, 1  ;;  %p1694_p5 = scmp.ge.s32.totalorder %s2340_s27, 1 }
   0xa   : > { %p2424_p4 = por %p3301_p1, %p45_p0  ;;  %p208_p7 = scmp.lt.s32.totalorder %s2340_s27, 3 }
   0xb   : > { %p2429_p6 = por %p201_p3, %p45_p0  ;;  %s2342_s10 = smov [#allocation5]  }
   0xc   : > { %s3305_s30 = scalar_select %p2424_p4, 1, 0 }
   0xd   : > { %s3306_s8 = scalar_select %p2429_p6, 1, 0 }
   0xe   : > { %p2434_p8 = pnand %p1694_p5, %p208_p7  ;;  %s220_s11 = sshll.u32 %s2342_s10, 4  ;;  %s2438_s11 = int_to_ptr.vmem [resolvable:$true] %s220_s11 }
   0xf   : > { %3307 = sst [smem:[#allocation15_spill]] %s3306_s8  ;;  %s2343_s13 = smov [#allocation7]  }
  0x10   : > { %s3308_s9 = scalar_select %p2434_p8, 1, 0 }
  0x11   : > { %p1956_p9 = pneg %p2434_p8  ;;  %s236_s14 = sshll.u32 %s2343_s13, 4  ;;  %s2449_s14 = int_to_ptr.vmem [resolvable:$true] %s236_s14 }
  0x12   : > { %s2344_s15 = smov [#allocation8]   ;;  %s2152_s19 = scalar_lea.hbm %s3294_s1, 4096 }
  0x13   : > { %p2445_p11 = pnand %p1956_p9, %p3301_p1  ;;  %s2451_s16 = sshll.u32 %s2344_s15, 4  ;;  %s253_s16 = int_to_ptr.vmem [resolvable:$true] %s2451_s16 }
  0x14   : > { %p2153_p12 = scmp.ne.s32.totalorder %s3294_s1, %s2152_s19  ;;  %p2159_p5 = scmp.lt.u32.totalorder %s2152_s19, %s3294_s1 }
  0x15   : > { %p2461_p13 = pneg %p2445_p11 }
  0x17   : > { %p2155_p0 = pnand %p2461_p13, %p2153_p12 }
  0x19   : > { %p2156_p3 = pneg %p2155_p0 }
  0x1b   : > { %p2161_p7 = pnand %p2159_p5, %p2156_p3 }
  0x1d   : > { %2164 = shalt.err (!%p2161_p7)
}
  0x1e   : > { %s2165_s10 = scalar_lea.vmem %s2438_s11, 4096  ;;  %p2173_p2 = scmp.lt.s32.totalorder %s2438_s11, %s2438_s11 }
  0x1f   : > { %p2166_p9 = scmp.ne.s32.totalorder %s2438_s11, %s2165_s10  ;;  %p2174_p6 = scmp.lt.s32.totalorder %s2165_s10, %s2165_s10 }
  0x21   : > { %p2168_p10 = pnand %p2166_p9, %p2461_p13  ;;  %p2175_p12 = por %p2174_p6, %p2173_p2 }
  0x23   : > { %p2169_p1 = pneg %p2168_p10 }
  0x25   : > { %p2176_p0 = pnand %p2175_p12, %p2169_p1 }
  0x27   : > { %2179 = shalt.err (!%p2176_p0)
}
  0x28   : > { %s2345_s13 = smov 256   ;;  %s2346_s15 = smov 16  }
  0x29   : > { %1959 = dma.hbm_to_vmem [thread:$0]  (!%p2445_p11), %s3294_s1, 4096, %s2438_s11, [#allocation6], %s2345_s13, %s2345_s13, %s2346_s15  }
  0x2a   : > { %s2180_s21 = scalar_lea.hbm %s3296_s3, 8192 }
  0x2b   : > { %p2181_p2 = scmp.ne.s32.totalorder %s3296_s3, %s2180_s21  ;;  %p2187_p10 = scmp.lt.u32.totalorder %s2180_s21, %s3296_s3 }
  0x2d   : > { %p2183_p1 = pnand %p2181_p2, %p2461_p13 }
  0x2f   : > { %p2184_p6 = pneg %p2183_p1 }
  0x31   : > { %p2189_p3 = pnand %p2187_p10, %p2184_p6 }
  0x33   : > { %2192 = shalt.err (!%p2189_p3)
}
  0x34   : > { %s2193_s11 = scalar_lea.vmem %s2449_s14, 8192  ;;  %p2201_p12 = scmp.lt.s32.totalorder %s2449_s14, %s2449_s14 }
  0x35   : > { %p2194_p5 = scmp.ne.s32.totalorder %s2449_s14, %s2193_s11  ;;  %p2202_p0 = scmp.lt.s32.totalorder %s2193_s11, %s2193_s11 }
  0x37   : > { %p2196_p7 = pnand %p2194_p5, %p2461_p13  ;;  %p2203_p2 = por %p2202_p0, %p2201_p12 }
  0x39   : > { %p2197_p9 = pneg %p2196_p7 }
  0x3b   : > { %p2204_p1 = pnand %p2203_p2, %p2197_p9 }
  0x3d   : > { %2207 = shalt.err (!%p2204_p1)
}
  0x3e   : > { %1962 = dma.hbm_to_vmem [thread:$0]  (!%p2445_p11), %s3296_s3, 8192, %s2449_s14, [#allocation6], %s2345_s13, %s2345_s13, %s2346_s15  }
  0x3f   : > { %s2208_s20 = scalar_lea.hbm %s3298_s5, 4096 }
  0x40   : > { %p2209_p6 = scmp.ne.s32.totalorder %s3298_s5, %s2208_s20  ;;  %p2215_p5 = scmp.lt.u32.totalorder %s2208_s20, %s3298_s5 }
  0x42   : > { %p2211_p10 = pnand %p2209_p6, %p2461_p13 }
  0x44   : > { %p2212_p3 = pneg %p2211_p10 }
  0x46   : > { %p2217_p7 = pnand %p2215_p5, %p2212_p3 }
  0x48   : > { %2220 = shalt.err (!%p2217_p7)
}
  0x49   : > { %s2221_s11 = scalar_lea.vmem %s253_s16, 4096  ;;  %p2229_p2 = scmp.lt.s32.totalorder %s253_s16, %s253_s16 }
  0x4a   : > { %p2222_p9 = scmp.ne.s32.totalorder %s253_s16, %s2221_s11  ;;  %p2230_p1 = scmp.lt.s32.totalorder %s2221_s11, %s2221_s11 }
  0x4c   : > { %p2224_p12 = pnand %p2222_p9, %p2461_p13  ;;  %p2231_p4 = por %p2230_p1, %p2229_p2 }
  0x4e   : > { %p2225_p0 = pneg %p2224_p12 }
  0x50   : > { %p2232_p8 = pnand %p2231_p4, %p2225_p0 }
  0x52   : > { %2235 = shalt.err (!%p2232_p8)
}
  0x53   : > { %s2347_s14 = smov 128   ;;  %s2348_s22 = smov 8  }
  0x54   : > { %1965 = dma.hbm_to_vmem [thread:$0]  (!%p2445_p11), %s3298_s5, 4096, %s253_s16, [#allocation9], %s2347_s14, %s2347_s14, %s2348_s22  }
  0x55   : > { %s2528_s8 = sadd.s32 1, %s2340_s27   ;;  %s32_s18 = sadd.s32 1, %s2336_s26 }
  0x56   : > { %s29_s17 = ssub.s32 %s2340_s27, %s2528_s8  ;;  %p39_p8 = scmp.ne.s32.totalorder %s2336_s26, %s2332_s25 }
  0x57   : > { %p30_p4 = scmp.eq.s32.totalorder %s29_s17, 0  ;;  %p40_p13 = scmp.eq.s32.totalorder %s2340_s27, 0 }
  0x58   : > { %p1977_p6 = scmp.lt.s32.totalorder %s2340_s27, 2  ;;  %p3311_p3 = scmp.eq.s32.totalorder %s2415_s28, 1 }
  0x59   : > { %s2538_s19 = scalar_select %p30_p4, %s2336_s26, %s32_s18  }
  0x5a   : > { %p41_p10 = por %p40_p13, %p39_p8  ;;  %p2542_p5 = por %p3311_p3, %p39_p8 }
  0x5b   : > { %s269_s20 = sand.u32 1, %s2336_s26   ;;  %s1714_s21 = sshll.u32 %s2340_s27, 11 }
  0x5c   : > { %s1699_s16 = sshll.u32 %s269_s20, 7  ;;  %s2551_s10 = scalar_lea.hbm %s3293_s0, %s1714_s21 }
  0x5d   : > { %s273_s11 = scalar_lea.vmem [#allocation2], %s1699_s16  ;;  %p2553_p11 = pnand %p1977_p6, %p41_p10 }
  0x5e   : > { %s280_s13 = sshll.u32 %s273_s11, 4  ;;  %s2559_s17 = scalar_lea.sflag [#allocation3], %s269_s20  ;;  %s2557_s13 = int_to_ptr.vmem [resolvable:$true] %s280_s13 }
  0x5f   : > { %s2236_s18 = scalar_lea.hbm %s2551_s10, 2048  ;;  %p2238_p9 = pneg %p2553_p11 }
  0x60   : > { %p2237_p7 = scmp.ne.s32.totalorder %s2551_s10, %s2236_s18  ;;  %s2241_s23 = scalar_lea.hbm %s3293_s0, 4096 }
  0x61   : > { %p2242_p2 = scmp.lt.u32.totalorder %s2551_s10, %s3293_s0  ;;  %p2243_p1 = scmp.lt.u32.totalorder %s2241_s23, %s2236_s18 }
  0x62   : > { %p2239_p12 = pnand %p2238_p9, %p2237_p7  ;;  %p2245_p8 = scmp.lt.u32.totalorder %s2236_s18, %s2551_s10 }
  0x63   : > { %p2244_p4 = por %p2243_p1, %p2242_p2 }
  0x64   : > { %p2240_p0 = pneg %p2239_p12 }
  0x65   : > { %p2246_p13 = por %p2245_p8, %p2244_p4 }
  0x67   : > { %p2247_p6 = pnand %p2246_p13, %p2240_p0 }
  0x69   : > { %2250 = shalt.err (!%p2247_p6)
}
  0x6a   : > { %s2251_s20 = scalar_lea.vmem %s2557_s13, 2048  ;;  %s2349_s21 = smov [#allocation2]  }
  0x6b   : > { %p2252_p10 = scmp.ne.s32.totalorder %s2557_s13, %s2251_s20  ;;  %s2256_s16 = sshll.u32 %s2349_s21, 4  ;;  %s2257_s16 = int_to_ptr.vmem [resolvable:$false] %s2256_s16 }
  0x6c   : > { %s2258_s29 = scalar_lea.vmem %s2257_s16, 4096  ;;  %p2259_p12 = scmp.lt.s32.totalorder %s2557_s13, %s2257_s16 }
  0x6d   : > { %p2254_p3 = pnand %p2252_p10, %p2238_p9  ;;  %p2260_p2 = scmp.lt.s32.totalorder %s2258_s29, %s2251_s20 }
  0x6f   : > { %p2255_p7 = pneg %p2254_p3  ;;  %p2261_p1 = por %p2260_p2, %p2259_p12 }
  0x71   : > { %p2262_p4 = pnand %p2261_p1, %p2255_p7 }
  0x73   : > { %2265 = shalt.err (!%p2262_p4)
}
  0x74   : > { %1969 = dma.hbm_to_vmem [thread:$0]  (!%p2553_p11), %s2551_s10, 2048, %s2557_s13, %s2559_s17, %s2347_s14, %s2347_s14, %s2348_s22  }
  0x75   : > { %p3314_p9 = scmp.ne.s32.totalorder %s3308_s9, 0 }
  0x76   : > { %s2593_s18 = sand.u32 (!%p3314_p9), 1, %s2332_s25   ;;  %p3315_p0 = scmp.ne.s32.totalorder (!%p3314_p9), %s3305_s30, 0 }
  0x77   : > { %292 = sbr.rel (%p3314_p9) target bundleno = 958 (0x3be), region = 48  ;;  %s1703_s23 = sshll.u32 (!%p3314_p9), %s2593_s18, 7 }
  0x78   : > { %s295_s11 = scalar_lea.sflag (!%p3314_p9), [#allocation3], %s2593_s18  ;;  %s2599_s15 = scalar_lea.vmem (!%p3314_p9), [#allocation2], %s1703_s23 }
  0x7e   : > { %2311 = dma.done.wait (%p3315_p0), %s295_s11, 2048  }
  0x7f   : > { %2313 = vsyncadd (%p3315_p0), %s295_s11, 4294965248  ;;  %p3316_p11 = scmp.eq.s32.totalorder %s2415_s28, 0 }
  0x81   : > { %2315 = dma.done.wait (%p3316_p11), [#allocation6], 12288   ;;  %p3317_p8 = pmov %p3316_p11 }
  0x83   : > { %2317 = vsyncadd (%p3317_p8), [#allocation6], 4294955008  ;;  %p3318_p13 = pmov %p3317_p8 }
  0x84   : > { %p3319_p6 = pmov %p3317_p8 }
  0x85   : > { %2319 = dma.done.wait (%p3318_p13), [#allocation9], 4096  }
  0x86   : > { %2321 = vsyncadd (%p3319_p6), [#allocation9], 4294963200  ;;  %v2350_v0 = vmov 0.0   ;;  %v360_v1 = vld [vmem:[#allocation5 + $0x8] sm:$0xff]  ;;  %v362_v2 = vld [vmem:[#allocation5 + $0x18] sm:$0xff]  ;;  %s3209_s17 = scalar_lea.vmem [#allocation10], %s1703_s23 }
  0x87   : > { %467 = vmatprep.mubr.f32.mxu0 %v2350_v0  ;;  %v359_v3 = vld [vmem:[#allocation5] sm:$0xff]  ;;  %v1796_v4 = vpack.c.bf16 %v362_v2, %v360_v1  ;;  %v361_v5 = vld [vmem:[#allocation5 + $0x10] sm:$0xff]  ;;  %v364_v6 = vld [vmem:[#allocation5 + $0x28] sm:$0xff]  ;;  %s1715_s20 = sshll.u32 %s2415_s28, 11  ;;  %s1591_s21 = sshll.u32 %s3209_s17, 4  ;;  %s3247_s21 = int_to_ptr.vmem [resolvable:$true] %s1591_s21 }
  0x88   : > { %v366_v7 = vld [vmem:[#allocation5 + $0x38] sm:$0xff]  ;;  %v1798_v8 = vpack.c.bf16 %v361_v5, %v359_v3  ;;  %v363_v10 = vld [vmem:[#allocation5 + $0x20] sm:$0xff]  ;;  %v365_v11 = vld [vmem:[#allocation5 + $0x30] sm:$0xff]  ;;  %s3245_s23 = scalar_lea.hbm %s3300_s7, %s1715_s20  ;;  %s1578_s11 = scalar_lea.sflag [#allocation4], %s2593_s18 }
  0x89   : > { %v1800_v9 = vpack.c.bf16 %v366_v7, %v364_v6  ;;  %v368_v12 = vld [vmem:[#allocation5 + $0x48] sm:$0xff]  ;;  %1797 = vmatprep.subr.bf16.mxu0 %v1796_v4  ;;  %v370_v13 = vld [vmem:[#allocation5 + $0x58] sm:$0xff]  ;;  %v1802_v14 = vpack.c.bf16 %v365_v11, %v363_v10  ;;  %v367_v16 = vld [vmem:[#allocation5 + $0x40] sm:$0xff]  ;;  %s2351_s28 = smov [#allocation10]  }
  0x8a   : > { %1799 = vmatpush1.bf16.msra.mxu0 %v1798_v8  ;;  %v1804_v15 = vpack.c.bf16 %v370_v13, %v368_v12  ;;  %v369_v17 = vld [vmem:[#allocation5 + $0x50] sm:$0xff]  ;;  %v372_v18 = vld [vmem:[#allocation5 + $0x68] sm:$0xff]  ;;  %v374_v19 = vld [vmem:[#allocation5 + $0x78] sm:$0xff]  ;;  %s2270_s30 = sshll.u32 %s2351_s28, 4  ;;  %s2271_s30 = int_to_ptr.vmem [resolvable:$false] %s2270_s30 }
  0x8b   : > { %1801 = vmatprep.subr.bf16.mxu0 %v1800_v9  ;;  %v1806_v20 = vpack.c.bf16 %v369_v17, %v367_v16  ;;  %v1808_v21 = vpack.c.bf16 %v374_v19, %v372_v18  ;;  %v371_v22 = vld [vmem:[#allocation5 + $0x60] sm:$0xff]  ;;  %v373_v23 = vld [vmem:[#allocation5 + $0x70] sm:$0xff]  ;;  %v376_v24 = vld [vmem:[#allocation5 + $0x88] sm:$0xff]  ;;  %s2272_s9 = scalar_lea.vmem %s2271_s30, 4096  ;;  %p2273_p12 = scmp.lt.s32.totalorder %s3247_s21, %s2271_s30 }
  0x8c   : > { %v378_v25 = vld [vmem:[#allocation5 + $0x98] sm:$0xff]  ;;  %v1810_v26 = vpack.c.bf16 %v373_v23, %v371_v22  ;;  %v375_v28 = vld [vmem:[#allocation5 + $0x80] sm:$0xff]  ;;  %v377_v29 = vld [vmem:[#allocation5 + $0x90] sm:$0xff] }
  0x8d   : > { %v1812_v27 = vpack.c.bf16 %v378_v25, %v376_v24  ;;  %v380_v30 = vld [vmem:[#allocation5 + $0xa8] sm:$0xff]  ;;  %v382_v31 = vld [vmem:[#allocation5 + $0xb8] sm:$0xff]  ;;  %v379_v32 = vld [vmem:[#allocation5 + $0xa0] sm:$0xff]  ;;  %v1814_v34 = vpack.c.bf16 %v377_v29, %v375_v28 }
  0x8e   : > { %1803 = vmatpush1.bf16.msra.mxu0 %v1802_v14  ;;  %v381_v33 = vld [vmem:[#allocation5 + $0xb0] sm:$0xff]  ;;  %v384_v35 = vld [vmem:[#allocation5 + $0xc8] sm:$0xff]  ;;  %v386_v36 = vld [vmem:[#allocation5 + $0xd8] sm:$0xff]  ;;  %v1816_v40 = vpack.c.bf16 %v382_v31, %v380_v30 }
  0x8f   : > { %1805 = vmatprep.subr.bf16.mxu0 %v1804_v15  ;;  %v853_v37 = vld [vmem:[#allocation7 + $0x8] sm:$0xff]  ;;  %v855_v38 = vld [vmem:[#allocation7 + $0x18] sm:$0xff]  ;;  %v852_v39 = vld [vmem:[#allocation7] sm:$0xff]  ;;  %v1818_v51 = vpack.c.bf16 %v381_v33, %v379_v32  ;;  %v1820_v55 = vpack.c.bf16 %v386_v36, %v384_v35 }
  0x90   : > { %v1828_v41 = vpack.c.bf16 %v855_v38, %v853_v37  ;;  %v854_v42 = vld [vmem:[#allocation7 + $0x10] sm:$0xff]  ;;  %v857_v43 = vld [vmem:[#allocation7 + $0x28] sm:$0xff]  ;;  %v859_v44 = vld [vmem:[#allocation7 + $0x38] sm:$0xff] }
  0x91   : > { %v1830_v45 = vpack.c.bf16 %v854_v42, %v852_v39  ;;  %v1832_v46 = vpack.c.bf16 %v859_v44, %v857_v43  ;;  %v856_v47 = vld [vmem:[#allocation7 + $0x20] sm:$0xff]  ;;  %v858_v48 = vld [vmem:[#allocation7 + $0x30] sm:$0xff]  ;;  %v861_v49 = vld [vmem:[#allocation7 + $0x48] sm:$0xff] }
  0x92   : > { %1807 = vmatpush1.bf16.msra.mxu0 %v1806_v20  ;;  %1829 = vmatprep.subr.bf16.mxu1 %v1828_v41  ;;  %v863_v50 = vld [vmem:[#allocation7 + $0x58] sm:$0xff]  ;;  %v383_v52 = vld [vmem:[#allocation5 + $0xc0] sm:$0xff]  ;;  %v385_v53 = vld [vmem:[#allocation5 + $0xd0] sm:$0xff]  ;;  %v1834_v54 = vpack.c.bf16 %v858_v48, %v856_v47 }
  0x93   : > { %1809 = vmatprep.subr.bf16.mxu0 %v1808_v21  ;;  %1831 = vmatpush1.bf16.msra.mxu1 %v1830_v45  ;;  %v388_v56 = vld [vmem:[#allocation5 + $0xe8] sm:$0xff]  ;;  %v1836_v57 = vpack.c.bf16 %v863_v50, %v861_v49  ;;  %v860_v58 = vld [vmem:[#allocation7 + $0x40] sm:$0xff]  ;;  %v862_v59 = vld [vmem:[#allocation7 + $0x50] sm:$0xff]  ;;  %v1822_v63 = vpack.c.bf16 %v385_v53, %v383_v52 }
  0x94   : > { %1833 = vmatprep.subr.bf16.mxu1 %v1832_v46  ;;  %v390_v60 = vld [vmem:[#allocation5 + $0xf8] sm:$0xff]  ;;  %v865_v61 = vld [vmem:[#allocation7 + $0x68] sm:$0xff]  ;;  %v387_v1 = vld [vmem:[#allocation5 + $0xe0] sm:$0xff]  ;;  %v1838_v2 = vpack.c.bf16 %v862_v59, %v860_v58 }
  0x95   : > { %v867_v62 = vld [vmem:[#allocation7 + $0x78] sm:$0xff]  ;;  %v1824_v3 = vpack.c.bf16 %v390_v60, %v388_v56  ;;  %v389_v4 = vld [vmem:[#allocation5 + $0xf0] sm:$0xff]  ;;  %v864_v6 = vld [vmem:[#allocation7 + $0x60] sm:$0xff] }
  0x96   : > { %1811 = vmatpush1.bf16.msra.mxu0 %v1810_v26  ;;  %v1840_v5 = vpack.c.bf16 %v867_v62, %v865_v61  ;;  %v866_v7 = vld [vmem:[#allocation7 + $0x70] sm:$0xff]  ;;  %v869_v8 = vld [vmem:[#allocation7 + $0x88] sm:$0xff]  ;;  %v871_v9 = vld [vmem:[#allocation7 + $0x98] sm:$0xff]  ;;  %v1826_v10 = vpack.c.bf16 %v389_v4, %v387_v1 }
  0x97   : > { %1813 = vmatprep.subr.bf16.mxu0 %v1812_v27  ;;  %1835 = vmatpush1.bf16.msra.mxu1 %v1834_v54  ;;  %v1842_v11 = vpack.c.bf16 %v866_v7, %v864_v6  ;;  %v1844_v12 = vpack.c.bf16 %v871_v9, %v869_v8  ;;  %v868_v13 = vld [vmem:[#allocation7 + $0x80] sm:$0xff]  ;;  %v870_v14 = vld [vmem:[#allocation7 + $0x90] sm:$0xff]  ;;  %v873_v15 = vld [vmem:[#allocation7 + $0xa8] sm:$0xff] }
  0x98   : > { %1837 = vmatprep.subr.bf16.mxu1 %v1836_v57  ;;  %v875_v16 = vld [vmem:[#allocation7 + $0xb8] sm:$0xff]  ;;  %v343_v17 = vld [vmem:[%s2599_s15] sm:$0xff]  ;;  %v1846_v18 = vpack.c.bf16 %v870_v14, %v868_v13  ;;  %v874_v21 = vld [vmem:[#allocation7 + $0xb0] sm:$0xff] }
  0x99   : > { %v1848_v19 = vpack.c.bf16 %v875_v16, %v873_v15  ;;  %v872_v20 = vld [vmem:[#allocation7 + $0xa0] sm:$0xff]  ;;  %v877_v22 = vld [vmem:[#allocation7 + $0xc8] sm:$0xff]  ;;  %v879_v23 = vld [vmem:[#allocation7 + $0xd8] sm:$0xff] }
  0x9a   : > { %1815 = vmatpush1.bf16.msra.mxu0 %v1814_v34  ;;  %v344_v24 = vld [vmem:[%s2599_s15 + $0x8] sm:$0xff]  ;;  %v1850_v25 = vpack.c.bf16 %v874_v21, %v872_v20  ;;  %v1852_v26 = vpack.c.bf16 %v879_v23, %v877_v22  ;;  %v876_v27 = vld [vmem:[#allocation7 + $0xc0] sm:$0xff]  ;;  %v878_v28 = vld [vmem:[#allocation7 + $0xd0] sm:$0xff] }
  0x9b   : > { %1817 = vmatprep.subr.bf16.mxu0 %v1816_v40  ;;  %1839 = vmatpush1.bf16.msra.mxu1 %v1838_v2  ;;  %v881_v29 = vld [vmem:[#allocation7 + $0xe8] sm:$0xff]  ;;  %v883_v30 = vld [vmem:[#allocation7 + $0xf8] sm:$0xff]  ;;  %v345_v31 = vld [vmem:[%s2599_s15 + $0x10] sm:$0xff]  ;;  %v1854_v32 = vpack.c.bf16 %v878_v28, %v876_v27 }
  0x9c   : > { %1841 = vmatprep.subr.bf16.mxu1 %v1840_v5  ;;  %v1856_v33 = vpack.c.bf16 %v883_v30, %v881_v29  ;;  %v880_v34 = vld [vmem:[#allocation7 + $0xe0] sm:$0xff]  ;;  %v882_v35 = vld [vmem:[#allocation7 + $0xf0] sm:$0xff]  ;;  %v885_v36 = vld [vmem:[#allocation7 + $0x108] sm:$0xff] }
  0x9d   : > { %v887_v37 = vld [vmem:[#allocation7 + $0x118] sm:$0xff]  ;;  %v1858_v39 = vpack.c.bf16 %v882_v35, %v880_v34  ;;  %v884_v41 = vld [vmem:[#allocation7 + $0x100] sm:$0xff]  ;;  %v886_v42 = vld [vmem:[#allocation7 + $0x110] sm:$0xff] }
  0x9e   : > { %1819 = vmatpush1.bf16.msra.mxu0 %v1818_v51  ;;  %v346_v38 = vld [vmem:[%s2599_s15 + $0x18] sm:$0xff]  ;;  %v1860_v40 = vpack.c.bf16 %v887_v37, %v885_v36  ;;  %v347_v43 = vld [vmem:[%s2599_s15 + $0x20] sm:$0xff]  ;;  %v1862_v44 = vpack.c.bf16 %v886_v42, %v884_v41  ;;  %v348_v45 = vld [vmem:[%s2599_s15 + $0x28] sm:$0xff] }
  0x9f   : > { %1821 = vmatprep.subr.bf16.mxu0 %v1820_v55  ;;  %1843 = vmatpush1.bf16.msra.mxu1 %v1842_v11  ;;  %v349_v46 = vld [vmem:[%s2599_s15 + $0x30] sm:$0xff]  ;;  %v350_v47 = vld [vmem:[%s2599_s15 + $0x38] sm:$0xff]  ;;  %v351_v48 = vld [vmem:[%s2599_s15 + $0x40] sm:$0xff] }
  0xa0   : > { %1845 = vmatprep.subr.bf16.mxu1 %v1844_v12  ;;  %v352_v49 = vld [vmem:[%s2599_s15 + $0x48] sm:$0xff]  ;;  %v353_v50 = vld [vmem:[%s2599_s15 + $0x50] sm:$0xff]  ;;  %v354_v51 = vld [vmem:[%s2599_s15 + $0x58] sm:$0xff] }
  0xa1   : > { %v355_v52 = vld [vmem:[%s2599_s15 + $0x60] sm:$0xff]  ;;  %v356_v53 = vld [vmem:[%s2599_s15 + $0x68] sm:$0xff]  ;;  %v357_v54 = vld [vmem:[%s2599_s15 + $0x70] sm:$0xff] }
  0xa2   : > { %1823 = vmatpush1.bf16.msra.mxu0 %v1822_v63  ;;  %v358_v55 = vld [vmem:[%s2599_s15 + $0x78] sm:$0xff]  ;;  %v889_v56 = vld [vmem:[#allocation7 + $0x128] sm:$0xff]  ;;  %v888_v59 = vld [vmem:[#allocation7 + $0x120] sm:$0xff]  ;;  %s2266_s15 = scalar_lea.vmem %s3247_s21, 2048 }
  0xa3   : > { %1825 = vmatprep.subr.bf16.mxu0 %v1824_v3  ;;  %1847 = vmatpush1.bf16.msra.mxu1 %v1846_v18  ;;  %v891_v57 = vld [vmem:[#allocation7 + $0x138] sm:$0xff]  ;;  %v890_v60 = vld [vmem:[#allocation7 + $0x130] sm:$0xff]  ;;  %v893_v62 = vld [vmem:[#allocation7 + $0x148] sm:$0xff]  ;;  %p2267_p10 = scmp.ne.s32.totalorder %s3247_s21, %s2266_s15  ;;  %p2274_p2 = scmp.lt.s32.totalorder %s2272_s9, %s2266_s15 }
  0xa4   : > { %1849 = vmatprep.subr.bf16.mxu1 %v1848_v19  ;;  %v1864_v58 = vpack.c.bf16 %v891_v57, %v889_v56  ;;  %v1866_v61 = vpack.c.bf16 %v890_v60, %v888_v59  ;;  %v895_v63 = vld [vmem:[#allocation7 + $0x158] sm:$0xff]  ;;  %v892_v2 = vld [vmem:[#allocation7 + $0x140] sm:$0xff]  ;;  %v894_v3 = vld [vmem:[#allocation7 + $0x150] sm:$0xff] }
  0xa5   : > { %v1868_v1 = vpack.c.bf16 %v895_v63, %v893_v62  ;;  %v1870_v4 = vpack.c.bf16 %v894_v3, %v892_v2  ;;  %v897_v5 = vld [vmem:[#allocation7 + $0x168] sm:$0xff]  ;;  %v896_v7 = vld [vmem:[#allocation7 + $0x160] sm:$0xff]  ;;  %v898_v8 = vld [vmem:[#allocation7 + $0x170] sm:$0xff]  ;;  %p2268_p3 = pnand %p2267_p10, %p2542_p5  ;;  %p2275_p1 = por %p2274_p2, %p2273_p12 }
  0xa6   : > { %1827 = vmatpush1.bf16.msra.mxu0 %v1826_v10  ;;  %v1874_v9 = vpack.c.bf16 %v898_v8, %v896_v7  ;;  %v901_v10 = vld [vmem:[#allocation7 + $0x188] sm:$0xff]  ;;  %v903_v11 = vld [vmem:[#allocation7 + $0x198] sm:$0xff]  ;;  %v900_v13 = vld [vmem:[#allocation7 + $0x180] sm:$0xff] }
  0xa7   : > { %1851 = vmatpush1.bf16.msra.mxu1 %v1850_v25  ;;  %v1876_v12 = vpack.c.bf16 %v903_v11, %v901_v10  ;;  %v902_v14 = vld [vmem:[#allocation7 + $0x190] sm:$0xff]  ;;  %v905_v16 = vld [vmem:[#allocation7 + $0x1a8] sm:$0xff]  ;;  %v904_v19 = vld [vmem:[#allocation7 + $0x1a0] sm:$0xff]  ;;  %p2269_p7 = pneg %p2268_p3 }
  0xa8   : > { %1853 = vmatprep.subr.bf16.mxu1 %v1852_v26  ;;  %v1878_v15 = vpack.c.bf16 %v902_v14, %v900_v13  ;;  %v906_v20 = vld [vmem:[#allocation7 + $0x1b0] sm:$0xff]  ;;  %v909_v22 = vld [vmem:[#allocation7 + $0x1c8] sm:$0xff]  ;;  %v911_v23 = vld [vmem:[#allocation7 + $0x1d8] sm:$0xff] }
  0xa9   : > { %468 = vmatmul.mubr.f32.vlgmr.msra.gmra.mrb[0].mxu0 %v343_v17  ;;  %v907_v17 = vld [vmem:[#allocation7 + $0x1b8] sm:$0xff]  ;;  %v1882_v21 = vpack.c.bf16 %v906_v20, %v904_v19  ;;  %v908_v25 = vld [vmem:[#allocation7 + $0x1c0] sm:$0xff]  ;;  %v910_v26 = vld [vmem:[#allocation7 + $0x1d0] sm:$0xff]  ;;  %p2276_p4 = pnand %p2275_p1, %p2269_p7 }
  0xaa   : > { %473 = vmatprep.mubr.f32.mxu0 %v2350_v0  ;;  %v1880_v18 = vpack.c.bf16 %v907_v17, %v905_v16  ;;  %v1886_v27 = vpack.c.bf16 %v910_v26, %v908_v25  ;;  %v913_v28 = vld [vmem:[#allocation7 + $0x1e8] sm:$0xff]  ;;  %v915_v29 = vld [vmem:[#allocation7 + $0x1f8] sm:$0xff]  ;;  %v1393_v34 = vld [vmem:[#allocation8 + $0x80] sm:$0xff] }
  0xab   : > { %1855 = vmatpush1.bf16.msra.mxu1 %v1854_v32  ;;  %v1888_v30 = vpack.c.bf16 %v915_v29, %v913_v28  ;;  %v914_v32 = vld [vmem:[#allocation7 + $0x1f0] sm:$0xff]  ;;  %v1394_v35 = vld [vmem:[#allocation8 + $0x88] sm:$0xff]  ;;  %v1377_v36 = vld [vmem:[#allocation8] sm:$0xff] }
  0xac   : > { %1857 = vmatprep.subr.bf16.mxu1 %v1856_v33  ;;  %v1892_v37 = vpack.c.bf16 %v1394_v35, %v1393_v34 }
  0xad   : > { %474 = vmatmul.mubr.f32.gmra.mrb[2].mxu0 %v344_v24  ;;  %v1884_v24 = vpack.c.bf16 %v911_v23, %v909_v22 }
  0xae   : > { %479 = vmatprep.mubr.f32.mxu0 %v2350_v0  ;;  %1893 = vmatprep.subr.bf16.mxu0 %v1892_v37 }
  0xaf   : > { %1859 = vmatpush1.bf16.msra.mxu1 %v1858_v39  ;;  %v1395_v39 = vld [vmem:[#allocation8 + $0x90] sm:$0xff] }
  0xb0   : > { %1861 = vmatprep.subr.bf16.mxu1 %v1860_v40  ;;  %v1396_v40 = vld [vmem:[#allocation8 + $0x98] sm:$0xff] }
  0xb1   : > { %480 = vmatmul.mubr.f32.gmra.mrb[4].mxu0 %v345_v31  ;;  %v912_v31 = vld [vmem:[#allocation7 + $0x1e0] sm:$0xff]  ;;  %v2647_v42 = vpack.c.bf16 %v1396_v40, %v1395_v39 }
  0xb2   : > { %485 = vmatprep.mubr.f32.mxu0 %v2350_v0  ;;  %v1890_v33 = vpack.c.bf16 %v914_v32, %v912_v31 }
  0xb3   : > { %1863 = vmatpush1.bf16.msra.mxu1 %v1862_v44  ;;  %v1380_v44 = vld [vmem:[#allocation8 + $0x18] sm:$0xff] }
  0xb4   : > { %1865 = vmatprep.subr.bf16.mxu1 %v1864_v58 }
  0xb5   : > { %486 = vmatmul.mubr.f32.gmra.mrb[6].mxu0 %v346_v38  ;;  %v1378_v38 = vld [vmem:[#allocation8 + $0x8] sm:$0xff] }
  0xb6   : > { %491 = vmatprep.mubr.f32.mxu0 %v2350_v0  ;;  %v2645_v41 = vpack.c.bf16 %v1378_v38, %v1377_v36 }
  0xb7   : > { %1867 = vmatpush1.bf16.msra.mxu1 %v1866_v61 }
  0xb8   : > { %1869 = vmatprep.subr.bf16.mxu1 %v1868_v1  ;;  %1895 = vmatpush3.bf16.msra.mxu0 %v2645_v41 }
  0xb9   : > { %492 = vmatmul.mubr.f32.gmra.mrb[8].mxu0 %v347_v43  ;;  %v1379_v43 = vld [vmem:[#allocation8 + $0x10] sm:$0xff]  ;;  %1897 = vmatprep.subr.bf16.mxu0 %v2647_v42 }
  0xba   : > { %497 = vmatprep.mubr.f32.mxu0 %v2350_v0 }
  0xbb   : > { %1871 = vmatpush1.bf16.msra.mxu1 %v1870_v4 }
  0xbd   : > { %498 = vmatmul.mubr.f32.gmra.mrb[10].mxu0 %v348_v45  ;;  %v1397_v45 = vld [vmem:[#allocation8 + $0xa0] sm:$0xff] }
  0xbe   : > { %503 = vmatprep.mubr.f32.mxu0 %v2350_v0 }
  0xc1   : > { %504 = vmatmul.mubr.f32.gmra.mrb[12].mxu0 %v349_v46  ;;  %v1398_v46 = vld [vmem:[#allocation8 + $0xa8] sm:$0xff] }
  0xc2   : > { %509 = vmatprep.mubr.f32.mxu0 %v2350_v0 }
  0xc5   : > { %510 = vmatmul.mubr.f32.gmra.mrb[14].mxu0 %v350_v47  ;;  %v2650_v47 = vpack.c.bf16 %v1380_v44, %v1379_v43 }
  0xc6   : > { %515 = vmatprep.mubr.f32.mxu0 %v2350_v0 }
  0xc7   : > { %1899 = vmatpush3.bf16.msra.mxu0 %v2650_v47 }
  0xc9   : > { %516 = vmatmul.mubr.f32.gmra.mrb[16].mxu0 %v351_v48  ;;  %v2653_v48 = vpack.c.bf16 %v1398_v46, %v1397_v45 }
  0xca   : > { %521 = vmatprep.mubr.f32.mxu0 %v2350_v0 }
  0xcb   : > { %1901 = vmatprep.subr.bf16.mxu0 %v2653_v48 }
  0xcd   : > { %522 = vmatmul.mubr.f32.gmra.mrb[18].mxu0 %v352_v49  ;;  %v1381_v49 = vld [vmem:[#allocation8 + $0x20] sm:$0xff] }
  0xce   : > { %527 = vmatprep.mubr.f32.mxu0 %v2350_v0 }
  0xd1   : > { %528 = vmatmul.mubr.f32.gmra.mrb[20].mxu0 %v353_v50  ;;  %v1382_v50 = vld [vmem:[#allocation8 + $0x28] sm:$0xff] }
  0xd2   : > { %533 = vmatprep.mubr.f32.mxu0 %v2350_v0 }
  0xd5   : > { %534 = vmatmul.mubr.f32.gmra.mrb[22].mxu0 %v354_v51  ;;  %v2656_v51 = vpack.c.bf16 %v1382_v50, %v1381_v49 }
  0xd6   : > { %539 = vmatprep.mubr.f32.mxu0 %v2350_v0 }
  0xd7   : > { %1903 = vmatpush3.bf16.msra.mxu0 %v2656_v51 }
  0xd9   : > { %540 = vmatmul.mubr.f32.gmra.mrb[24].mxu0 %v355_v52  ;;  %v393_v52 = vlaneseq }
  0xda   : > { %545 = vmatprep.mubr.f32.mxu0 %v2350_v0 }
  0xdd   : > { %546 = vmatmul.mubr.f32.gmra.mrb[26].mxu0 %v356_v53  ;;  %v2660_v53 = vshrl.u32 %v393_v52, 7 }
  0xde   : > { %551 = vmatprep.mubr.f32.mxu0 %v2350_v0 }
  0xdf   : > { %v399_v56 = vsub.s32 1, %v2660_v53 }
  0xe1   : > { %552 = vmatmul.mubr.f32.gmra.mrb[28].mxu0 %v357_v54  ;;  %v395_v54 = vsub.s32 0, %v2660_v53 }
  0xe2   : > { %557 = vmatprep.mubr.f32.mxu0 %v2350_v0  ;;  %v899_v0 = vld [vmem:[#allocation7 + $0x178] sm:$0xff] }
  0xe3   : > { %v1872_v6 = vpack.c.bf16 %v899_v0, %v897_v5 }
  0xe5   : > { %558 = vmatmul.mubr.f32.gmra.mrb[30].mxu0 %v358_v55  ;;  %1873 = vmatprep.subr.bf16.mxu1 %v1872_v6  ;;  %v391_v55 = vld [vmem:[%s3295_s2] sm:$0x3] }
  0xe6   : > { %1875 = vmatpush1.bf16.msra.mxu1 %v1874_v9  ;;  %v2669_v57 = vrot.slane %v391_v55, %v395_v54  ;;  %v2673_v58 = vrot.slane %v391_v55, %v399_v56 }
  0xe7   : > { %1877 = vmatprep.subr.bf16.mxu1 %v1876_v12 }
  0xea   : > { %1879 = vmatpush1.bf16.msra.mxu1 %v1878_v15 }
  0xeb   : > { %1881 = vmatprep.subr.bf16.mxu1 %v1880_v18 }
  0xee   : > { %1883 = vmatpush1.bf16.msra.mxu1 %v1882_v21 }
  0xef   : > { %1885 = vmatprep.subr.bf16.mxu1 %v1884_v24 }
  0xf2   : > { %1887 = vmatpush1.bf16.msra.mxu1 %v1886_v27 }
  0xf3   : > { %1889 = vmatprep.subr.bf16.mxu1 %v1888_v30 }
  0xf6   : > { %1891 = vmatpush1.bf16.msra.mxu1 %v1890_v33 }
  0xf7   : > { %1924 = vmatprep.subr.bf16.mxu1 %v1892_v37 }
 0x17c   : > { %v469_v59 = vpop.f32.mrb[0].mxu0 }
 0x17d   : > { %v470_v60 = vadd.f32 %v469_v59, %v2669_v57  ;;  %v471_v61 = vpop.f32.mrb[1].mxu0 }
 0x17e   : > { %v472_v62 = vadd.f32 %v471_v61, %v2673_v58 }
 0x17f   : > { %v596_v63 = vmul.f32 0.044715, %v470_v60  ;;  %v564_v55 = vmul.f32 0.5, %v470_v60 }
 0x180   : > { %v475_v1 = vpop.f32.mrb[2].mxu0  ;;  %v597_v2 = vmul.f32 0.044715, %v472_v62 }
 0x181   : > { %v628_v3 = vmul.f32 %v596_v63, %v470_v60  ;;  %v2678_v4 = vadd.f32 %v475_v1, %v2669_v57  ;;  %v477_v5 = vpop.f32.mrb[3].mxu0 }
 0x182   : > { %v2681_v0 = vadd.f32 %v477_v5, %v2673_v58  ;;  %v629_v6 = vmul.f32 %v597_v2, %v472_v62  ;;  %v565_v2 = vmul.f32 0.5, %v472_v62 }
 0x183   : > { %v598_v7 = vmul.f32 0.044715, %v2678_v4  ;;  %v660_v8 = vmul.f32 %v628_v3, %v470_v60 }
 0x184   : > { %v599_v9 = vmul.f32 0.044715, %v2681_v0  ;;  %v481_v10 = vpop.f32.mrb[4].mxu0  ;;  %v661_v11 = vmul.f32 %v629_v6, %v472_v62 }
 0x185   : > { %v630_v12 = vmul.f32 %v598_v7, %v2678_v4  ;;  %v2687_v13 = vadd.f32 %v481_v10, %v2669_v57  ;;  %v483_v14 = vpop.f32.mrb[5].mxu0  ;;  %v692_v15 = vadd.f32 %v660_v8, %v470_v60 }
 0x186   : > { %v631_v16 = vmul.f32 %v599_v9, %v2681_v0  ;;  %v2691_v17 = vadd.f32 %v483_v14, %v2673_v58  ;;  %v693_v18 = vadd.f32 %v661_v11, %v472_v62  ;;  %v566_v14 = vmul.f32 0.5, %v2678_v4 }
 0x187   : > { %v600_v19 = vmul.f32 0.044715, %v2687_v13  ;;  %v724_v20 = vmul.f32 0.7978846, %v692_v15  ;;  %v662_v21 = vmul.f32 %v630_v12, %v2678_v4 }
 0x188   : > { %v601_v22 = vmul.f32 0.044715, %v2691_v17  ;;  %v487_v23 = vpop.f32.mrb[6].mxu0  ;;  %v725_v24 = vmul.f32 0.7978846, %v693_v18  ;;  %v663_v25 = vmul.f32 %v631_v16, %v2681_v0 }
 0x189   : > { %v632_v26 = vmul.f32 %v600_v19, %v2687_v13  ;;  %v2699_v27 = vadd.f32 %v487_v23, %v2669_v57  ;;  %v489_v28 = vpop.f32.mrb[7].mxu0  ;;  %2024 = vtanh.f32 %v724_v20  ;;  %v694_v29 = vadd.f32 %v662_v21, %v2678_v4 }
 0x18a   : > { %v633_v30 = vmul.f32 %v601_v22, %v2691_v17  ;;  %v2704_v31 = vadd.f32 %v489_v28, %v2673_v58  ;;  %2026 = vtanh.f32 %v725_v24  ;;  %v695_v32 = vadd.f32 %v663_v25, %v2681_v0 }
 0x18b   : > { %v602_v33 = vmul.f32 0.044715, %v2699_v27  ;;  %v726_v34 = vmul.f32 0.7978846, %v694_v29  ;;  %v664_v35 = vmul.f32 %v632_v26, %v2687_v13  ;;  %v567_v28 = vmul.f32 0.5, %v2681_v0 }
 0x18c   : > { %v603_v36 = vmul.f32 0.044715, %v2704_v31  ;;  %v493_v37 = vpop.f32.mrb[8].mxu0  ;;  %v727_v38 = vmul.f32 0.7978846, %v695_v32  ;;  %v665_v39 = vmul.f32 %v633_v30, %v2691_v17  ;;  %v568_v30 = vmul.f32 0.5, %v2687_v13 }
 0x18d   : > { %v634_v40 = vmul.f32 %v602_v33, %v2699_v27  ;;  %v2713_v43 = vadd.f32 %v493_v37, %v2669_v57  ;;  %v495_v44 = vpop.f32.mrb[9].mxu0  ;;  %2028 = vtanh.f32 %v726_v34  ;;  %v696_v45 = vadd.f32 %v664_v35, %v2687_v13 }
 0x18e   : > { %v635_v46 = vmul.f32 %v603_v36, %v2704_v31  ;;  %v2718_v49 = vadd.f32 %v495_v44, %v2673_v58  ;;  %2030 = vtanh.f32 %v727_v38  ;;  %v697_v50 = vadd.f32 %v665_v39, %v2691_v17 }
 0x18f   : > { %v604_v52 = vmul.f32 0.044715, %v2713_v43  ;;  %v728_v59 = vmul.f32 0.7978846, %v696_v45  ;;  %v666_v61 = vmul.f32 %v634_v40, %v2699_v27 }
 0x190   : > { %v605_v63 = vmul.f32 0.044715, %v2718_v49  ;;  %v499_v1 = vpop.f32.mrb[10].mxu0  ;;  %v729_v3 = vmul.f32 0.7978846, %v697_v50  ;;  %v667_v5 = vmul.f32 %v635_v46, %v2704_v31 }
 0x191   : > { %v636_v6 = vmul.f32 %v604_v52, %v2713_v43  ;;  %v2727_v7 = vadd.f32 %v499_v1, %v2669_v57  ;;  %v501_v8 = vpop.f32.mrb[11].mxu0  ;;  %2032 = vtanh.f32 %v728_v59  ;;  %v698_v9 = vadd.f32 %v666_v61, %v2699_v27 }
 0x192   : > { %v637_v60 = vmul.f32 %v605_v63, %v2718_v49  ;;  %v2732_v10 = vadd.f32 %v501_v8, %v2673_v58  ;;  %2034 = vtanh.f32 %v729_v3  ;;  %v699_v62 = vadd.f32 %v667_v5, %v2704_v31 }
 0x193   : > { %v2025_v11 = vpop.eup %2024  ;;  %v606_v12 = vmul.f32 0.044715, %v2727_v7  ;;  %v730_v15 = vmul.f32 0.7978846, %v698_v9  ;;  %v668_v16 = vmul.f32 %v636_v6, %v2713_v43 }
 0x194   : > { %v2027_v18 = vpop.eup %2026  ;;  %v607_v19 = vmul.f32 0.044715, %v2732_v10  ;;  %v505_v20 = vpop.f32.mrb[12].mxu0  ;;  %v788_v21 = vadd.f32 1.0, %v2025_v11  ;;  %v731_v22 = vmul.f32 0.7978846, %v699_v62  ;;  %v669_v23 = vmul.f32 %v637_v60, %v2718_v49 }
 0x195   : > { %v2741_v24 = vadd.f32 %v505_v20, %v2669_v57  ;;  %v507_v25 = vpop.f32.mrb[13].mxu0  ;;  %v789_v26 = vadd.f32 1.0, %v2027_v18  ;;  %2036 = vtanh.f32 %v730_v15  ;;  %v638_v33 = vmul.f32 %v606_v12, %v2727_v7 }
 0x196   : > { %v639_v4 = vmul.f32 %v607_v19, %v2732_v10  ;;  %v2746_v29 = vadd.f32 %v507_v25, %v2673_v58  ;;  %2038 = vtanh.f32 %v731_v22  ;;  %v701_v35 = vadd.f32 %v669_v23, %v2718_v49 }
 0x197   : > { %v2029_v32 = vpop.eup %2028  ;;  %v821_v34 = vmul.f32 %v789_v26, %v565_v2  ;;  %v700_v36 = vadd.f32 %v668_v16, %v2713_v43  ;;  %v820_v39 = vmul.f32 %v788_v21, %v564_v55  ;;  %v608_v45 = vmul.f32 0.044715, %v2741_v24 }
 0x198   : > { %v2031_v37 = vpop.eup %2030  ;;  %v609_v0 = vmul.f32 0.044715, %v2746_v29  ;;  %v511_v38 = vpop.f32.mrb[14].mxu0  ;;  %v790_v40 = vadd.f32 1.0, %v2029_v32  ;;  %v671_v44 = vmul.f32 %v639_v4, %v2732_v10  ;;  %v733_v50 = vmul.f32 0.7978846, %v701_v35 }
 0x199   : > { %v513_v13 = vpop.f32.mrb[15].mxu0  ;;  %992 = vmatprep.mubr.f32.mxu1 %v821_v34  ;;  %v791_v46 = vadd.f32 1.0, %v2031_v37  ;;  %v2757_v59 = vadd.f32 %v511_v38, %v2669_v57  ;;  %v732_v63 = vmul.f32 0.7978846, %v700_v36  ;;  %v670_v60 = vmul.f32 %v638_v33, %v2727_v7 }
 0x19a   : > { %v641_v52 = vmul.f32 %v609_v0, %v2746_v29  ;;  %v2760_v61 = vadd.f32 %v513_v13, %v2673_v58  ;;  %993 = vmatmul.mubr.f32.vlgmr.msra.gmra.mrb[0].mxu1 %v820_v39  ;;  %v822_v2 = vmul.f32 %v790_v40, %v566_v14  ;;  %2040 = vtanh.f32 %v733_v50 }
 0x19b   : > { %v2033_v55 = vpop.eup %2032  ;;  %v823_v1 = vmul.f32 %v791_v46, %v567_v28  ;;  %v703_v3 = vadd.f32 %v671_v44, %v2732_v10  ;;  %1932 = vmatpush3.bf16.msra.mxu1 %v2645_v41  ;;  %2042 = vtanh.f32 %v732_v63  ;;  %v569_v12 = vmul.f32 0.5, %v2691_v17 }
 0x19c   : > { %v2035_v5 = vpop.eup %2034  ;;  %v611_v6 = vmul.f32 0.044715, %v2760_v61  ;;  %v517_v8 = vpop.f32.mrb[16].mxu0  ;;  %v792_v9 = vadd.f32 1.0, %v2033_v55  ;;  %1925 = vmatprep.subr.bf16.mxu1 %v2647_v42  ;;  %v640_v41 = vmul.f32 %v608_v45, %v2741_v24  ;;  %v570_v18 = vmul.f32 0.5, %v2699_v27 }
 0x19d   : > { %v2768_v62 = vadd.f32 %v517_v8, %v2669_v57  ;;  %v519_v11 = vpop.f32.mrb[17].mxu0  ;;  %998 = vmatprep.mubr.f32.mxu1 %v823_v1  ;;  %v793_v14 = vadd.f32 1.0, %v2035_v5  ;;  %v735_v15 = vmul.f32 0.7978846, %v703_v3  ;;  %v702_v19 = vadd.f32 %v670_v60, %v2727_v7 }
 0x19e   : > { %v2773_v16 = vadd.f32 %v519_v11, %v2673_v58  ;;  %999 = vmatmul.mubr.f32.gmra.mrb[2].mxu1 %v822_v2  ;;  %v610_v20 = vmul.f32 0.044715, %v2757_v59  ;;  %v643_v21 = vmul.f32 %v611_v6, %v2760_v61  ;;  %v824_v25 = vmul.f32 %v792_v9, %v568_v30 }
 0x19f   : > { %v2037_v42 = vpop.eup %2036  ;;  %v825_v22 = vmul.f32 %v793_v14, %v569_v12  ;;  %2044 = vtanh.f32 %v735_v15  ;;  %1933 = vmatpush3.bf16.msra.mxu1 %v2650_v47  ;;  %v734_v28 = vmul.f32 0.7978846, %v702_v19  ;;  %v673_v4 = vmul.f32 %v641_v52, %v2746_v29 }
 0x1a0   : > { %v2039_v17 = vpop.eup %2038  ;;  %v523_v23 = vpop.f32.mrb[18].mxu0  ;;  %v794_v26 = vadd.f32 1.0, %v2037_v42  ;;  %1926 = vmatprep.subr.bf16.mxu1 %v2653_v48  ;;  %v612_v27 = vmul.f32 0.044715, %v2768_v62  ;;  %v571_v33 = vmul.f32 0.5, %v2704_v31  ;;  %v572_v35 = vmul.f32 0.5, %v2713_v43 }
 0x1a1   : > { %v525_v32 = vpop.f32.mrb[19].mxu0  ;;  %1004 = vmatprep.mubr.f32.mxu1 %v825_v22  ;;  %v795_v34 = vadd.f32 1.0, %v2039_v17  ;;  %v613_v47 = vmul.f32 0.044715, %v2773_v16  ;;  %v573_v30 = vmul.f32 0.5, %v2718_v49  ;;  %v2788_v36 = vmul.f32 0.5, %v2727_v7 }
 0x1a2   : > { %1005 = vmatmul.mubr.f32.gmra.mrb[4].mxu1 %v824_v25  ;;  %2046 = vtanh.f32 %v734_v28  ;;  %v575_v48 = vmul.f32 0.5, %v2732_v10  ;;  %v705_v0 = vadd.f32 %v673_v4, %v2746_v29  ;;  %v672_v38 = vmul.f32 %v640_v41, %v2741_v24 }
 0x1a3   : > { %v827_v37 = vmul.f32 %v795_v34, %v571_v33  ;;  %1934 = vmatpush3.bf16.msra.mxu1 %v2656_v51  ;;  %v642_v31 = vmul.f32 %v610_v20, %v2757_v59  ;;  %v2796_v43 = vadd.f32 %v525_v32, %v2673_v58  ;;  %v826_v49 = vmul.f32 %v794_v26, %v570_v18 }
 0x1a4   : > { %v529_v39 = vpop.f32.mrb[20].mxu0  ;;  %v675_v7 = vmul.f32 %v643_v21, %v2760_v61  ;;  %v2041_v40 = vpop.eup %2040  ;;  %v644_v44 = vmul.f32 %v612_v27, %v2768_v62  ;;  %v2801_v10 = vadd.f32 %v523_v23, %v2669_v57  ;;  %v737_v13 = vmul.f32 0.7978846, %v705_v0 }
 0x1a5   : > { %v531_v45 = vpop.f32.mrb[21].mxu0  ;;  %1010 = vmatprep.mubr.f32.mxu1 %v827_v37  ;;  %v704_v51 = vadd.f32 %v672_v38, %v2741_v24  ;;  %v2043_v46 = vpop.eup %2042  ;;  %v645_v50 = vmul.f32 %v613_v47, %v2773_v16  ;;  %v2806_v52 = vadd.f32 %v529_v39, %v2669_v57  ;;  %v797_v63 = vadd.f32 1.0, %v2041_v40 }
 0x1a6   : > { %1011 = vmatmul.mubr.f32.gmra.mrb[6].mxu1 %v826_v49  ;;  %v707_v55 = vadd.f32 %v675_v7, %v2760_v61  ;;  %v2810_v1 = vadd.f32 %v531_v45, %v2673_v58  ;;  %v796_v2 = vadd.f32 1.0, %v2043_v46  ;;  %2048 = vtanh.f32 %v737_v13 }
 0x1a7   : > { %v736_v3 = vmul.f32 0.7978846, %v704_v51  ;;  %v615_v5 = vmul.f32 0.044715, %v2796_v43  ;;  %v829_v8 = vmul.f32 %v797_v63, %v573_v30  ;;  %v674_v60 = vmul.f32 %v642_v31, %v2757_v59 }
 0x1a8   : > { %v535_v6 = vpop.f32.mrb[22].mxu0  ;;  %v739_v9 = vmul.f32 0.7978846, %v707_v55  ;;  %v614_v12 = vmul.f32 0.044715, %v2801_v10  ;;  %v828_v15 = vmul.f32 %v796_v2, %v572_v35  ;;  %v577_v41 = vmul.f32 0.5, %v2746_v29 }
 0x1a9   : > { %v2045_v11 = vpop.eup %2044  ;;  %v537_v14 = vpop.f32.mrb[23].mxu0  ;;  %2050 = vtanh.f32 %v736_v3  ;;  %v616_v18 = vmul.f32 0.044715, %v2806_v52  ;;  %1016 = vmatprep.mubr.f32.mxu1 %v829_v8  ;;  %v576_v42 = vmul.f32 0.5, %v2741_v24  ;;  %v617_v20 = vmul.f32 0.044715, %v2810_v1 }
 0x1aa   : > { %v799_v19 = vadd.f32 1.0, %v2045_v11  ;;  %2052 = vtanh.f32 %v739_v9  ;;  %v2820_v21 = vadd.f32 %v535_v6, %v2669_v57  ;;  %1017 = vmatmul.mubr.f32.gmra.mrb[8].mxu1 %v828_v15  ;;  %v706_v22 = vadd.f32 %v674_v60, %v2757_v59 }
 0x1ab   : > { %v677_v17 = vmul.f32 %v645_v50, %v2773_v16  ;;  %v647_v29 = vmul.f32 %v615_v5, %v2796_v43  ;;  %v2826_v25 = vadd.f32 %v537_v14, %v2673_v58  ;;  %v676_v24 = vmul.f32 %v644_v44, %v2768_v62 }
 0x1ac   : > { %v2047_v23 = vpop.eup %2046  ;;  %v541_v26 = vpop.f32.mrb[24].mxu0  ;;  %v831_v28 = vmul.f32 %v799_v19, %v575_v48  ;;  %v646_v4 = vmul.f32 %v614_v12, %v2801_v10  ;;  %v579_v33 = vmul.f32 0.5, %v2760_v61  ;;  %v738_v34 = vmul.f32 0.7978846, %v706_v22 }
 0x1ad   : > { %v543_v27 = vpop.f32.mrb[25].mxu0  ;;  %v798_v32 = vadd.f32 1.0, %v2047_v23  ;;  %v648_v35 = vmul.f32 %v616_v18, %v2806_v52  ;;  %v2833_v47 = vmul.f32 0.5, %v2757_v59  ;;  %v709_v30 = vadd.f32 %v677_v17, %v2773_v16 }
 0x1ae   : > { %1022 = vmatprep.mubr.f32.mxu1 %v831_v28  ;;  %v708_v37 = vadd.f32 %v676_v24, %v2768_v62  ;;  %v649_v48 = vmul.f32 %v617_v20, %v2810_v1  ;;  %v618_v0 = vmul.f32 0.044715, %v2820_v21  ;;  %2054 = vtanh.f32 %v738_v34 }
 0x1af   : > { %v830_v38 = vmul.f32 %v798_v32, %v2788_v36  ;;  %v619_v61 = vmul.f32 0.044715, %v2826_v25  ;;  %v2842_v39 = vmul.f32 0.5, %v2773_v16  ;;  %v741_v49 = vmul.f32 0.7978846, %v709_v30 }
 0x1b0   : > { %v547_v31 = vpop.f32.mrb[26].mxu0  ;;  %v679_v59 = vmul.f32 %v647_v29, %v2796_v43  ;;  %v2049_v7 = vpop.eup %2048  ;;  %v2846_v40 = vadd.f32 %v541_v26, %v2669_v57  ;;  %v740_v36 = vmul.f32 0.7978846, %v708_v37  ;;  %v678_v13 = vmul.f32 %v646_v4, %v2801_v10 }
 0x1b1   : > { %1023 = vmatmul.mubr.f32.gmra.mrb[10].mxu1 %v830_v38  ;;  %v2849_v44 = vadd.f32 %v547_v31, %v2669_v57  ;;  %v549_v45 = vpop.f32.mrb[27].mxu0  ;;  %v2853_v51 = vadd.f32 %v543_v27, %v2673_v58  ;;  %v801_v16 = vadd.f32 1.0, %v2049_v7  ;;  %2056 = vtanh.f32 %v741_v49 }
 0x1b2   : > { %v2856_v46 = vmul.f32 0.5, %v2768_v62  ;;  %v650_v63 = vmul.f32 %v618_v0, %v2820_v21  ;;  %2058 = vtanh.f32 %v740_v36  ;;  %v711_v55 = vadd.f32 %v679_v59, %v2796_v43 }
 0x1b3   : > { %v2051_v50 = vpop.eup %2050  ;;  %v710_v2 = vadd.f32 %v678_v13, %v2801_v10  ;;  %v651_v5 = vmul.f32 %v619_v61, %v2826_v25  ;;  %v2863_v6 = vadd.f32 %v549_v45, %v2673_v58  ;;  %v833_v8 = vmul.f32 %v801_v16, %v577_v41 }
 0x1b4   : > { %v2053_v3 = vpop.eup %2052  ;;  %v800_v9 = vadd.f32 1.0, %v2051_v50  ;;  %v553_v60 = vpop.f32.mrb[28].mxu0  ;;  %v620_v62 = vmul.f32 0.044715, %v2846_v40  ;;  %v743_v15 = vmul.f32 0.7978846, %v711_v55  ;;  %v681_v23 = vmul.f32 %v649_v48, %v2810_v1 }
 0x1b5   : > { %v2867_v11 = vadd.f32 %v553_v60, %v2669_v57  ;;  %v555_v12 = vpop.f32.mrb[29].mxu0  ;;  %v803_v14 = vadd.f32 1.0, %v2053_v3  ;;  %v621_v18 = vmul.f32 0.044715, %v2853_v51  ;;  %1028 = vmatprep.mubr.f32.mxu1 %v833_v8  ;;  %v742_v22 = vmul.f32 0.7978846, %v710_v2 }
 0x1b6   : > { %v832_v19 = vmul.f32 %v800_v9, %v576_v42  ;;  %v2871_v20 = vadd.f32 %v555_v12, %v2673_v58  ;;  %v622_v41 = vmul.f32 0.044715, %v2849_v44  ;;  %2060 = vtanh.f32 %v743_v15 }
 0x1b7   : > { %v835_v17 = vmul.f32 %v803_v14, %v579_v33  ;;  %v623_v29 = vmul.f32 0.044715, %v2863_v6  ;;  %v583_v28 = vmul.f32 0.5, %v2796_v43  ;;  %2062 = vtanh.f32 %v742_v22 }
 0x1b8   : > { %1029 = vmatmul.mubr.f32.gmra.mrb[12].mxu1 %v832_v19  ;;  %v559_v26 = vpop.f32.mrb[30].mxu0  ;;  %v680_v24 = vmul.f32 %v648_v35, %v2806_v52  ;;  %v2055_v42 = vpop.eup %2054  ;;  %v652_v4 = vmul.f32 %v620_v62, %v2846_v40  ;;  %v582_v33 = vmul.f32 0.5, %v2801_v10  ;;  %v713_v34 = vadd.f32 %v681_v23, %v2810_v1 }
 0x1b9   : > { %1034 = vmatprep.mubr.f32.mxu1 %v835_v17  ;;  %v2880_v27 = vadd.f32 %v559_v26, %v2669_v57  ;;  %v561_v32 = vpop.f32.mrb[31].mxu0  ;;  %v653_v30 = vmul.f32 %v621_v18, %v2853_v51  ;;  %v802_v37 = vadd.f32 1.0, %v2055_v42  ;;  %v654_v48 = vmul.f32 %v622_v41, %v2849_v44 }
 0x1ba   : > { %v2886_v43 = vadd.f32 %v561_v32, %v2673_v58  ;;  %v712_v35 = vadd.f32 %v680_v24, %v2806_v52  ;;  %v625_v0 = vmul.f32 0.044715, %v2871_v20  ;;  %v745_v38 = vmul.f32 0.7978846, %v713_v34 }
 0x1bb   : > { %v683_v57 = vmul.f32 %v651_v5, %v2826_v25  ;;  %v2057_v61 = vpop.eup %2056  ;;  %v655_v10 = vmul.f32 %v623_v29, %v2863_v6  ;;  %v834_v31 = vmul.f32 %v802_v37, %v2833_v47  ;;  %v682_v59 = vmul.f32 %v650_v63, %v2820_v21 }
 0x1bc   : > { %v744_v49 = vmul.f32 0.7978846, %v712_v35  ;;  %v2059_v7 = vpop.eup %2058  ;;  %v624_v58 = vmul.f32 0.044715, %v2867_v11  ;;  %v805_v45 = vadd.f32 1.0, %v2057_v61  ;;  %2064 = vtanh.f32 %v745_v38 }
 0x1bd   : > { %v715_v36 = vadd.f32 %v683_v57, %v2826_v25  ;;  %1035 = vmatmul.mubr.f32.gmra.mrb[14].mxu1 %v834_v31  ;;  %v627_v13 = vmul.f32 0.044715, %v2886_v43  ;;  %v804_v16 = vadd.f32 1.0, %v2059_v7  ;;  %v714_v50 = vadd.f32 %v682_v59, %v2820_v21 }
 0x1be   : > { %2066 = vtanh.f32 %v744_v49  ;;  %v657_v55 = vmul.f32 %v625_v0, %v2871_v20  ;;  %v837_v47 = vmul.f32 %v805_v45, %v2842_v39  ;;  %v685_v63 = vmul.f32 %v653_v30, %v2853_v51 }
 0x1bf   : > { %v747_v2 = vmul.f32 0.7978846, %v715_v36  ;;  %v626_v3 = vmul.f32 0.044715, %v2880_v27  ;;  %v836_v5 = vmul.f32 %v804_v16, %v2856_v46  ;;  %v746_v8 = vmul.f32 0.7978846, %v714_v50 }
 0x1c0   : > { %v684_v9 = vmul.f32 %v652_v4, %v2846_v40  ;;  %v2061_v60 = vpop.eup %2060  ;;  %v656_v62 = vmul.f32 %v624_v58, %v2867_v11  ;;  %1040 = vmatprep.mubr.f32.mxu1 %v837_v47  ;;  %v717_v12 = vadd.f32 %v685_v63, %v2853_v51  ;;  %v687_v14 = vmul.f32 %v655_v10, %v2863_v6 }
 0x1c1   : > { %2068 = vtanh.f32 %v747_v2  ;;  %v2063_v39 = vpop.eup %2062  ;;  %v659_v15 = vmul.f32 %v627_v13, %v2886_v43  ;;  %1041 = vmatmul.mubr.f32.gmra.mrb[16].mxu1 %v836_v5  ;;  %v807_v18 = vadd.f32 1.0, %v2061_v60  ;;  %v686_v17 = vmul.f32 %v654_v48, %v2849_v44 }
 0x1c2   : > { %2070 = vtanh.f32 %v746_v8  ;;  %v716_v46 = vadd.f32 %v684_v9, %v2846_v40  ;;  %v806_v19 = vadd.f32 1.0, %v2063_v39  ;;  %v749_v22 = vmul.f32 0.7978846, %v717_v12 }
 0x1c3   : > { %v719_v41 = vadd.f32 %v687_v14, %v2863_v6  ;;  %v658_v23 = vmul.f32 %v626_v3, %v2880_v27  ;;  %v839_v29 = vmul.f32 %v807_v18, %v583_v28  ;;  %v689_v24 = vmul.f32 %v657_v55, %v2871_v20 }
 0x1c4   : > { %v748_v26 = vmul.f32 0.7978846, %v716_v46  ;;  %v838_v42 = vmul.f32 %v806_v19, %v582_v33  ;;  %2072 = vtanh.f32 %v749_v22  ;;  %v718_v32 = vadd.f32 %v686_v17, %v2849_v44 }
 0x1c5   : > { %v751_v4 = vmul.f32 0.7978846, %v719_v41  ;;  %1046 = vmatprep.mubr.f32.mxu1 %v839_v29  ;;  %v721_v34 = vadd.f32 %v689_v24, %v2871_v20  ;;  %v688_v30 = vmul.f32 %v656_v62, %v2867_v11  ;;  %v585_v35 = vmul.f32 0.5, %v2810_v1 }
 0x1c6   : > { %2074 = vtanh.f32 %v748_v26  ;;  %v2065_v37 = vpop.eup %2064  ;;  %1047 = vmatmul.mubr.f32.gmra.mrb[18].mxu1 %v838_v42  ;;  %v750_v28 = vmul.f32 0.7978846, %v718_v32  ;;  %v691_v48 = vmul.f32 %v659_v15, %v2886_v43  ;;  %v584_v38 = vmul.f32 0.5, %v2806_v52 }
 0x1c7   : > { %2076 = vtanh.f32 %v751_v4  ;;  %v809_v33 = vadd.f32 1.0, %v2065_v37  ;;  %v753_v57 = vmul.f32 0.7978846, %v721_v34  ;;  %v720_v61 = vadd.f32 %v688_v30, %v2867_v11  ;;  %v1399_v37 = vld [vmem:[#allocation8 + $0xb0] sm:$0xff] }
 0x1c8   : > { %v2067_v0 = vpop.eup %2066  ;;  %2078 = vtanh.f32 %v750_v28  ;;  %v723_v31 = vadd.f32 %v691_v48, %v2886_v43  ;;  %v690_v49 = vmul.f32 %v658_v23, %v2880_v27  ;;  %v587_v52 = vmul.f32 0.5, %v2826_v25  ;;  %v1383_v28 = vld [vmem:[#allocation8 + $0x30] sm:$0xff] }
 0x1c9   : > { %v808_v10 = vadd.f32 1.0, %v2067_v0  ;;  %v841_v59 = vmul.f32 %v809_v33, %v585_v35  ;;  %2080 = vtanh.f32 %v753_v57  ;;  %v752_v1 = vmul.f32 0.7978846, %v720_v61  ;;  %v1400_v35 = vld [vmem:[#allocation8 + $0xb8] sm:$0xff]  ;;  %v1402_v33 = vld [vmem:[#allocation8 + $0xc8] sm:$0xff] }
 0x1ca   : > { %v755_v45 = vmul.f32 0.7978846, %v723_v31  ;;  %v722_v36 = vadd.f32 %v690_v49, %v2880_v27  ;;  %v586_v50 = vmul.f32 0.5, %v2820_v21  ;;  %v589_v8 = vmul.f32 0.5, %v2853_v51  ;;  %v1386_v61 = vld [vmem:[#allocation8 + $0x48] sm:$0xff]  ;;  %v1404_v31 = vld [vmem:[#allocation8 + $0xd8] sm:$0xff] }
 0x1cb   : > { %v2069_v7 = vpop.eup %2068  ;;  %v840_v58 = vmul.f32 %v808_v10, %v584_v38  ;;  %1052 = vmatprep.mubr.f32.mxu1 %v841_v59  ;;  %2082 = vtanh.f32 %v752_v1  ;;  %v588_v25 = vmul.f32 0.5, %v2846_v40  ;;  %v591_v21 = vmul.f32 0.5, %v2863_v6  ;;  %v1385_v38 = vld [vmem:[#allocation8 + $0x40] sm:$0xff]  ;;  %v1387_v49 = vld [vmem:[#allocation8 + $0x50] sm:$0xff]  ;;  %v1388_v1 = vld [vmem:[#allocation8 + $0x58] sm:$0xff] }
 0x1cc   : > { %v2071_v13 = vpop.eup %2070  ;;  %v811_v16 = vadd.f32 1.0, %v2069_v7  ;;  %2084 = vtanh.f32 %v755_v45  ;;  %v754_v47 = vmul.f32 0.7978846, %v722_v36  ;;  %v590_v22 = vmul.f32 0.5, %v2849_v44  ;;  %v1406_v45 = vld [vmem:[#allocation8 + $0xe8] sm:$0xff]  ;;  %v1389_v36 = vld [vmem:[#allocation8 + $0x60] sm:$0xff] }
 0x1cd   : > { %1053 = vmatmul.mubr.f32.gmra.mrb[20].mxu1 %v840_v58  ;;  %v810_v55 = vadd.f32 1.0, %v2071_v13  ;;  %v593_v51 = vmul.f32 0.5, %v2871_v20  ;;  %v595_v6 = vmul.f32 0.5, %v2886_v43  ;;  %v592_v4 = vmul.f32 0.5, %v2867_v11  ;;  %v1384_v43 = vld [vmem:[#allocation8 + $0x38] sm:$0xff]  ;;  %v1401_v11 = vld [vmem:[#allocation8 + $0xc0] sm:$0xff] }
 0x1ce   : > { %v843_v2 = vmul.f32 %v811_v16, %v587_v52  ;;  %v2073_v63 = vpop.eup %2072  ;;  %2086 = vtanh.f32 %v754_v47  ;;  %v594_v20 = vmul.f32 0.5, %v2880_v27  ;;  %v1904_v48 = vpack.c.bf16 %v1400_v35, %v1399_v37  ;;  %v1403_v27 = vld [vmem:[#allocation8 + $0xd0] sm:$0xff]  ;;  %v1405_v58 = vld [vmem:[#allocation8 + $0xe0] sm:$0xff]  ;;  %v1390_v52 = vld [vmem:[#allocation8 + $0x68] sm:$0xff] }
 0x1cf   : > { %v842_v3 = vmul.f32 %v810_v55, %v586_v50  ;;  %v813_v9 = vadd.f32 1.0, %v2073_v63  ;;  %v1906_v0 = vpack.c.bf16 %v1384_v43, %v1383_v28  ;;  %v1908_v57 = vpack.c.bf16 %v1402_v33, %v1401_v11  ;;  %v1407_v50 = vld [vmem:[#allocation8 + $0xf0] sm:$0xff]  ;;  %v1408_v55 = vld [vmem:[#allocation8 + $0xf8] sm:$0xff] }
 0x1d0   : > { %v2075_v5 = vpop.eup %2074  ;;  %1058 = vmatprep.mubr.f32.mxu1 %v843_v2  ;;  %1905 = vmatprep.subr.bf16.mxu0 %v1904_v48  ;;  %v1910_v10 = vpack.c.bf16 %v1386_v61, %v1385_v38  ;;  %v1912_v59 = vpack.c.bf16 %v1404_v31, %v1403_v27  ;;  %v1914_v7 = vpack.c.bf16 %v1388_v1, %v1387_v49  ;;  %v1391_v47 = vld [vmem:[#allocation8 + $0x70] sm:$0xff]  ;;  %v1392_v63 = vld [vmem:[#allocation8 + $0x78] sm:$0xff] }
 0x1d1   : > { %v2077_v60 = vpop.eup %2076  ;;  %1059 = vmatmul.mubr.f32.gmra.mrb[22].mxu1 %v842_v3  ;;  %v812_v62 = vadd.f32 1.0, %v2075_v5  ;;  %v845_v12 = vmul.f32 %v813_v9, %v589_v8  ;;  %1927 = vmatprep.subr.bf16.mxu1 %v1904_v48  ;;  %v1916_v13 = vpack.c.bf16 %v1406_v45, %v1405_v58  ;;  %v1918_v16 = vpack.c.bf16 %v1390_v52, %v1389_v36  ;;  %v916_v5 = vld [vmem:[%s3297_s4] sm:$0x3] }
 0x1d2   : > { %v815_v14 = vadd.f32 1.0, %v2077_v60  ;;  %v2079_v39 = vpop.eup %2078  ;;  %1907 = vmatpush3.bf16.msra.mxu0 %v1906_v0  ;;  %1935 = vmatpush3.bf16.msra.mxu1 %v1906_v0  ;;  %v1920_v2 = vpack.c.bf16 %v1408_v55, %v1407_v50  ;;  %v1922_v3 = vpack.c.bf16 %v1392_v63, %v1391_v47  ;;  %v2939_v8 = vrot.slane %v916_v5, %v395_v54 }
 0x1d3   : > { %v844_v15 = vmul.f32 %v812_v62, %v588_v25  ;;  %v2081_v18 = vpop.eup %2080  ;;  %1064 = vmatprep.mubr.f32.mxu1 %v845_v12  ;;  %v814_v19 = vadd.f32 1.0, %v2079_v39  ;;  %1909 = vmatprep.subr.bf16.mxu0 %v1908_v57  ;;  %v2943_v9 = vrot.slane %v916_v5, %v399_v56 }
 0x1d4   : > { %v847_v46 = vmul.f32 %v815_v14, %v591_v21  ;;  %v817_v41 = vadd.f32 1.0, %v2081_v18  ;;  %1928 = vmatprep.subr.bf16.mxu1 %v1908_v57 }
 0x1d5   : > { %1065 = vmatmul.mubr.f32.gmra.mrb[24].mxu1 %v844_v15  ;;  %v2083_v17 = vpop.eup %2082  ;;  %v846_v23 = vmul.f32 %v814_v19, %v590_v22 }
 0x1d6   : > { %1070 = vmatprep.mubr.f32.mxu1 %v847_v46  ;;  %v2085_v40 = vpop.eup %2084  ;;  %v849_v29 = vmul.f32 %v817_v41, %v593_v51  ;;  %v816_v26 = vadd.f32 1.0, %v2083_v17  ;;  %1911 = vmatpush3.bf16.msra.mxu0 %v1910_v10 }
 0x1d7   : > { %v819_v24 = vadd.f32 1.0, %v2085_v40  ;;  %1936 = vmatpush3.bf16.msra.mxu1 %v1910_v10  ;;  %1913 = vmatprep.subr.bf16.mxu0 %v1912_v59 }
 0x1d8   : > { %v2087_v42 = vpop.eup %2086  ;;  %v848_v34 = vmul.f32 %v816_v26, %v592_v4  ;;  %1929 = vmatprep.subr.bf16.mxu1 %v1912_v59 }
 0x1d9   : > { %1071 = vmatmul.mubr.f32.gmra.mrb[26].mxu1 %v846_v23  ;;  %v851_v32 = vmul.f32 %v819_v24, %v595_v6  ;;  %v818_v44 = vadd.f32 1.0, %v2087_v42 }
 0x1da   : > { %1076 = vmatprep.mubr.f32.mxu1 %v849_v29  ;;  %1915 = vmatpush3.bf16.msra.mxu0 %v1914_v7 }
 0x1db   : > { %v850_v30 = vmul.f32 %v818_v44, %v594_v20  ;;  %1937 = vmatpush3.bf16.msra.mxu1 %v1914_v7  ;;  %1917 = vmatprep.subr.bf16.mxu0 %v1916_v13 }
 0x1dc   : > { %1930 = vmatprep.subr.bf16.mxu1 %v1916_v13 }
 0x1dd   : > { %1077 = vmatmul.mubr.f32.gmra.mrb[28].mxu1 %v848_v34 }
 0x1de   : > { %1082 = vmatprep.mubr.f32.mxu1 %v851_v32  ;;  %1919 = vmatpush3.bf16.msra.mxu0 %v1918_v16 }
 0x1df   : > { %1938 = vmatpush3.bf16.msra.mxu1 %v1918_v16  ;;  %1921 = vmatprep.subr.bf16.mxu0 %v1920_v2 }
 0x1e0   : > { %1931 = vmatprep.subr.bf16.mxu1 %v1920_v2 }
 0x1e1   : > { %1083 = vmatmul.mubr.f32.gmra.mrb[30].mxu1 %v850_v30 }
 0x1e2   : > { %1923 = vmatpush3.bf16.msra.mxu0 %v1922_v3 }
 0x1e3   : > { %1939 = vmatpush3.bf16.msra.mxu1 %v1922_v3 }
 0x26d   : > { %v994_v60 = vpop.f32.mrb[0].mxu1 }
 0x26e   : > { %v2946_v25 = vadd.f32 %v994_v60, %v2939_v8  ;;  %v996_v62 = vpop.f32.mrb[1].mxu1 }
 0x26f   : > { %v2949_v12 = vadd.f32 %v996_v62, %v2943_v9 }
 0x270   : > { %v1121_v21 = vmul.f32 0.044715, %v2946_v25 }
 0x271   : > { %v1122_v14 = vmul.f32 0.044715, %v2949_v12  ;;  %v1000_v39 = vpop.f32.mrb[2].mxu1 }
 0x272   : > { %v1153_v54 = vmul.f32 %v1121_v21, %v2946_v25  ;;  %v2955_v15 = vadd.f32 %v1000_v39, %v2939_v8  ;;  %v1002_v53 = vpop.f32.mrb[3].mxu1  ;;  %v1090_v21 = vmul.f32 0.5, %v2949_v12 }
 0x273   : > { %v1154_v56 = vmul.f32 %v1122_v14, %v2949_v12  ;;  %v2959_v18 = vadd.f32 %v1002_v53, %v2943_v9 }
 0x274   : > { %v1185_v46 = vmul.f32 %v1153_v54, %v2946_v25  ;;  %v1123_v19 = vmul.f32 0.044715, %v2955_v15 }
 0x275   : > { %v1124_v22 = vmul.f32 0.044715, %v2959_v18  ;;  %v1006_v51 = vpop.f32.mrb[4].mxu1  ;;  %v1186_v41 = vmul.f32 %v1154_v56, %v2949_v12 }
 0x276   : > { %v1217_v17 = vadd.f32 %v1185_v46, %v2946_v25  ;;  %v1155_v40 = vmul.f32 %v1123_v19, %v2955_v15  ;;  %v2968_v23 = vadd.f32 %v1006_v51, %v2939_v8  ;;  %v1008_v29 = vpop.f32.mrb[5].mxu1 }
 0x277   : > { %v1156_v26 = vmul.f32 %v1124_v22, %v2959_v18  ;;  %v2972_v6 = vadd.f32 %v1008_v29, %v2943_v9  ;;  %v1218_v24 = vadd.f32 %v1186_v41, %v2949_v12 }
 0x278   : > { %v1249_v42 = vmul.f32 0.7978846, %v1217_v17  ;;  %v1125_v4 = vmul.f32 0.044715, %v2968_v23  ;;  %v1187_v32 = vmul.f32 %v1155_v40, %v2955_v15  ;;  %v1089_v17 = vmul.f32 0.5, %v2946_v25 }
 0x279   : > { %v1126_v34 = vmul.f32 0.044715, %v2972_v6  ;;  %v1012_v44 = vpop.f32.mrb[6].mxu1  ;;  %v1250_v20 = vmul.f32 0.7978846, %v1218_v24  ;;  %v1188_v30 = vmul.f32 %v1156_v26, %v2959_v18  ;;  %v1092_v25 = vmul.f32 0.5, %v2959_v18 }
 0x27a   : > { %2088 = vtanh.f32 %v1249_v42  ;;  %v1157_v37 = vmul.f32 %v1125_v4, %v2968_v23  ;;  %v2981_v35 = vadd.f32 %v1012_v44, %v2939_v8  ;;  %v1014_v28 = vpop.f32.mrb[7].mxu1  ;;  %v1219_v48 = vadd.f32 %v1187_v32, %v2955_v15 }
 0x27b   : > { %v1158_v43 = vmul.f32 %v1126_v34, %v2972_v6  ;;  %v2986_v0 = vadd.f32 %v1014_v28, %v2943_v9  ;;  %2090 = vtanh.f32 %v1250_v20  ;;  %v1220_v11 = vadd.f32 %v1188_v30, %v2959_v18 }
 0x27c   : > { %v1127_v33 = vmul.f32 0.044715, %v2981_v35  ;;  %v1251_v38 = vmul.f32 0.7978846, %v1219_v48  ;;  %v1189_v57 = vmul.f32 %v1157_v37, %v2968_v23 }
 0x27d   : > { %v1128_v61 = vmul.f32 0.044715, %v2986_v0  ;;  %v1252_v10 = vmul.f32 0.7978846, %v1220_v11  ;;  %v1190_v27 = vmul.f32 %v1158_v43, %v2972_v6  ;;  %v1018_v49 = vpop.f32.mrb[8].mxu1  ;;  %v1091_v43 = vmul.f32 0.5, %v2955_v15 }
 0x27e   : > { %v1159_v31 = vmul.f32 %v1127_v33, %v2981_v35  ;;  %2092 = vtanh.f32 %v1251_v38  ;;  %v1221_v59 = vadd.f32 %v1189_v57, %v2968_v23  ;;  %v2997_v7 = vadd.f32 %v1018_v49, %v2939_v8  ;;  %v1020_v58 = vpop.f32.mrb[9].mxu1 }
 0x27f   : > { %v1160_v1 = vmul.f32 %v1128_v61, %v2986_v0  ;;  %2094 = vtanh.f32 %v1252_v10  ;;  %v1222_v45 = vadd.f32 %v1190_v27, %v2972_v6  ;;  %v3001_v36 = vadd.f32 %v1020_v58, %v2943_v9 }
 0x280   : > { %v1253_v13 = vmul.f32 0.7978846, %v1221_v59  ;;  %v1191_v52 = vmul.f32 %v1159_v31, %v2981_v35  ;;  %v1129_v16 = vmul.f32 0.044715, %v2997_v7 }
 0x281   : > { %v1254_v50 = vmul.f32 0.7978846, %v1222_v45  ;;  %v1192_v55 = vmul.f32 %v1160_v1, %v2986_v0  ;;  %v1130_v47 = vmul.f32 0.044715, %v3001_v36  ;;  %v1094_v1 = vmul.f32 0.5, %v2972_v6 }
 0x282   : > { %2096 = vtanh.f32 %v1253_v13  ;;  %v1223_v2 = vadd.f32 %v1191_v52, %v2981_v35  ;;  %v1161_v63 = vmul.f32 %v1129_v16, %v2997_v7  ;;  %v1093_v52 = vmul.f32 0.5, %v2968_v23 }
 0x283   : > { %2098 = vtanh.f32 %v1254_v50  ;;  %v1224_v3 = vadd.f32 %v1192_v55, %v2986_v0  ;;  %v1162_v60 = vmul.f32 %v1130_v47, %v3001_v36 }
 0x284   : > { %v2089_v5 = vpop.eup %2088  ;;  %v1024_v62 = vpop.f32.mrb[10].mxu1  ;;  %v1255_v14 = vmul.f32 0.7978846, %v1223_v2  ;;  %v1193_v19 = vmul.f32 %v1161_v63, %v2997_v7  ;;  %v1096_v2 = vmul.f32 0.5, %v2986_v0  ;;  %v1095_v0 = vmul.f32 0.5, %v2981_v35 }
 0x285   : > { %v2091_v39 = vpop.eup %2090  ;;  %v3013_v54 = vadd.f32 %v1024_v62, %v2939_v8  ;;  %v1026_v53 = vpop.f32.mrb[11].mxu1  ;;  %v1313_v56 = vadd.f32 1.0, %v2089_v5  ;;  %v1256_v46 = vmul.f32 0.7978846, %v1224_v3  ;;  %v1194_v41 = vmul.f32 %v1162_v60, %v3001_v36 }
 0x286   : > { %v3017_v22 = vadd.f32 %v1026_v53, %v2943_v9  ;;  %v1314_v51 = vadd.f32 1.0, %v2091_v39  ;;  %2100 = vtanh.f32 %v1255_v14  ;;  %v1225_v40 = vadd.f32 %v1193_v19, %v2997_v7 }
 0x287   : > { %v1131_v12 = vmul.f32 0.044715, %v3013_v54  ;;  %2102 = vtanh.f32 %v1256_v46  ;;  %v1226_v42 = vadd.f32 %v1194_v41, %v3001_v36  ;;  %v1345_v34 = vmul.f32 %v1313_v56, %v1089_v17 }
 0x288   : > { %v2093_v29 = vpop.eup %2092  ;;  %v1132_v26 = vmul.f32 0.044715, %v3017_v22  ;;  %v1346_v24 = vmul.f32 %v1314_v51, %v1090_v21  ;;  %v1257_v20 = vmul.f32 0.7978846, %v1225_v40 }
 0x289   : > { %v2095_v4 = vpop.eup %2094  ;;  %v1163_v32 = vmul.f32 %v1131_v12, %v3013_v54  ;;  %v1315_v44 = vadd.f32 1.0, %v2093_v29  ;;  %v1258_v28 = vmul.f32 0.7978846, %v1226_v42  ;;  %v1098_v29 = vmul.f32 0.5, %v3001_v36 }
 0x28a   : > { %v1164_v30 = vmul.f32 %v1132_v26, %v3017_v22  ;;  %1480 = vmatprep.mubr.f32.mxu0 %v1346_v24  ;;  %v1316_v37 = vadd.f32 1.0, %v2095_v4  ;;  %2104 = vtanh.f32 %v1257_v20 }
 0x28b   : > { %v1030_v48 = vpop.f32.mrb[12].mxu1  ;;  %1481 = vmatmul.mubr.f32.vlgmr.msra.gmra.mrb[32].mxu0 %v1345_v34  ;;  %v1195_v11 = vmul.f32 %v1163_v32, %v3013_v54  ;;  %2106 = vtanh.f32 %v1258_v28  ;;  %v1347_v31 = vmul.f32 %v1315_v44, %v1091_v43 }
 0x28c   : > { %v2097_v33 = vpop.eup %2096  ;;  %v3031_v38 = vadd.f32 %v1030_v48, %v2939_v8  ;;  %v1032_v57 = vpop.f32.mrb[13].mxu1  ;;  %v1348_v61 = vmul.f32 %v1316_v37, %v1092_v25  ;;  %v1196_v10 = vmul.f32 %v1164_v30, %v3017_v22  ;;  %v1097_v37 = vmul.f32 0.5, %v2997_v7 }
 0x28d   : > { %v2099_v27 = vpop.eup %2098  ;;  %v3035_v18 = vadd.f32 %v1032_v57, %v2943_v9  ;;  %v1317_v49 = vadd.f32 1.0, %v2097_v33  ;;  %v1227_v15 = vadd.f32 %v1195_v11, %v3013_v54 }
 0x28e   : > { %v1133_v59 = vmul.f32 0.044715, %v3031_v38  ;;  %1485 = vmatprep.mubr.f32.mxu0 %v1348_v61  ;;  %v1318_v58 = vadd.f32 1.0, %v2099_v27  ;;  %v1228_v45 = vadd.f32 %v1196_v10, %v3017_v22 }
 0x28f   : > { %v1134_v13 = vmul.f32 0.044715, %v3035_v18  ;;  %1486 = vmatmul.mubr.f32.gmra.mrb[34].mxu0 %v1347_v31  ;;  %v1259_v16 = vmul.f32 0.7978846, %v1227_v15  ;;  %v1349_v60 = vmul.f32 %v1317_v49, %v1093_v52  ;;  %v1100_v15 = vmul.f32 0.5, %v3017_v22 }
 0x290   : > { %v2101_v50 = vpop.eup %2100  ;;  %v1165_v55 = vmul.f32 %v1133_v59, %v3031_v38  ;;  %v1350_v47 = vmul.f32 %v1318_v58, %v1094_v1  ;;  %v1260_v63 = vmul.f32 0.7978846, %v1228_v45  ;;  %v1036_v6 = vpop.f32.mrb[14].mxu1  ;;  %v1099_v22 = vmul.f32 0.5, %v3013_v54 }
 0x291   : > { %v2103_v3 = vpop.eup %2102  ;;  %v1166_v5 = vmul.f32 %v1134_v13, %v3035_v18  ;;  %v1319_v62 = vadd.f32 1.0, %v2101_v50  ;;  %2108 = vtanh.f32 %v1259_v16  ;;  %v3047_v21 = vadd.f32 %v1036_v6, %v2939_v8  ;;  %v1038_v14 = vpop.f32.mrb[15].mxu1 }
 0x292   : > { %1490 = vmatprep.mubr.f32.mxu0 %v1350_v47  ;;  %v1320_v23 = vadd.f32 1.0, %v2103_v3  ;;  %2110 = vtanh.f32 %v1260_v63  ;;  %v1197_v39 = vmul.f32 %v1165_v55, %v3031_v38  ;;  %v3051_v53 = vadd.f32 %v1038_v14, %v2943_v9 }
 0x293   : > { %1491 = vmatmul.mubr.f32.gmra.mrb[36].mxu0 %v1349_v60  ;;  %v1198_v56 = vmul.f32 %v1166_v5, %v3035_v18  ;;  %v1135_v46 = vmul.f32 0.044715, %v3047_v21  ;;  %v1351_v40 = vmul.f32 %v1319_v62, %v1095_v0 }
 0x294   : > { %v1352_v19 = vmul.f32 %v1320_v23, %v1096_v2  ;;  %v1229_v51 = vadd.f32 %v1197_v39, %v3031_v38  ;;  %v2105_v41 = vpop.eup %2104  ;;  %v1136_v17 = vmul.f32 0.044715, %v3051_v53  ;;  %v1042_v12 = vpop.f32.mrb[16].mxu1 }
 0x295   : > { %v1230_v26 = vadd.f32 %v1198_v56, %v3035_v18  ;;  %v2107_v24 = vpop.eup %2106  ;;  %v1167_v42 = vmul.f32 %v1135_v46, %v3047_v21  ;;  %v3062_v35 = vadd.f32 %v1042_v12, %v2939_v8  ;;  %v1044_v4 = vpop.f32.mrb[17].mxu1  ;;  %v1321_v32 = vadd.f32 1.0, %v2105_v41 }
 0x296   : > { %1495 = vmatprep.mubr.f32.mxu0 %v1352_v19  ;;  %v1261_v34 = vmul.f32 0.7978846, %v1229_v51  ;;  %v1168_v44 = vmul.f32 %v1136_v17, %v3051_v53  ;;  %v3066_v20 = vadd.f32 %v1044_v4, %v2943_v9  ;;  %v1322_v30 = vadd.f32 1.0, %v2107_v24 }
 0x297   : > { %1496 = vmatmul.mubr.f32.gmra.mrb[38].mxu0 %v1351_v40  ;;  %v1262_v36 = vmul.f32 0.7978846, %v1230_v26  ;;  %v1137_v25 = vmul.f32 0.044715, %v3062_v35  ;;  %v1199_v28 = vmul.f32 %v1167_v42, %v3047_v21  ;;  %v1353_v61 = vmul.f32 %v1321_v32, %v1097_v37 }
 0x298   : > { %2112 = vtanh.f32 %v1261_v34  ;;  %v1138_v48 = vmul.f32 0.044715, %v3066_v20  ;;  %v1354_v43 = vmul.f32 %v1322_v30, %v1098_v29  ;;  %v1200_v11 = vmul.f32 %v1168_v44, %v3051_v53 }
 0x299   : > { %2114 = vtanh.f32 %v1262_v36  ;;  %v1169_v33 = vmul.f32 %v1137_v25, %v3062_v35  ;;  %v1048_v57 = vpop.f32.mrb[18].mxu1  ;;  %v1231_v10 = vadd.f32 %v1199_v28, %v3047_v21  ;;  %v1102_v24 = vmul.f32 0.5, %v3035_v18 }
 0x29a   : > { %v1170_v31 = vmul.f32 %v1138_v48, %v3066_v20  ;;  %v3077_v7 = vadd.f32 %v1048_v57, %v2939_v8  ;;  %v1050_v49 = vpop.f32.mrb[19].mxu1  ;;  %1500 = vmatprep.mubr.f32.mxu0 %v1354_v43  ;;  %v1232_v59 = vadd.f32 %v1200_v11, %v3051_v53  ;;  %v1101_v30 = vmul.f32 0.5, %v3031_v38 }
 0x29b   : > { %v2109_v27 = vpop.eup %2108  ;;  %v3082_v58 = vadd.f32 %v1050_v49, %v2943_v9  ;;  %1501 = vmatmul.mubr.f32.gmra.mrb[40].mxu0 %v1353_v61  ;;  %v1263_v13 = vmul.f32 0.7978846, %v1231_v10  ;;  %v1201_v52 = vmul.f32 %v1169_v33, %v3062_v35  ;;  %v1103_v38 = vmul.f32 0.5, %v3047_v21 }
 0x29c   : > { %v2111_v1 = vpop.eup %2110  ;;  %v1323_v45 = vadd.f32 1.0, %v2109_v27  ;;  %v1139_v16 = vmul.f32 0.044715, %v3077_v7  ;;  %v1264_v55 = vmul.f32 0.7978846, %v1232_v59  ;;  %v1202_v47 = vmul.f32 %v1170_v31, %v3066_v20 }
 0x29d   : > { %v1324_v50 = vadd.f32 1.0, %v2111_v1  ;;  %v1140_v2 = vmul.f32 0.044715, %v3082_v58  ;;  %2116 = vtanh.f32 %v1263_v13  ;;  %v1233_v63 = vadd.f32 %v1201_v52, %v3062_v35 }
 0x29e   : > { %v1171_v3 = vmul.f32 %v1139_v16, %v3077_v7  ;;  %2118 = vtanh.f32 %v1264_v55  ;;  %v1234_v6 = vadd.f32 %v1202_v47, %v3066_v20  ;;  %v1355_v14 = vmul.f32 %v1323_v45, %v1099_v22 }
 0x29f   : > { %v1356_v5 = vmul.f32 %v1324_v50, %v1100_v15  ;;  %v1172_v60 = vmul.f32 %v1140_v2, %v3082_v58  ;;  %v1265_v23 = vmul.f32 0.7978846, %v1233_v63  ;;  %v1104_v15 = vmul.f32 0.5, %v3051_v53 }
 0x2a0   : > { %v1054_v62 = vpop.f32.mrb[20].mxu1  ;;  %v1266_v54 = vmul.f32 0.7978846, %v1234_v6  ;;  %v1203_v56 = vmul.f32 %v1171_v3, %v3077_v7  ;;  %v1106_v55 = vmul.f32 0.5, %v3066_v20 }
 0x2a1   : > { %v3094_v39 = vadd.f32 %v1054_v62, %v2939_v8  ;;  %v1056_v0 = vpop.f32.mrb[21].mxu1  ;;  %1505 = vmatprep.mubr.f32.mxu0 %v1356_v5  ;;  %2120 = vtanh.f32 %v1265_v23  ;;  %v1204_v51 = vmul.f32 %v1172_v60, %v3082_v58 }
 0x2a2   : > { %v2113_v46 = vpop.eup %2112  ;;  %v3098_v19 = vadd.f32 %v1056_v0, %v2943_v9  ;;  %1506 = vmatmul.mubr.f32.gmra.mrb[42].mxu0 %v1355_v14  ;;  %2122 = vtanh.f32 %v1266_v54  ;;  %v1235_v40 = vadd.f32 %v1203_v56, %v3077_v7 }
 0x2a3   : > { %v2115_v41 = vpop.eup %2114  ;;  %v1141_v17 = vmul.f32 0.044715, %v3094_v39  ;;  %v1325_v12 = vadd.f32 1.0, %v2113_v46  ;;  %v1236_v4 = vadd.f32 %v1204_v51, %v3082_v58  ;;  %v1105_v46 = vmul.f32 0.5, %v3062_v35 }
 0x2a4   : > { %v1142_v29 = vmul.f32 0.044715, %v3098_v19  ;;  %v1060_v26 = vpop.f32.mrb[22].mxu1  ;;  %v1326_v42 = vadd.f32 1.0, %v2115_v41  ;;  %v1267_v36 = vmul.f32 0.7978846, %v1235_v40 }
 0x2a5   : > { %v1173_v32 = vmul.f32 %v1141_v17, %v3094_v39  ;;  %v3108_v34 = vadd.f32 %v1060_v26, %v2939_v8  ;;  %v1062_v44 = vpop.f32.mrb[23].mxu1  ;;  %v1268_v48 = vmul.f32 0.7978846, %v1236_v4  ;;  %v1357_v43 = vmul.f32 %v1325_v12, %v1101_v30 }
 0x2a6   : > { %v1174_v25 = vmul.f32 %v1142_v29, %v3098_v19  ;;  %v3113_v37 = vadd.f32 %v1062_v44, %v2943_v9  ;;  %v1358_v28 = vmul.f32 %v1326_v42, %v1102_v24  ;;  %2124 = vtanh.f32 %v1267_v36 }
 0x2a7   : > { %v1143_v18 = vmul.f32 0.044715, %v3108_v34  ;;  %v1205_v11 = vmul.f32 %v1173_v32, %v3094_v39  ;;  %v2117_v33 = vpop.eup %2116  ;;  %2126 = vtanh.f32 %v1268_v48  ;;  %v1108_v51 = vmul.f32 0.5, %v3082_v58 }
 0x2a8   : > { %v1144_v57 = vmul.f32 0.044715, %v3113_v37  ;;  %v1066_v61 = vpop.f32.mrb[24].mxu1  ;;  %1510 = vmatprep.mubr.f32.mxu0 %v1358_v28  ;;  %v1206_v10 = vmul.f32 %v1174_v25, %v3098_v19  ;;  %v2119_v27 = vpop.eup %2118  ;;  %v1327_v59 = vadd.f32 1.0, %v2117_v33 }
 0x2a9   : > { %v3121_v31 = vadd.f32 %v1066_v61, %v2939_v8  ;;  %v1068_v49 = vpop.f32.mrb[25].mxu1  ;;  %1511 = vmatmul.mubr.f32.gmra.mrb[44].mxu0 %v1357_v43  ;;  %v1237_v1 = vadd.f32 %v1205_v11, %v3094_v39  ;;  %v1328_v21 = vadd.f32 1.0, %v2119_v27  ;;  %v1175_v16 = vmul.f32 %v1143_v18, %v3108_v34 }
 0x2aa   : > { %v1176_v45 = vmul.f32 %v1144_v57, %v3113_v37  ;;  %v3127_v13 = vadd.f32 %v1068_v49, %v2943_v9  ;;  %v1238_v52 = vadd.f32 %v1206_v10, %v3098_v19  ;;  %v1359_v63 = vmul.f32 %v1327_v59, %v1103_v38 }
 0x2ab   : > { %v1145_v50 = vmul.f32 0.044715, %v3121_v31  ;;  %v1269_v47 = vmul.f32 0.7978846, %v1237_v1  ;;  %v2121_v2 = vpop.eup %2120  ;;  %v1360_v22 = vmul.f32 %v1328_v21, %v1104_v15  ;;  %v1207_v26 = vmul.f32 %v1175_v16, %v3108_v34 }
 0x2ac   : > { %v1072_v53 = vpop.f32.mrb[26].mxu1  ;;  %v1270_v3 = vmul.f32 0.7978846, %v1238_v52  ;;  %v1208_v5 = vmul.f32 %v1176_v45, %v3113_v37  ;;  %v2123_v6 = vpop.eup %2122  ;;  %v1329_v23 = vadd.f32 1.0, %v2121_v2  ;;  %v1146_v0 = vmul.f32 0.044715, %v3127_v13 }
 0x2ad   : > { %v1177_v60 = vmul.f32 %v1145_v50, %v3121_v31  ;;  %v3136_v62 = vadd.f32 %v1072_v53, %v2939_v8  ;;  %v1074_v14 = vpop.f32.mrb[27].mxu1  ;;  %2128 = vtanh.f32 %v1269_v47  ;;  %1515 = vmatprep.mubr.f32.mxu0 %v1360_v22  ;;  %v1330_v54 = vadd.f32 1.0, %v2123_v6 }
 0x2ae   : > { %v3140_v20 = vadd.f32 %v1074_v14, %v2943_v9  ;;  %2130 = vtanh.f32 %v1270_v3  ;;  %1516 = vmatmul.mubr.f32.gmra.mrb[46].mxu0 %v1359_v63  ;;  %v1240_v41 = vadd.f32 %v1208_v5, %v3113_v37  ;;  %v1361_v35 = vmul.f32 %v1329_v23, %v1105_v46 }
 0x2af   : > { %v1209_v56 = vmul.f32 %v1177_v60, %v3121_v31  ;;  %v1147_v17 = vmul.f32 0.044715, %v3136_v62  ;;  %v1362_v29 = vmul.f32 %v1330_v54, %v1106_v55  ;;  %v1178_v30 = vmul.f32 %v1146_v0, %v3127_v13 }
 0x2b0   : > { %v1148_v12 = vmul.f32 0.044715, %v3140_v20  ;;  %v1078_v40 = vpop.f32.mrb[28].mxu1  ;;  %v2125_v24 = vpop.eup %2124  ;;  %v1272_v44 = vmul.f32 0.7978846, %v1240_v41  ;;  %v1239_v28 = vadd.f32 %v1207_v26, %v3108_v34  ;;  %v1107_v61 = vmul.f32 0.5, %v3077_v7 }
 0x2b1   : > { %v1241_v42 = vadd.f32 %v1209_v56, %v3121_v31  ;;  %v3151_v4 = vadd.f32 %v1078_v40, %v2939_v8  ;;  %v1080_v32 = vpop.f32.mrb[29].mxu1  ;;  %v2127_v58 = vpop.eup %2126  ;;  %1520 = vmatprep.mubr.f32.mxu0 %v1362_v29  ;;  %v1331_v25 = vadd.f32 1.0, %v2125_v24  ;;  %v1179_v11 = vmul.f32 %v1147_v17, %v3136_v62 }
 0x2b2   : > { %v3155_v36 = vadd.f32 %v1080_v32, %v2943_v9  ;;  %v1180_v48 = vmul.f32 %v1148_v12, %v3140_v20  ;;  %1521 = vmatmul.mubr.f32.gmra.mrb[48].mxu0 %v1361_v35  ;;  %v1332_v43 = vadd.f32 1.0, %v2127_v58  ;;  %2132 = vtanh.f32 %v1272_v44 }
 0x2b3   : > { %v1149_v18 = vmul.f32 0.044715, %v3151_v4  ;;  %v1271_v38 = vmul.f32 0.7978846, %v1239_v28  ;;  %v1273_v10 = vmul.f32 0.7978846, %v1241_v42  ;;  %v1363_v45 = vmul.f32 %v1331_v25, %v1107_v61 }
 0x2b4   : > { %v1150_v33 = vmul.f32 0.044715, %v3155_v36  ;;  %v1084_v57 = vpop.f32.mrb[30].mxu1  ;;  %v1364_v15 = vmul.f32 %v1332_v43, %v1108_v51  ;;  %v1110_v59 = vmul.f32 0.5, %v3098_v19  ;;  %v1210_v21 = vmul.f32 %v1178_v30, %v3127_v13 }
 0x2b5   : > { %v3164_v27 = vadd.f32 %v1084_v57, %v2939_v8  ;;  %v1086_v49 = vpop.f32.mrb[31].mxu1  ;;  %2134 = vtanh.f32 %v1271_v38  ;;  %v1181_v16 = vmul.f32 %v1149_v18, %v3151_v4  ;;  %v1212_v8 = vmul.f32 %v1180_v48, %v3140_v20 }
 0x2b6   : > { %v3168_v1 = vadd.f32 %v1086_v49, %v2943_v9  ;;  %v1182_v7 = vmul.f32 %v1150_v33, %v3155_v36  ;;  %1525 = vmatprep.mubr.f32.mxu0 %v1364_v15  ;;  %v1242_v47 = vadd.f32 %v1210_v21, %v3127_v13  ;;  %v1211_v2 = vmul.f32 %v1179_v11, %v3136_v62 }
 0x2b7   : > { %v2129_v52 = vpop.eup %2128  ;;  %v1151_v50 = vmul.f32 0.044715, %v3164_v27  ;;  %1526 = vmatmul.mubr.f32.gmra.mrb[50].mxu0 %v1363_v45  ;;  %2136 = vtanh.f32 %v1273_v10  ;;  %v1109_v22 = vmul.f32 0.5, %v3094_v39  ;;  %v1244_v63 = vadd.f32 %v1212_v8, %v3140_v20 }
 0x2b8   : > { %v2131_v55 = vpop.eup %2130  ;;  %v1152_v19 = vmul.f32 0.044715, %v3168_v1  ;;  %v1333_v9 = vadd.f32 1.0, %v2129_v52  ;;  %v1274_v6 = vmul.f32 0.7978846, %v1242_v47  ;;  %v1243_v60 = vadd.f32 %v1211_v2, %v3136_v62 }
 0x2b9   : > { %v1334_v53 = vadd.f32 1.0, %v2131_v55  ;;  %v1183_v3 = vmul.f32 %v1151_v50, %v3164_v27  ;;  %v1276_v23 = vmul.f32 0.7978846, %v1244_v63  ;;  %v1214_v0 = vmul.f32 %v1182_v7, %v3155_v36 }
 0x2ba   : > { %v1184_v5 = vmul.f32 %v1152_v19, %v3168_v1  ;;  %v1365_v54 = vmul.f32 %v1333_v9, %v1109_v22  ;;  %2138 = vtanh.f32 %v1274_v6  ;;  %v1275_v56 = vmul.f32 0.7978846, %v1243_v60 }
 0x2bb   : > { %v1366_v14 = vmul.f32 %v1334_v53, %v1110_v59  ;;  %v1213_v46 = vmul.f32 %v1181_v16, %v3151_v4  ;;  %v1112_v39 = vmul.f32 0.5, %v3113_v37  ;;  %2140 = vtanh.f32 %v1276_v23 }
 0x2bc   : > { %v2133_v51 = vpop.eup %2132  ;;  %v1246_v41 = vadd.f32 %v1214_v0, %v3155_v36  ;;  %v1216_v17 = vmul.f32 %v1184_v5, %v3168_v1  ;;  %2142 = vtanh.f32 %v1275_v56  ;;  %v1215_v29 = vmul.f32 %v1183_v3, %v3164_v27  ;;  %v3204_v3 = vld [vmem:[%s3299_s6] ss:$0 sm:$0xff] }
 0x2bd   : > { %1530 = vmatprep.mubr.f32.mxu0 %v1366_v14  ;;  %v1336_v12 = vadd.f32 1.0, %v2133_v51  ;;  %v1245_v40 = vadd.f32 %v1213_v46, %v3151_v4  ;;  %v1111_v44 = vmul.f32 0.5, %v3108_v34  ;;  %v1114_v33 = vmul.f32 0.5, %v3127_v13 }
 0x2be   : > { %1531 = vmatmul.mubr.f32.gmra.mrb[52].mxu0 %v1365_v54  ;;  %v1278_v26 = vmul.f32 0.7978846, %v1246_v41  ;;  %v1248_v24 = vadd.f32 %v1216_v17, %v3168_v1  ;;  %v1247_v37 = vadd.f32 %v1215_v29, %v3164_v27  ;;  %v1113_v34 = vmul.f32 0.5, %v3121_v31 }
 0x2bf   : > { %v2135_v42 = vpop.eup %2134  ;;  %v1368_v32 = vmul.f32 %v1336_v12, %v1112_v39  ;;  %v1277_v35 = vmul.f32 0.7978846, %v1245_v40  ;;  %v1116_v38 = vmul.f32 0.5, %v3140_v20  ;;  %v1115_v16 = vmul.f32 0.5, %v3136_v62 }
 0x2c0   : > { %v1335_v58 = vadd.f32 1.0, %v2135_v42  ;;  %2144 = vtanh.f32 %v1278_v26  ;;  %v1280_v30 = vmul.f32 0.7978846, %v1248_v24  ;;  %v1279_v25 = vmul.f32 0.7978846, %v1247_v37 }
 0x2c1   : > { %1535 = vmatprep.mubr.f32.mxu0 %v1368_v32  ;;  %2146 = vtanh.f32 %v1277_v35  ;;  %v2137_v28 = vpop.eup %2136  ;;  %v1118_v7 = vmul.f32 0.5, %v3155_v36  ;;  %v1120_v9 = vmul.f32 0.5, %v3168_v1  ;;  %v1117_v47 = vmul.f32 0.5, %v3151_v4 }
 0x2c2   : > { %v1367_v48 = vmul.f32 %v1335_v58, %v1111_v44  ;;  %2148 = vtanh.f32 %v1280_v30  ;;  %v1337_v43 = vadd.f32 1.0, %v2137_v28  ;;  %v1119_v36 = vmul.f32 0.5, %v3164_v27 }
 0x2c3   : > { %2150 = vtanh.f32 %v1279_v25 }
 0x2c4   : > { %1536 = vmatmul.mubr.f32.gmra.mrb[54].mxu0 %v1367_v48  ;;  %v2139_v18 = vpop.eup %2138  ;;  %v1369_v15 = vmul.f32 %v1337_v43, %v1113_v34 }
 0x2c5   : > { %v2141_v11 = vpop.eup %2140  ;;  %v1338_v57 = vadd.f32 1.0, %v2139_v18 }
 0x2c6   : > { %v2143_v61 = vpop.eup %2142  ;;  %v1340_v10 = vadd.f32 1.0, %v2141_v11 }
 0x2c7   : > { %v1370_v49 = vmul.f32 %v1338_v57, %v1114_v33  ;;  %v1339_v45 = vadd.f32 1.0, %v2143_v61 }
 0x2c8   : > { %v1372_v59 = vmul.f32 %v1340_v10, %v1116_v38 }
 0x2c9   : > { %1540 = vmatprep.mubr.f32.mxu1 %v1370_v49  ;;  %v1371_v8 = vmul.f32 %v1339_v45, %v1115_v16 }
 0x2ca   : > { %v2145_v21 = vpop.eup %2144  ;;  %1541 = vmatmul.mubr.f32.vlgmr.msra.gmra.mrb[32].mxu1 %v1369_v15 }
 0x2cb   : > { %v2147_v52 = vpop.eup %2146  ;;  %v1342_v13 = vadd.f32 1.0, %v2145_v21  ;;  %1545 = vmatprep.mubr.f32.mxu1 %v1372_v59 }
 0x2cc   : > { %v2149_v50 = vpop.eup %2148  ;;  %v1341_v55 = vadd.f32 1.0, %v2147_v52 }
 0x2cd   : > { %v1374_v31 = vmul.f32 %v1342_v13, %v1118_v7  ;;  %v1344_v20 = vadd.f32 1.0, %v2149_v50  ;;  %v2151_v19 = vpop.eup %2150 }
 0x2ce   : > { %1546 = vmatmul.mubr.f32.gmra.mrb[34].mxu1 %v1371_v8  ;;  %v1373_v53 = vmul.f32 %v1341_v55, %v1117_v47  ;;  %v1343_v62 = vadd.f32 1.0, %v2151_v19 }
 0x2cf   : > { %1550 = vmatprep.mubr.f32.mxu1 %v1374_v31  ;;  %v1376_v2 = vmul.f32 %v1344_v20, %v1120_v9 }
 0x2d0   : > { %v1375_v22 = vmul.f32 %v1343_v62, %v1119_v36 }
 0x2d2   : > { %1551 = vmatmul.mubr.f32.gmra.mrb[36].mxu1 %v1373_v53 }
 0x2d3   : > { %1555 = vmatprep.mubr.f32.mxu1 %v1376_v2 }
 0x2d6   : > { %1556 = vmatmul.mubr.f32.gmra.mrb[38].mxu1 %v1375_v22 }
 0x35e   : > { %v1748_v63 = vpop.f32.mrb[32].mxu0 }
 0x35f   : > { %v1749_v1 = vpop.f32.mrb[33].mxu0 }
 0x360   : > { %v1750_v5 = vadd.f32 %v1749_v1, %v1748_v63 }
 0x362   : > { %v1483_v4 = vadd.f32 %v1750_v5, %v3204_v3  ;;  %v1751_v6 = vpop.f32.mrb[34].mxu0 }
 0x363   : > { %v1752_v60 = vpop.f32.mrb[35].mxu0 }
 0x364   : > { %1561 = vst [vmem:[%s3209_s17] sm:$0xff] %v1483_v4  ;;  %v1753_v27 = vadd.f32 %v1752_v60, %v1751_v6 }
 0x366   : > { %v1488_v14 = vadd.f32 %v1753_v27, %v3204_v3  ;;  %v1754_v23 = vpop.f32.mrb[36].mxu0 }
 0x367   : > { %v1755_v0 = vpop.f32.mrb[37].mxu0 }
 0x368   : > { %1562 = vst [vmem:[%s3209_s17 + $0x8] sm:$0xff] %v1488_v14  ;;  %v1756_v54 = vadd.f32 %v1755_v0, %v1754_v23 }
 0x36a   : > { %v1493_v56 = vadd.f32 %v1756_v54, %v3204_v3  ;;  %v1757_v46 = vpop.f32.mrb[38].mxu0 }
 0x36b   : > { %v1758_v51 = vpop.f32.mrb[39].mxu0 }
 0x36c   : > { %1563 = vst [vmem:[%s3209_s17 + $0x10] sm:$0xff] %v1493_v56  ;;  %v1759_v39 = vadd.f32 %v1758_v51, %v1757_v46 }
 0x36e   : > { %v1498_v41 = vadd.f32 %v1759_v39, %v3204_v3  ;;  %v1760_v17 = vpop.f32.mrb[40].mxu0 }
 0x36f   : > { %v1761_v12 = vpop.f32.mrb[41].mxu0 }
 0x370   : > { %1564 = vst [vmem:[%s3209_s17 + $0x18] sm:$0xff] %v1498_v41  ;;  %v1762_v40 = vadd.f32 %v1761_v12, %v1760_v17 }
 0x372   : > { %v1503_v29 = vadd.f32 %v1762_v40, %v3204_v3 }
 0x374   : > { %1565 = vst [vmem:[%s3209_s17 + $0x20] sm:$0xff] %v1503_v29 }
 0x375   : > { %v1763_v26 = vpop.f32.mrb[42].mxu0 }
 0x376   : > { %v1764_v24 = vpop.f32.mrb[43].mxu0 }
 0x377   : > { %v1765_v42 = vadd.f32 %v1764_v24, %v1763_v26 }
 0x379   : > { %v1508_v32 = vadd.f32 %v1765_v42, %v3204_v3 }
 0x37b   : > { %1566 = vst [vmem:[%s3209_s17 + $0x28] sm:$0xff] %v1508_v32 }
 0x37c   : > { %v1766_v35 = vpop.f32.mrb[44].mxu0 }
 0x37d   : > { %v1767_v37 = vpop.f32.mrb[45].mxu0 }
 0x37e   : > { %v1768_v44 = vadd.f32 %v1767_v37, %v1766_v35 }
 0x380   : > { %v1513_v58 = vadd.f32 %v1768_v44, %v3204_v3 }
 0x381   : > { %v1769_v30 = vpop.f32.mrb[46].mxu0 }
 0x382   : > { %1567 = vst [vmem:[%s3209_s17 + $0x30] sm:$0xff] %v1513_v58  ;;  %v1770_v25 = vpop.f32.mrb[47].mxu0 }
 0x383   : > { %v1771_v28 = vadd.f32 %v1770_v25, %v1769_v30 }
 0x385   : > { %v1518_v48 = vadd.f32 %v1771_v28, %v3204_v3  ;;  %v1772_v18 = vpop.f32.mrb[48].mxu0 }
 0x386   : > { %v1773_v43 = vpop.f32.mrb[49].mxu0 }
 0x387   : > { %1568 = vst [vmem:[%s3209_s17 + $0x38] sm:$0xff] %v1518_v48  ;;  %v1774_v11 = vadd.f32 %v1773_v43, %v1772_v18 }
 0x389   : > { %v1523_v33 = vadd.f32 %v1774_v11, %v3204_v3 }
 0x38a   : > { %v1775_v57 = vpop.f32.mrb[50].mxu0 }
 0x38b   : > { %1569 = vst [vmem:[%s3209_s17 + $0x40] sm:$0xff] %v1523_v33  ;;  %v1776_v61 = vpop.f32.mrb[51].mxu0 }
 0x38c   : > { %v1777_v34 = vadd.f32 %v1776_v61, %v1775_v57 }
 0x38e   : > { %v1528_v38 = vadd.f32 %v1777_v34, %v3204_v3 }
 0x390   : > { %1570 = vst [vmem:[%s3209_s17 + $0x48] sm:$0xff] %v1528_v38 }
 0x391   : > { %v1778_v10 = vpop.f32.mrb[52].mxu0 }
 0x392   : > { %v1779_v49 = vpop.f32.mrb[53].mxu0 }
 0x393   : > { %v1780_v15 = vadd.f32 %v1779_v49, %v1778_v10 }
 0x395   : > { %v1533_v59 = vadd.f32 %v1780_v15, %v3204_v3 }
 0x397   : > { %1571 = vst [vmem:[%s3209_s17 + $0x50] sm:$0xff] %v1533_v59  ;;  %v1781_v45 = vpop.f32.mrb[54].mxu0 }
 0x398   : > { %v1782_v21 = vpop.f32.mrb[55].mxu0 }
 0x399   : > { %v1783_v52 = vadd.f32 %v1782_v21, %v1781_v45 }
 0x39b   : > { %v1538_v16 = vadd.f32 %v1783_v52, %v3204_v3 }
 0x39d   : > { %1572 = vst [vmem:[%s3209_s17 + $0x58] sm:$0xff] %v1538_v16  ;;  %v1784_v7 = vpop.f32.mrb[32].mxu1 }
 0x39e   : > { %v1785_v13 = vpop.f32.mrb[33].mxu1 }
 0x39f   : > { %v1786_v50 = vadd.f32 %v1785_v13, %v1784_v7 }
 0x3a1   : > { %v1543_v8 = vadd.f32 %v1786_v50, %v3204_v3  ;;  %v1787_v31 = vpop.f32.mrb[34].mxu1 }
 0x3a2   : > { %v1788_v55 = vpop.f32.mrb[35].mxu1 }
 0x3a3   : > { %1573 = vst [vmem:[%s3209_s17 + $0x60] sm:$0xff] %v1543_v8  ;;  %v1789_v20 = vadd.f32 %v1788_v55, %v1787_v31 }
 0x3a5   : > { %v1548_v19 = vadd.f32 %v1789_v20, %v3204_v3  ;;  %v1790_v9 = vpop.f32.mrb[36].mxu1 }
 0x3a6   : > { %v1791_v47 = vpop.f32.mrb[37].mxu1 }
 0x3a7   : > { %1574 = vst [vmem:[%s3209_s17 + $0x68] sm:$0xff] %v1548_v19  ;;  %v1792_v2 = vadd.f32 %v1791_v47, %v1790_v9 }
 0x3a9   : > { %v1553_v53 = vadd.f32 %v1792_v2, %v3204_v3  ;;  %v1793_v62 = vpop.f32.mrb[38].mxu1 }
 0x3aa   : > { %v1794_v36 = vpop.f32.mrb[39].mxu1 }
 0x3ab   : > { %1575 = vst [vmem:[%s3209_s17 + $0x70] sm:$0xff] %v1553_v53  ;;  %v1795_v22 = vadd.f32 %v1794_v36, %v1793_v62 }
 0x3ad   : > { %v1558_v63 = vadd.f32 %v1795_v22, %v3204_v3 }
 0x3af   : > { %1576 = vst [vmem:[%s3209_s17 + $0x78] sm:$0xff] %v1558_v63 }
 0x3b0   : > { %2279 = shalt.err (!%p2276_p4)
}
 0x3b1   : > { %s2280_s14 = scalar_lea.hbm %s3245_s23, 2048  ;;  %s2284_s13 = scalar_lea.hbm %s3300_s7, 4096 }
 0x3b2   : > { %p2281_p9 = scmp.ne.s32.totalorder %s3245_s23, %s2280_s14  ;;  %p2285_p8 = scmp.lt.u32.totalorder %s3245_s23, %s3300_s7 }
 0x3b3   : > { %p2286_p13 = scmp.lt.u32.totalorder %s2284_s13, %s2280_s14  ;;  %p2288_p10 = scmp.lt.u32.totalorder %s2280_s14, %s3245_s23 }
 0x3b4   : > { %p2282_p0 = pnand %p2281_p9, %p2542_p5 }
 0x3b5   : > { %p2287_p6 = por %p2286_p13, %p2285_p8 }
 0x3b6   : > { %p2283_p11 = pneg %p2282_p0 }
 0x3b7   : > { %p2289_p3 = por %p2288_p10, %p2287_p6 }
 0x3b9   : > { %p2290_p7 = pnand %p2289_p3, %p2283_p11 }
 0x3bb   : > { %2293 = shalt.err (!%p2290_p7)
}
 0x3bc   : > { %s2352_s16 = smov 128   ;;  %s2353_s29 = smov 8  }
 0x3bd   : > { %1954 = dma.vmem_to_hbm [thread:$0]  (%p2542_p5), %s3247_s21, 2048, %s3245_s23, %s1578_s11, %s2352_s16, %s2352_s16, %s2353_s29  }
 0x3be PF: > { %s3320_s15 = sld [smem:[#allocation15_spill]]  ;;  %s1606_s28 = sand.u32 1, %s2328_s24  }
 0x3bf   : > { %p3322_p2 = scmp.ge.s32.totalorder %s2340_s27, 2  ;;  %s1607_s30 = scalar_lea.sflag [#allocation4], %s1606_s28 }
 0x3c4   : > { %p3321_p12 = scmp.ne.s32.totalorder %s3320_s15, 0 }
 0x3c6   : > { %p1971_p1 = pnand %p3322_p2, %p3321_p12 }
 0x3c8   : > { %2323 = dma.done.wait (!%p1971_p1), %s1607_s30, 2048  }
 0x3c9   : > { %2325 = vsyncadd (!%p1971_p1), %s1607_s30, 4294965248  ;;  %p22_p4 = scmp.ge.s32.totalorder %s2528_s8, 4   ;;  %s3323_s24 = smov %s2332_s25 }
 0x3ca   : > { %s3324_s25 = smov %s2336_s26  ;;  %s3325_s26 = smov %s2538_s19 }
 0x3cb   : > { %s3326_s27 = smov %s2528_s8  ;;  %24 = sbr.rel (!%p22_p4) target bundleno = 7 (0x7), region = 105 }
 0x3d2   :  { %1612 = vsyncpa [#allocation3], 1 }
 0x3d3   :  { %1614 = vsyncpa [#allocation3 + $0x1], 1 }
 0x3d4   :  { %1615 = vsyncpa [#allocation6], 1 }
 0x3d5   :  { %1616 = vsyncpa [#allocation9], 1 }
 0x3d6   :  { %1617 = vsyncpa [#allocation4], 1 }
 0x3d7   :  { %1619 = vsyncpa [#allocation4 + $0x1], 1 }

// kernel: tpu_custom_call.1
= control target key start
LH: loop header
LB: loop body
LE: loop exit
PB: predicated region body
PF: predicated region fallthrough
CT: control target
= control target key end

     0   :  { %12 = vsyncpa [#allocation3], 0  ;;  %s3293_s0 = inlined_call_operand.hbm [shape: f32[256,128], index: 0, kind: input, shape index: {}]   ;;  %s3294_s1 = inlined_call_operand.hbm [shape: f32[128,256], index: 1, kind: input, shape index: {}]   ;;  %s3295_s2 = inlined_call_operand.vmem [shape: f32[1,256], index: 2, kind: input, shape index: {}]   ;;  %s3296_s3 = inlined_call_operand.hbm [shape: f32[256,256], index: 3, kind: input, shape index: {}]   ;;  %s3297_s4 = inlined_call_operand.vmem [shape: f32[1,256], index: 4, kind: input, shape index: {}]   ;;  %s3298_s5 = inlined_call_operand.hbm [shape: f32[256,128], index: 5, kind: input, shape index: {}]   ;;  %s3299_s6 = inlined_call_operand.vmem [shape: f32[1,128], index: 6, kind: input, shape index: {}]   ;;  %s3300_s7 = inlined_call_operand.hbm [shape: f32[256,128], index: 7, kind: output, shape index: {}]  }
   0x1   :  { %14 = vsyncpa [#allocation3 + $0x1], 0 }
   0x2   :  { %15 = vsyncpa [#allocation6], 0 }
   0x3   :  { %16 = vsyncpa [#allocation9], 0 }
   0x4   :  { %17 = vsyncpa [#allocation4], 0 }
   0x5   :  { %19 = vsyncpa [#allocation4 + $0x1], 0  ;;  %s2394_s24 = smov 0   ;;  %s2396_s25 = smov 0  }
   0x6   :  { %s2398_s26 = smov 0   ;;  %s2400_s27 = smov 0  }
   0x7 LB: > { %s2415_s28 = sadd.s32 4294967295, %s2340_s27   ;;  %s1693_s29 = sadd.s32 4294967294, %s2340_s27   ;;  %s2340_s27 = sphi %s2400_s27, %s3326_s27   ;;  %s2336_s26 = sphi %s2398_s26, %s3325_s26   ;;  %s2332_s25 = sphi %s2396_s25, %s3324_s25   ;;  %s2328_s24 = sphi %s2394_s24, %s3323_s24  }
   0x8   : > { %p45_p0 = scmp.ne.s32.totalorder %s2332_s25, %s2328_s24  ;;  %p3301_p1 = scmp.eq.s32.totalorder %s2415_s28, 0 }
   0x9   : > { %p201_p3 = scmp.eq.s32.totalorder %s1693_s29, 1  ;;  %p1694_p5 = scmp.ge.s32.totalorder %s2340_s27, 1 }
   0xa   : > { %p2424_p4 = por %p3301_p1, %p45_p0  ;;  %p208_p7 = scmp.lt.s32.totalorder %s2340_s27, 3 }
   0xb   : > { %p2429_p6 = por %p201_p3, %p45_p0  ;;  %s2342_s10 = smov [#allocation5]  }
   0xc   : > { %s3305_s30 = scalar_select %p2424_p4, 1, 0 }
   0xd   : > { %s3306_s8 = scalar_select %p2429_p6, 1, 0 }
   0xe   : > { %p2434_p8 = pnand %p1694_p5, %p208_p7  ;;  %s220_s11 = sshll.u32 %s2342_s10, 4  ;;  %s2438_s11 = int_to_ptr.vmem [resolvable:$true] %s220_s11 }
   0xf   : > { %3307 = sst [smem:[#allocation15_spill]] %s3306_s8  ;;  %s2343_s13 = smov [#allocation7]  }
  0x10   : > { %s3308_s9 = scalar_select %p2434_p8, 1, 0 }
  0x11   : > { %p1956_p9 = pneg %p2434_p8  ;;  %s236_s14 = sshll.u32 %s2343_s13, 4  ;;  %s2449_s14 = int_to_ptr.vmem [resolvable:$true] %s236_s14 }
  0x12   : > { %s2344_s15 = smov [#allocation8]   ;;  %s2152_s19 = scalar_lea.hbm %s3294_s1, 4096 }
  0x13   : > { %p2445_p11 = pnand %p1956_p9, %p3301_p1  ;;  %s2451_s16 = sshll.u32 %s2344_s15, 4  ;;  %s253_s16 = int_to_ptr.vmem [resolvable:$true] %s2451_s16 }
  0x14   : > { %p2153_p12 = scmp.ne.s32.totalorder %s3294_s1, %s2152_s19  ;;  %p2159_p5 = scmp.lt.u32.totalorder %s2152_s19, %s3294_s1 }
  0x15   : > { %p2461_p13 = pneg %p2445_p11 }
  0x17   : > { %p2155_p0 = pnand %p2461_p13, %p2153_p12 }
  0x19   : > { %p2156_p3 = pneg %p2155_p0 }
  0x1b   : > { %p2161_p7 = pnand %p2159_p5, %p2156_p3 }
  0x1d   : > { %2164 = shalt.err (!%p2161_p7)
}
  0x1e   : > { %s2165_s10 = scalar_lea.vmem %s2438_s11, 4096  ;;  %p2173_p2 = scmp.lt.s32.totalorder %s2438_s11, %s2438_s11 }
  0x1f   : > { %p2166_p9 = scmp.ne.s32.totalorder %s2438_s11, %s2165_s10  ;;  %p2174_p6 = scmp.lt.s32.totalorder %s2165_s10, %s2165_s10 }
  0x21   : > { %p2168_p10 = pnand %p2166_p9, %p2461_p13  ;;  %p2175_p12 = por %p2174_p6, %p2173_p2 }
  0x23   : > { %p2169_p1 = pneg %p2168_p10 }
  0x25   : > { %p2176_p0 = pnand %p2175_p12, %p2169_p1 }
  0x27   : > { %2179 = shalt.err (!%p2176_p0)
}
  0x28   : > { %s2345_s13 = smov 256   ;;  %s2346_s15 = smov 16  }
  0x29   : > { %1959 = dma.hbm_to_vmem [thread:$0]  (!%p2445_p11), %s3294_s1, 4096, %s2438_s11, [#allocation6], %s2345_s13, %s2345_s13, %s2346_s15  }
  0x2a   : > { %s2180_s21 = scalar_lea.hbm %s3296_s3, 8192 }
  0x2b   : > { %p2181_p2 = scmp.ne.s32.totalorder %s3296_s3, %s2180_s21  ;;  %p2187_p10 = scmp.lt.u32.totalorder %s2180_s21, %s3296_s3 }
  0x2d   : > { %p2183_p1 = pnand %p2181_p2, %p2461_p13 }
  0x2f   : > { %p2184_p6 = pneg %p2183_p1 }
  0x31   : > { %p2189_p3 = pnand %p2187_p10, %p2184_p6 }
  0x33   : > { %2192 = shalt.err (!%p2189_p3)
}
  0x34   : > { %s2193_s11 = scalar_lea.vmem %s2449_s14, 8192  ;;  %p2201_p12 = scmp.lt.s32.totalorder %s2449_s14, %s2449_s14 }
  0x35   : > { %p2194_p5 = scmp.ne.s32.totalorder %s2449_s14, %s2193_s11  ;;  %p2202_p0 = scmp.lt.s32.totalorder %s2193_s11, %s2193_s11 }
  0x37   : > { %p2196_p7 = pnand %p2194_p5, %p2461_p13  ;;  %p2203_p2 = por %p2202_p0, %p2201_p12 }
  0x39   : > { %p2197_p9 = pneg %p2196_p7 }
  0x3b   : > { %p2204_p1 = pnand %p2203_p2, %p2197_p9 }
  0x3d   : > { %2207 = shalt.err (!%p2204_p1)
}
  0x3e   : > { %1962 = dma.hbm_to_vmem [thread:$0]  (!%p2445_p11), %s3296_s3, 8192, %s2449_s14, [#allocation6], %s2345_s13, %s2345_s13, %s2346_s15  }
  0x3f   : > { %s2208_s20 = scalar_lea.hbm %s3298_s5, 4096 }
  0x40   : > { %p2209_p6 = scmp.ne.s32.totalorder %s3298_s5, %s2208_s20  ;;  %p2215_p5 = scmp.lt.u32.totalorder %s2208_s20, %s3298_s5 }
  0x42   : > { %p2211_p10 = pnand %p2209_p6, %p2461_p13 }
  0x44   : > { %p2212_p3 = pneg %p2211_p10 }
  0x46   : > { %p2217_p7 = pnand %p2215_p5, %p2212_p3 }
  0x48   : > { %2220 = shalt.err (!%p2217_p7)
}
  0x49   : > { %s2221_s11 = scalar_lea.vmem %s253_s16, 4096  ;;  %p2229_p2 = scmp.lt.s32.totalorder %s253_s16, %s253_s16 }
  0x4a   : > { %p2222_p9 = scmp.ne.s32.totalorder %s253_s16, %s2221_s11  ;;  %p2230_p1 = scmp.lt.s32.totalorder %s2221_s11, %s2221_s11 }
  0x4c   : > { %p2224_p12 = pnand %p2222_p9, %p2461_p13  ;;  %p2231_p4 = por %p2230_p1, %p2229_p2 }
  0x4e   : > { %p2225_p0 = pneg %p2224_p12 }
  0x50   : > { %p2232_p8 = pnand %p2231_p4, %p2225_p0 }
  0x52   : > { %2235 = shalt.err (!%p2232_p8)
}
  0x53   : > { %s2347_s14 = smov 128   ;;  %s2348_s22 = smov 8  }
  0x54   : > { %1965 = dma.hbm_to_vmem [thread:$0]  (!%p2445_p11), %s3298_s5, 4096, %s253_s16, [#allocation9], %s2347_s14, %s2347_s14, %s2348_s22  }
  0x55   : > { %s2528_s8 = sadd.s32 1, %s2340_s27   ;;  %s32_s18 = sadd.s32 1, %s2336_s26 }
  0x56   : > { %s29_s17 = ssub.s32 %s2340_s27, %s2528_s8  ;;  %p39_p8 = scmp.ne.s32.totalorder %s2336_s26, %s2332_s25 }
  0x57   : > { %p30_p4 = scmp.eq.s32.totalorder %s29_s17, 0  ;;  %p40_p13 = scmp.eq.s32.totalorder %s2340_s27, 0 }
  0x58   : > { %p1977_p6 = scmp.lt.s32.totalorder %s2340_s27, 2  ;;  %p3311_p3 = scmp.eq.s32.totalorder %s2415_s28, 1 }
  0x59   : > { %s2538_s19 = scalar_select %p30_p4, %s2336_s26, %s32_s18  }
  0x5a   : > { %p41_p10 = por %p40_p13, %p39_p8  ;;  %p2542_p5 = por %p3311_p3, %p39_p8 }
  0x5b   : > { %s269_s20 = sand.u32 1, %s2336_s26   ;;  %s1714_s21 = sshll.u32 %s2340_s27, 11 }
  0x5c   : > { %s1699_s16 = sshll.u32 %s269_s20, 7  ;;  %s2551_s10 = scalar_lea.hbm %s3293_s0, %s1714_s21 }
  0x5d   : > { %s273_s11 = scalar_lea.vmem [#allocation2], %s1699_s16  ;;  %p2553_p11 = pnand %p1977_p6, %p41_p10 }
  0x5e   : > { %s280_s13 = sshll.u32 %s273_s11, 4  ;;  %s2559_s17 = scalar_lea.sflag [#allocation3], %s269_s20  ;;  %s2557_s13 = int_to_ptr.vmem [resolvable:$true] %s280_s13 }
  0x5f   : > { %s2236_s18 = scalar_lea.hbm %s2551_s10, 2048  ;;  %p2238_p9 = pneg %p2553_p11 }
  0x60   : > { %p2237_p7 = scmp.ne.s32.totalorder %s2551_s10, %s2236_s18  ;;  %s2241_s23 = scalar_lea.hbm %s3293_s0, 4096 }
  0x61   : > { %p2242_p2 = scmp.lt.u32.totalorder %s2551_s10, %s3293_s0  ;;  %p2243_p1 = scmp.lt.u32.totalorder %s2241_s23, %s2236_s18 }
  0x62   : > { %p2239_p12 = pnand %p2238_p9, %p2237_p7  ;;  %p2245_p8 = scmp.lt.u32.totalorder %s2236_s18, %s2551_s10 }
  0x63   : > { %p2244_p4 = por %p2243_p1, %p2242_p2 }
  0x64   : > { %p2240_p0 = pneg %p2239_p12 }
  0x65   : > { %p2246_p13 = por %p2245_p8, %p2244_p4 }
  0x67   : > { %p2247_p6 = pnand %p2246_p13, %p2240_p0 }
  0x69   : > { %2250 = shalt.err (!%p2247_p6)
}
  0x6a   : > { %s2251_s20 = scalar_lea.vmem %s2557_s13, 2048  ;;  %s2349_s21 = smov [#allocation2]  }
  0x6b   : > { %p2252_p10 = scmp.ne.s32.totalorder %s2557_s13, %s2251_s20  ;;  %s2256_s16 = sshll.u32 %s2349_s21, 4  ;;  %s2257_s16 = int_to_ptr.vmem [resolvable:$false] %s2256_s16 }
  0x6c   : > { %s2258_s29 = scalar_lea.vmem %s2257_s16, 4096  ;;  %p2259_p12 = scmp.lt.s32.totalorder %s2557_s13, %s2257_s16 }
  0x6d   : > { %p2254_p3 = pnand %p2252_p10, %p2238_p9  ;;  %p2260_p2 = scmp.lt.s32.totalorder %s2258_s29, %s2251_s20 }
  0x6f   : > { %p2255_p7 = pneg %p2254_p3  ;;  %p2261_p1 = por %p2260_p2, %p2259_p12 }
  0x71   : > { %p2262_p4 = pnand %p2261_p1, %p2255_p7 }
  0x73   : > { %2265 = shalt.err (!%p2262_p4)
}
  0x74   : > { %1969 = dma.hbm_to_vmem [thread:$0]  (!%p2553_p11), %s2551_s10, 2048, %s2557_s13, %s2559_s17, %s2347_s14, %s2347_s14, %s2348_s22  }
  0x75   : > { %p3314_p9 = scmp.ne.s32.totalorder %s3308_s9, 0 }
  0x76   : > { %s2593_s18 = sand.u32 (!%p3314_p9), 1, %s2332_s25   ;;  %p3315_p0 = scmp.ne.s32.totalorder (!%p3314_p9), %s3305_s30, 0 }
  0x77   : > { %292 = sbr.rel (%p3314_p9) target bundleno = 958 (0x3be), region = 48  ;;  %s1703_s23 = sshll.u32 (!%p3314_p9), %s2593_s18, 7 }
  0x78   : > { %s295_s11 = scalar_lea.sflag (!%p3314_p9), [#allocation3], %s2593_s18  ;;  %s2599_s15 = scalar_lea.vmem (!%p3314_p9), [#allocation2], %s1703_s23 }
  0x7e   : > { %2311 = dma.done.wait (%p3315_p0), %s295_s11, 2048  }
  0x7f   : > { %2313 = vsyncadd (%p3315_p0), %s295_s11, 4294965248  ;;  %p3316_p11 = scmp.eq.s32.totalorder %s2415_s28, 0 }
  0x81   : > { %2315 = dma.done.wait (%p3316_p11), [#allocation6], 12288   ;;  %p3317_p8 = pmov %p3316_p11 }
  0x83   : > { %2317 = vsyncadd (%p3317_p8), [#allocation6], 4294955008  ;;  %p3318_p13 = pmov %p3317_p8 }
  0x84   : > { %p3319_p6 = pmov %p3317_p8 }
  0x85   : > { %2319 = dma.done.wait (%p3318_p13), [#allocation9], 4096  }
  0x86   : > { %2321 = vsyncadd (%p3319_p6), [#allocation9], 4294963200  ;;  %v2350_v0 = vmov 0.0   ;;  %v360_v1 = vld [vmem:[#allocation5 + $0x8] sm:$0xff]  ;;  %v362_v2 = vld [vmem:[#allocation5 + $0x18] sm:$0xff]  ;;  %s3209_s17 = scalar_lea.vmem [#allocation10], %s1703_s23 }
  0x87   : > { %467 = vmatprep.mubr.f32.mxu0 %v2350_v0  ;;  %v359_v3 = vld [vmem:[#allocation5] sm:$0xff]  ;;  %v1796_v4 = vpack.c.bf16 %v362_v2, %v360_v1  ;;  %v361_v5 = vld [vmem:[#allocation5 + $0x10] sm:$0xff]  ;;  %v364_v6 = vld [vmem:[#allocation5 + $0x28] sm:$0xff]  ;;  %s1715_s20 = sshll.u32 %s2415_s28, 11  ;;  %s1591_s21 = sshll.u32 %s3209_s17, 4  ;;  %s3247_s21 = int_to_ptr.vmem [resolvable:$true] %s1591_s21 }
  0x88   : > { %v366_v7 = vld [vmem:[#allocation5 + $0x38] sm:$0xff]  ;;  %v1798_v8 = vpack.c.bf16 %v361_v5, %v359_v3  ;;  %v363_v10 = vld [vmem:[#allocation5 + $0x20] sm:$0xff]  ;;  %v365_v11 = vld [vmem:[#allocation5 + $0x30] sm:$0xff]  ;;  %s3245_s23 = scalar_lea.hbm %s3300_s7, %s1715_s20  ;;  %s1578_s11 = scalar_lea.sflag [#allocation4], %s2593_s18 }
  0x89   : > { %v1800_v9 = vpack.c.bf16 %v366_v7, %v364_v6  ;;  %v368_v12 = vld [vmem:[#allocation5 + $0x48] sm:$0xff]  ;;  %1797 = vmatprep.subr.bf16.mxu0 %v1796_v4  ;;  %v370_v13 = vld [vmem:[#allocation5 + $0x58] sm:$0xff]  ;;  %v1802_v14 = vpack.c.bf16 %v365_v11, %v363_v10  ;;  %v367_v16 = vld [vmem:[#allocation5 + $0x40] sm:$0xff]  ;;  %s2351_s28 = smov [#allocation10]  }
  0x8a   : > { %1799 = vmatpush1.bf16.msra.mxu0 %v1798_v8  ;;  %v1804_v15 = vpack.c.bf16 %v370_v13, %v368_v12  ;;  %v369_v17 = vld [vmem:[#allocation5 + $0x50] sm:$0xff]  ;;  %v372_v18 = vld [vmem:[#allocation5 + $0x68] sm:$0xff]  ;;  %v374_v19 = vld [vmem:[#allocation5 + $0x78] sm:$0xff]  ;;  %s2270_s30 = sshll.u32 %s2351_s28, 4  ;;  %s2271_s30 = int_to_ptr.vmem [resolvable:$false] %s2270_s30 }
  0x8b   : > { %1801 = vmatprep.subr.bf16.mxu0 %v1800_v9  ;;  %v1806_v20 = vpack.c.bf16 %v369_v17, %v367_v16  ;;  %v1808_v21 = vpack.c.bf16 %v374_v19, %v372_v18  ;;  %v371_v22 = vld [vmem:[#allocation5 + $0x60] sm:$0xff]  ;;  %v373_v23 = vld [vmem:[#allocation5 + $0x70] sm:$0xff]  ;;  %v376_v24 = vld [vmem:[#allocation5 + $0x88] sm:$0xff]  ;;  %s2272_s9 = scalar_lea.vmem %s2271_s30, 4096  ;;  %p2273_p12 = scmp.lt.s32.totalorder %s3247_s21, %s2271_s30 }
  0x8c   : > { %v378_v25 = vld [vmem:[#allocation5 + $0x98] sm:$0xff]  ;;  %v1810_v26 = vpack.c.bf16 %v373_v23, %v371_v22  ;;  %v375_v28 = vld [vmem:[#allocation5 + $0x80] sm:$0xff]  ;;  %v377_v29 = vld [vmem:[#allocation5 + $0x90] sm:$0xff] }
  0x8d   : > { %v1812_v27 = vpack.c.bf16 %v378_v25, %v376_v24  ;;  %v380_v30 = vld [vmem:[#allocation5 + $0xa8] sm:$0xff]  ;;  %v382_v31 = vld [vmem:[#allocation5 + $0xb8] sm:$0xff]  ;;  %v379_v32 = vld [vmem:[#allocation5 + $0xa0] sm:$0xff]  ;;  %v1814_v34 = vpack.c.bf16 %v377_v29, %v375_v28 }
  0x8e   : > { %1803 = vmatpush1.bf16.msra.mxu0 %v1802_v14  ;;  %v381_v33 = vld [vmem:[#allocation5 + $0xb0] sm:$0xff]  ;;  %v384_v35 = vld [vmem:[#allocation5 + $0xc8] sm:$0xff]  ;;  %v386_v36 = vld [vmem:[#allocation5 + $0xd8] sm:$0xff]  ;;  %v1816_v40 = vpack.c.bf16 %v382_v31, %v380_v30 }
  0x8f   : > { %1805 = vmatprep.subr.bf16.mxu0 %v1804_v15  ;;  %v853_v37 = vld [vmem:[#allocation7 + $0x8] sm:$0xff]  ;;  %v855_v38 = vld [vmem:[#allocation7 + $0x18] sm:$0xff]  ;;  %v852_v39 = vld [vmem:[#allocation7] sm:$0xff]  ;;  %v1818_v51 = vpack.c.bf16 %v381_v33, %v379_v32  ;;  %v1820_v55 = vpack.c.bf16 %v386_v36, %v384_v35 }
  0x90   : > { %v1828_v41 = vpack.c.bf16 %v855_v38, %v853_v37  ;;  %v854_v42 = vld [vmem:[#allocation7 + $0x10] sm:$0xff]  ;;  %v857_v43 = vld [vmem:[#allocation7 + $0x28] sm:$0xff]  ;;  %v859_v44 = vld [vmem:[#allocation7 + $0x38] sm:$0xff] }
  0x91   : > { %v1830_v45 = vpack.c.bf16 %v854_v42, %v852_v39  ;;  %v1832_v46 = vpack.c.bf16 %v859_v44, %v857_v43  ;;  %v856_v47 = vld [vmem:[#allocation7 + $0x20] sm:$0xff]  ;;  %v858_v48 = vld [vmem:[#allocation7 + $0x30] sm:$0xff]  ;;  %v861_v49 = vld [vmem:[#allocation7 + $0x48] sm:$0xff] }
  0x92   : > { %1807 = vmatpush1.bf16.msra.mxu0 %v1806_v20  ;;  %1829 = vmatprep.subr.bf16.mxu1 %v1828_v41  ;;  %v863_v50 = vld [vmem:[#allocation7 + $0x58] sm:$0xff]  ;;  %v383_v52 = vld [vmem:[#allocation5 + $0xc0] sm:$0xff]  ;;  %v385_v53 = vld [vmem:[#allocation5 + $0xd0] sm:$0xff]  ;;  %v1834_v54 = vpack.c.bf16 %v858_v48, %v856_v47 }
  0x93   : > { %1809 = vmatprep.subr.bf16.mxu0 %v1808_v21  ;;  %1831 = vmatpush1.bf16.msra.mxu1 %v1830_v45  ;;  %v388_v56 = vld [vmem:[#allocation5 + $0xe8] sm:$0xff]  ;;  %v1836_v57 = vpack.c.bf16 %v863_v50, %v861_v49  ;;  %v860_v58 = vld [vmem:[#allocation7 + $0x40] sm:$0xff]  ;;  %v862_v59 = vld [vmem:[#allocation7 + $0x50] sm:$0xff]  ;;  %v1822_v63 = vpack.c.bf16 %v385_v53, %v383_v52 }
  0x94   : > { %1833 = vmatprep.subr.bf16.mxu1 %v1832_v46  ;;  %v390_v60 = vld [vmem:[#allocation5 + $0xf8] sm:$0xff]  ;;  %v865_v61 = vld [vmem:[#allocation7 + $0x68] sm:$0xff]  ;;  %v387_v1 = vld [vmem:[#allocation5 + $0xe0] sm:$0xff]  ;;  %v1838_v2 = vpack.c.bf16 %v862_v59, %v860_v58 }
  0x95   : > { %v867_v62 = vld [vmem:[#allocation7 + $0x78] sm:$0xff]  ;;  %v1824_v3 = vpack.c.bf16 %v390_v60, %v388_v56  ;;  %v389_v4 = vld [vmem:[#allocation5 + $0xf0] sm:$0xff]  ;;  %v864_v6 = vld [vmem:[#allocation7 + $0x60] sm:$0xff] }
  0x96   : > { %1811 = vmatpush1.bf16.msra.mxu0 %v1810_v26  ;;  %v1840_v5 = vpack.c.bf16 %v867_v62, %v865_v61  ;;  %v866_v7 = vld [vmem:[#allocation7 + $0x70] sm:$0xff]  ;;  %v869_v8 = vld [vmem:[#allocation7 + $0x88] sm:$0xff]  ;;  %v871_v9 = vld [vmem:[#allocation7 + $0x98] sm:$0xff]  ;;  %v1826_v10 = vpack.c.bf16 %v389_v4, %v387_v1 }
  0x97   : > { %1813 = vmatprep.subr.bf16.mxu0 %v1812_v27  ;;  %1835 = vmatpush1.bf16.msra.mxu1 %v1834_v54  ;;  %v1842_v11 = vpack.c.bf16 %v866_v7, %v864_v6  ;;  %v1844_v12 = vpack.c.bf16 %v871_v9, %v869_v8  ;;  %v868_v13 = vld [vmem:[#allocation7 + $0x80] sm:$0xff]  ;;  %v870_v14 = vld [vmem:[#allocation7 + $0x90] sm:$0xff]  ;;  %v873_v15 = vld [vmem:[#allocation7 + $0xa8] sm:$0xff] }
  0x98   : > { %1837 = vmatprep.subr.bf16.mxu1 %v1836_v57  ;;  %v875_v16 = vld [vmem:[#allocation7 + $0xb8] sm:$0xff]  ;;  %v343_v17 = vld [vmem:[%s2599_s15] sm:$0xff]  ;;  %v1846_v18 = vpack.c.bf16 %v870_v14, %v868_v13  ;;  %v874_v21 = vld [vmem:[#allocation7 + $0xb0] sm:$0xff] }
  0x99   : > { %v1848_v19 = vpack.c.bf16 %v875_v16, %v873_v15  ;;  %v872_v20 = vld [vmem:[#allocation7 + $0xa0] sm:$0xff]  ;;  %v877_v22 = vld [vmem:[#allocation7 + $0xc8] sm:$0xff]  ;;  %v879_v23 = vld [vmem:[#allocation7 + $0xd8] sm:$0xff] }
  0x9a   : > { %1815 = vmatpush1.bf16.msra.mxu0 %v1814_v34  ;;  %v344_v24 = vld [vmem:[%s2599_s15 + $0x8] sm:$0xff]  ;;  %v1850_v25 = vpack.c.bf16 %v874_v21, %v872_v20  ;;  %v1852_v26 = vpack.c.bf16 %v879_v23, %v877_v22  ;;  %v876_v27 = vld [vmem:[#allocation7 + $0xc0] sm:$0xff]  ;;  %v878_v28 = vld [vmem:[#allocation7 + $0xd0] sm:$0xff] }
  0x9b   : > { %1817 = vmatprep.subr.bf16.mxu0 %v1816_v40  ;;  %1839 = vmatpush1.bf16.msra.mxu1 %v1838_v2  ;;  %v881_v29 = vld [vmem:[#allocation7 + $0xe8] sm:$0xff]  ;;  %v883_v30 = vld [vmem:[#allocation7 + $0xf8] sm:$0xff]  ;;  %v345_v31 = vld [vmem:[%s2599_s15 + $0x10] sm:$0xff]  ;;  %v1854_v32 = vpack.c.bf16 %v878_v28, %v876_v27 }
  0x9c   : > { %1841 = vmatprep.subr.bf16.mxu1 %v1840_v5  ;;  %v1856_v33 = vpack.c.bf16 %v883_v30, %v881_v29  ;;  %v880_v34 = vld [vmem:[#allocation7 + $0xe0] sm:$0xff]  ;;  %v882_v35 = vld [vmem:[#allocation7 + $0xf0] sm:$0xff]  ;;  %v885_v36 = vld [vmem:[#allocation7 + $0x108] sm:$0xff] }
  0x9d   : > { %v887_v37 = vld [vmem:[#allocation7 + $0x118] sm:$0xff]  ;;  %v1858_v39 = vpack.c.bf16 %v882_v35, %v880_v34  ;;  %v884_v41 = vld [vmem:[#allocation7 + $0x100] sm:$0xff]  ;;  %v886_v42 = vld [vmem:[#allocation7 + $0x110] sm:$0xff] }
  0x9e   : > { %1819 = vmatpush1.bf16.msra.mxu0 %v1818_v51  ;;  %v346_v38 = vld [vmem:[%s2599_s15 + $0x18] sm:$0xff]  ;;  %v1860_v40 = vpack.c.bf16 %v887_v37, %v885_v36  ;;  %v347_v43 = vld [vmem:[%s2599_s15 + $0x20] sm:$0xff]  ;;  %v1862_v44 = vpack.c.bf16 %v886_v42, %v884_v41  ;;  %v348_v45 = vld [vmem:[%s2599_s15 + $0x28] sm:$0xff] }
  0x9f   : > { %1821 = vmatprep.subr.bf16.mxu0 %v1820_v55  ;;  %1843 = vmatpush1.bf16.msra.mxu1 %v1842_v11  ;;  %v349_v46 = vld [vmem:[%s2599_s15 + $0x30] sm:$0xff]  ;;  %v350_v47 = vld [vmem:[%s2599_s15 + $0x38] sm:$0xff]  ;;  %v351_v48 = vld [vmem:[%s2599_s15 + $0x40] sm:$0xff] }
  0xa0   : > { %1845 = vmatprep.subr.bf16.mxu1 %v1844_v12  ;;  %v352_v49 = vld [vmem:[%s2599_s15 + $0x48] sm:$0xff]  ;;  %v353_v50 = vld [vmem:[%s2599_s15 + $0x50] sm:$0xff]  ;;  %v354_v51 = vld [vmem:[%s2599_s15 + $0x58] sm:$0xff] }
  0xa1   : > { %v355_v52 = vld [vmem:[%s2599_s15 + $0x60] sm:$0xff]  ;;  %v356_v53 = vld [vmem:[%s2599_s15 + $0x68] sm:$0xff]  ;;  %v357_v54 = vld [vmem:[%s2599_s15 + $0x70] sm:$0xff] }
  0xa2   : > { %1823 = vmatpush1.bf16.msra.mxu0 %v1822_v63  ;;  %v358_v55 = vld [vmem:[%s2599_s15 + $0x78] sm:$0xff]  ;;  %v889_v56 = vld [vmem:[#allocation7 + $0x128] sm:$0xff]  ;;  %v888_v59 = vld [vmem:[#allocation7 + $0x120] sm:$0xff]  ;;  %s2266_s15 = scalar_lea.vmem %s3247_s21, 2048 }
  0xa3   : > { %1825 = vmatprep.subr.bf16.mxu0 %v1824_v3  ;;  %1847 = vmatpush1.bf16.msra.mxu1 %v1846_v18  ;;  %v891_v57 = vld [vmem:[#allocation7 + $0x138] sm:$0xff]  ;;  %v890_v60 = vld [vmem:[#allocation7 + $0x130] sm:$0xff]  ;;  %v893_v62 = vld [vmem:[#allocation7 + $0x148] sm:$0xff]  ;;  %p2267_p10 = scmp.ne.s32.totalorder %s3247_s21, %s2266_s15  ;;  %p2274_p2 = scmp.lt.s32.totalorder %s2272_s9, %s2266_s15 }
  0xa4   : > { %1849 = vmatprep.subr.bf16.mxu1 %v1848_v19  ;;  %v1864_v58 = vpack.c.bf16 %v891_v57, %v889_v56  ;;  %v1866_v61 = vpack.c.bf16 %v890_v60, %v888_v59  ;;  %v895_v63 = vld [vmem:[#allocation7 + $0x158] sm:$0xff]  ;;  %v892_v2 = vld [vmem:[#allocation7 + $0x140] sm:$0xff]  ;;  %v894_v3 = vld [vmem:[#allocation7 + $0x150] sm:$0xff] }
  0xa5   : > { %v1868_v1 = vpack.c.bf16 %v895_v63, %v893_v62  ;;  %v1870_v4 = vpack.c.bf16 %v894_v3, %v892_v2  ;;  %v897_v5 = vld [vmem:[#allocation7 + $0x168] sm:$0xff]  ;;  %v896_v7 = vld [vmem:[#allocation7 + $0x160] sm:$0xff]  ;;  %v898_v8 = vld [vmem:[#allocation7 + $0x170] sm:$0xff]  ;;  %p2268_p3 = pnand %p2267_p10, %p2542_p5  ;;  %p2275_p1 = por %p2274_p2, %p2273_p12 }
  0xa6   : > { %1827 = vmatpush1.bf16.msra.mxu0 %v1826_v10  ;;  %v1874_v9 = vpack.c.bf16 %v898_v8, %v896_v7  ;;  %v901_v10 = vld [vmem:[#allocation7 + $0x188] sm:$0xff]  ;;  %v903_v11 = vld [vmem:[#allocation7 + $0x198] sm:$0xff]  ;;  %v900_v13 = vld [vmem:[#allocation7 + $0x180] sm:$0xff] }
  0xa7   : > { %1851 = vmatpush1.bf16.msra.mxu1 %v1850_v25  ;;  %v1876_v12 = vpack.c.bf16 %v903_v11, %v901_v10  ;;  %v902_v14 = vld [vmem:[#allocation7 + $0x190] sm:$0xff]  ;;  %v905_v16 = vld [vmem:[#allocation7 + $0x1a8] sm:$0xff]  ;;  %v904_v19 = vld [vmem:[#allocation7 + $0x1a0] sm:$0xff]  ;;  %p2269_p7 = pneg %p2268_p3 }
  0xa8   : > { %1853 = vmatprep.subr.bf16.mxu1 %v1852_v26  ;;  %v1878_v15 = vpack.c.bf16 %v902_v14, %v900_v13  ;;  %v906_v20 = vld [vmem:[#allocation7 + $0x1b0] sm:$0xff]  ;;  %v909_v22 = vld [vmem:[#allocation7 + $0x1c8] sm:$0xff]  ;;  %v911_v23 = vld [vmem:[#allocation7 + $0x1d8] sm:$0xff] }
  0xa9   : > { %468 = vmatmul.mubr.f32.vlgmr.msra.gmra.mrb[0].mxu0 %v343_v17  ;;  %v907_v17 = vld [vmem:[#allocation7 + $0x1b8] sm:$0xff]  ;;  %v1882_v21 = vpack.c.bf16 %v906_v20, %v904_v19  ;;  %v908_v25 = vld [vmem:[#allocation7 + $0x1c0] sm:$0xff]  ;;  %v910_v26 = vld [vmem:[#allocation7 + $0x1d0] sm:$0xff]  ;;  %p2276_p4 = pnand %p2275_p1, %p2269_p7 }
  0xaa   : > { %473 = vmatprep.mubr.f32.mxu0 %v2350_v0  ;;  %v1880_v18 = vpack.c.bf16 %v907_v17, %v905_v16  ;;  %v1886_v27 = vpack.c.bf16 %v910_v26, %v908_v25  ;;  %v913_v28 = vld [vmem:[#allocation7 + $0x1e8] sm:$0xff]  ;;  %v915_v29 = vld [vmem:[#allocation7 + $0x1f8] sm:$0xff]  ;;  %v1393_v34 = vld [vmem:[#allocation8 + $0x80] sm:$0xff] }
  0xab   : > { %1855 = vmatpush1.bf16.msra.mxu1 %v1854_v32  ;;  %v1888_v30 = vpack.c.bf16 %v915_v29, %v913_v28  ;;  %v914_v32 = vld [vmem:[#allocation7 + $0x1f0] sm:$0xff]  ;;  %v1394_v35 = vld [vmem:[#allocation8 + $0x88] sm:$0xff]  ;;  %v1377_v36 = vld [vmem:[#allocation8] sm:$0xff] }
  0xac   : > { %1857 = vmatprep.subr.bf16.mxu1 %v1856_v33  ;;  %v1892_v37 = vpack.c.bf16 %v1394_v35, %v1393_v34 }
  0xad   : > { %474 = vmatmul.mubr.f32.gmra.mrb[2].mxu0 %v344_v24  ;;  %v1884_v24 = vpack.c.bf16 %v911_v23, %v909_v22 }
  0xae   : > { %479 = vmatprep.mubr.f32.mxu0 %v2350_v0  ;;  %1893 = vmatprep.subr.bf16.mxu0 %v1892_v37 }
  0xaf   : > { %1859 = vmatpush1.bf16.msra.mxu1 %v1858_v39  ;;  %v1395_v39 = vld [vmem:[#allocation8 + $0x90] sm:$0xff] }
  0xb0   : > { %1861 = vmatprep.subr.bf16.mxu1 %v1860_v40  ;;  %v1396_v40 = vld [vmem:[#allocation8 + $0x98] sm:$0xff] }
  0xb1   : > { %480 = vmatmul.mubr.f32.gmra.mrb[4].mxu0 %v345_v31  ;;  %v912_v31 = vld [vmem:[#allocation7 + $0x1e0] sm:$0xff]  ;;  %v2647_v42 = vpack.c.bf16 %v1396_v40, %v1395_v39 }
  0xb2   : > { %485 = vmatprep.mubr.f32.mxu0 %v2350_v0  ;;  %v1890_v33 = vpack.c.bf16 %v914_v32, %v912_v31 }
  0xb3   : > { %1863 = vmatpush1.bf16.msra.mxu1 %v1862_v44  ;;  %v1380_v44 = vld [vmem:[#allocation8 + $0x18] sm:$0xff] }
  0xb4   : > { %1865 = vmatprep.subr.bf16.mxu1 %v1864_v58 }
  0xb5   : > { %486 = vmatmul.mubr.f32.gmra.mrb[6].mxu0 %v346_v38  ;;  %v1378_v38 = vld [vmem:[#allocation8 + $0x8] sm:$0xff] }
  0xb6   : > { %491 = vmatprep.mubr.f32.mxu0 %v2350_v0  ;;  %v2645_v41 = vpack.c.bf16 %v1378_v38, %v1377_v36 }
  0xb7   : > { %1867 = vmatpush1.bf16.msra.mxu1 %v1866_v61 }
  0xb8   : > { %1869 = vmatprep.subr.bf16.mxu1 %v1868_v1  ;;  %1895 = vmatpush3.bf16.msra.mxu0 %v2645_v41 }
  0xb9   : > { %492 = vmatmul.mubr.f32.gmra.mrb[8].mxu0 %v347_v43  ;;  %v1379_v43 = vld [vmem:[#allocation8 + $0x10] sm:$0xff]  ;;  %1897 = vmatprep.subr.bf16.mxu0 %v2647_v42 }
  0xba   : > { %497 = vmatprep.mubr.f32.mxu0 %v2350_v0 }
  0xbb   : > { %1871 = vmatpush1.bf16.msra.mxu1 %v1870_v4 }
  0xbd   : > { %498 = vmatmul.mubr.f32.gmra.mrb[10].mxu0 %v348_v45  ;;  %v1397_v45 = vld [vmem:[#allocation8 + $0xa0] sm:$0xff] }
  0xbe   : > { %503 = vmatprep.mubr.f32.mxu0 %v2350_v0 }
  0xc1   : > { %504 = vmatmul.mubr.f32.gmra.mrb[12].mxu0 %v349_v46  ;;  %v1398_v46 = vld [vmem:[#allocation8 + $0xa8] sm:$0xff] }
  0xc2   : > { %509 = vmatprep.mubr.f32.mxu0 %v2350_v0 }
  0xc5   : > { %510 = vmatmul.mubr.f32.gmra.mrb[14].mxu0 %v350_v47  ;;  %v2650_v47 = vpack.c.bf16 %v1380_v44, %v1379_v43 }
  0xc6   : > { %515 = vmatprep.mubr.f32.mxu0 %v2350_v0 }
  0xc7   : > { %1899 = vmatpush3.bf16.msra.mxu0 %v2650_v47 }
  0xc9   : > { %516 = vmatmul.mubr.f32.gmra.mrb[16].mxu0 %v351_v48  ;;  %v2653_v48 = vpack.c.bf16 %v1398_v46, %v1397_v45 }
  0xca   : > { %521 = vmatprep.mubr.f32.mxu0 %v2350_v0 }
  0xcb   : > { %1901 = vmatprep.subr.bf16.mxu0 %v2653_v48 }
  0xcd   : > { %522 = vmatmul.mubr.f32.gmra.mrb[18].mxu0 %v352_v49  ;;  %v1381_v49 = vld [vmem:[#allocation8 + $0x20] sm:$0xff] }
  0xce   : > { %527 = vmatprep.mubr.f32.mxu0 %v2350_v0 }
  0xd1   : > { %528 = vmatmul.mubr.f32.gmra.mrb[20].mxu0 %v353_v50  ;;  %v1382_v50 = vld [vmem:[#allocation8 + $0x28] sm:$0xff] }
  0xd2   : > { %533 = vmatprep.mubr.f32.mxu0 %v2350_v0 }
  0xd5   : > { %534 = vmatmul.mubr.f32.gmra.mrb[22].mxu0 %v354_v51  ;;  %v2656_v51 = vpack.c.bf16 %v1382_v50, %v1381_v49 }
  0xd6   : > { %539 = vmatprep.mubr.f32.mxu0 %v2350_v0 }
  0xd7   : > { %1903 = vmatpush3.bf16.msra.mxu0 %v2656_v51 }
  0xd9   : > { %540 = vmatmul.mubr.f32.gmra.mrb[24].mxu0 %v355_v52  ;;  %v393_v52 = vlaneseq }
  0xda   : > { %545 = vmatprep.mubr.f32.mxu0 %v2350_v0 }
  0xdd   : > { %546 = vmatmul.mubr.f32.gmra.mrb[26].mxu0 %v356_v53  ;;  %v2660_v53 = vshrl.u32 %v393_v52, 7 }
  0xde   : > { %551 = vmatprep.mubr.f32.mxu0 %v2350_v0 }
  0xdf   : > { %v399_v56 = vsub.s32 1, %v2660_v53 }
  0xe1   : > { %552 = vmatmul.mubr.f32.gmra.mrb[28].mxu0 %v357_v54  ;;  %v395_v54 = vsub.s32 0, %v2660_v53 }
  0xe2   : > { %557 = vmatprep.mubr.f32.mxu0 %v2350_v0  ;;  %v899_v0 = vld [vmem:[#allocation7 + $0x178] sm:$0xff] }
  0xe3   : > { %v1872_v6 = vpack.c.bf16 %v899_v0, %v897_v5 }
  0xe5   : > { %558 = vmatmul.mubr.f32.gmra.mrb[30].mxu0 %v358_v55  ;;  %1873 = vmatprep.subr.bf16.mxu1 %v1872_v6  ;;  %v391_v55 = vld [vmem:[%s3295_s2] sm:$0x3] }
  0xe6   : > { %1875 = vmatpush1.bf16.msra.mxu1 %v1874_v9  ;;  %v2669_v57 = vrot.slane %v391_v55, %v395_v54  ;;  %v2673_v58 = vrot.slane %v391_v55, %v399_v56 }
  0xe7   : > { %1877 = vmatprep.subr.bf16.mxu1 %v1876_v12 }
  0xea   : > { %1879 = vmatpush1.bf16.msra.mxu1 %v1878_v15 }
  0xeb   : > { %1881 = vmatprep.subr.bf16.mxu1 %v1880_v18 }
  0xee   : > { %1883 = vmatpush1.bf16.msra.mxu1 %v1882_v21 }
  0xef   : > { %1885 = vmatprep.subr.bf16.mxu1 %v1884_v24 }
  0xf2   : > { %1887 = vmatpush1.bf16.msra.mxu1 %v1886_v27 }
  0xf3   : > { %1889 = vmatprep.subr.bf16.mxu1 %v1888_v30 }
  0xf6   : > { %1891 = vmatpush1.bf16.msra.mxu1 %v1890_v33 }
  0xf7   : > { %1924 = vmatprep.subr.bf16.mxu1 %v1892_v37 }
 0x17c   : > { %v469_v59 = vpop.f32.mrb[0].mxu0 }
 0x17d   : > { %v470_v60 = vadd.f32 %v469_v59, %v2669_v57  ;;  %v471_v61 = vpop.f32.mrb[1].mxu0 }
 0x17e   : > { %v472_v62 = vadd.f32 %v471_v61, %v2673_v58 }
 0x17f   : > { %v596_v63 = vmul.f32 0.044715, %v470_v60  ;;  %v564_v55 = vmul.f32 0.5, %v470_v60 }
 0x180   : > { %v475_v1 = vpop.f32.mrb[2].mxu0  ;;  %v597_v2 = vmul.f32 0.044715, %v472_v62 }
 0x181   : > { %v628_v3 = vmul.f32 %v596_v63, %v470_v60  ;;  %v2678_v4 = vadd.f32 %v475_v1, %v2669_v57  ;;  %v477_v5 = vpop.f32.mrb[3].mxu0 }
 0x182   : > { %v2681_v0 = vadd.f32 %v477_v5, %v2673_v58  ;;  %v629_v6 = vmul.f32 %v597_v2, %v472_v62  ;;  %v565_v2 = vmul.f32 0.5, %v472_v62 }
 0x183   : > { %v598_v7 = vmul.f32 0.044715, %v2678_v4  ;;  %v660_v8 = vmul.f32 %v628_v3, %v470_v60 }
 0x184   : > { %v599_v9 = vmul.f32 0.044715, %v2681_v0  ;;  %v481_v10 = vpop.f32.mrb[4].mxu0  ;;  %v661_v11 = vmul.f32 %v629_v6, %v472_v62 }
 0x185   : > { %v630_v12 = vmul.f32 %v598_v7, %v2678_v4  ;;  %v2687_v13 = vadd.f32 %v481_v10, %v2669_v57  ;;  %v483_v14 = vpop.f32.mrb[5].mxu0  ;;  %v692_v15 = vadd.f32 %v660_v8, %v470_v60 }
 0x186   : > { %v631_v16 = vmul.f32 %v599_v9, %v2681_v0  ;;  %v2691_v17 = vadd.f32 %v483_v14, %v2673_v58  ;;  %v693_v18 = vadd.f32 %v661_v11, %v472_v62  ;;  %v566_v14 = vmul.f32 0.5, %v2678_v4 }
 0x187   : > { %v600_v19 = vmul.f32 0.044715, %v2687_v13  ;;  %v724_v20 = vmul.f32 0.7978846, %v692_v15  ;;  %v662_v21 = vmul.f32 %v630_v12, %v2678_v4 }
 0x188   : > { %v601_v22 = vmul.f32 0.044715, %v2691_v17  ;;  %v487_v23 = vpop.f32.mrb[6].mxu0  ;;  %v725_v24 = vmul.f32 0.7978846, %v693_v18  ;;  %v663_v25 = vmul.f32 %v631_v16, %v2681_v0 }
 0x189   : > { %v632_v26 = vmul.f32 %v600_v19, %v2687_v13  ;;  %v2699_v27 = vadd.f32 %v487_v23, %v2669_v57  ;;  %v489_v28 = vpop.f32.mrb[7].mxu0  ;;  %2024 = vtanh.f32 %v724_v20  ;;  %v694_v29 = vadd.f32 %v662_v21, %v2678_v4 }
 0x18a   : > { %v633_v30 = vmul.f32 %v601_v22, %v2691_v17  ;;  %v2704_v31 = vadd.f32 %v489_v28, %v2673_v58  ;;  %2026 = vtanh.f32 %v725_v24  ;;  %v695_v32 = vadd.f32 %v663_v25, %v2681_v0 }
 0x18b   : > { %v602_v33 = vmul.f32 0.044715, %v2699_v27  ;;  %v726_v34 = vmul.f32 0.7978846, %v694_v29  ;;  %v664_v35 = vmul.f32 %v632_v26, %v2687_v13  ;;  %v567_v28 = vmul.f32 0.5, %v2681_v0 }
 0x18c   : > { %v603_v36 = vmul.f32 0.044715, %v2704_v31  ;;  %v493_v37 = vpop.f32.mrb[8].mxu0  ;;  %v727_v38 = vmul.f32 0.7978846, %v695_v32  ;;  %v665_v39 = vmul.f32 %v633_v30, %v2691_v17  ;;  %v568_v30 = vmul.f32 0.5, %v2687_v13 }
 0x18d   : > { %v634_v40 = vmul.f32 %v602_v33, %v2699_v27  ;;  %v2713_v43 = vadd.f32 %v493_v37, %v2669_v57  ;;  %v495_v44 = vpop.f32.mrb[9].mxu0  ;;  %2028 = vtanh.f32 %v726_v34  ;;  %v696_v45 = vadd.f32 %v664_v35, %v2687_v13 }
 0x18e   : > { %v635_v46 = vmul.f32 %v603_v36, %v2704_v31  ;;  %v2718_v49 = vadd.f32 %v495_v44, %v2673_v58  ;;  %2030 = vtanh.f32 %v727_v38  ;;  %v697_v50 = vadd.f32 %v665_v39, %v2691_v17 }
 0x18f   : > { %v604_v52 = vmul.f32 0.044715, %v2713_v43  ;;  %v728_v59 = vmul.f32 0.7978846, %v696_v45  ;;  %v666_v61 = vmul.f32 %v634_v40, %v2699_v27 }
 0x190   : > { %v605_v63 = vmul.f32 0.044715, %v2718_v49  ;;  %v499_v1 = vpop.f32.mrb[10].mxu0  ;;  %v729_v3 = vmul.f32 0.7978846, %v697_v50  ;;  %v667_v5 = vmul.f32 %v635_v46, %v2704_v31 }
 0x191   : > { %v636_v6 = vmul.f32 %v604_v52, %v2713_v43  ;;  %v2727_v7 = vadd.f32 %v499_v1, %v2669_v57  ;;  %v501_v8 = vpop.f32.mrb[11].mxu0  ;;  %2032 = vtanh.f32 %v728_v59  ;;  %v698_v9 = vadd.f32 %v666_v61, %v2699_v27 }
 0x192   : > { %v637_v60 = vmul.f32 %v605_v63, %v2718_v49  ;;  %v2732_v10 = vadd.f32 %v501_v8, %v2673_v58  ;;  %2034 = vtanh.f32 %v729_v3  ;;  %v699_v62 = vadd.f32 %v667_v5, %v2704_v31 }
 0x193   : > { %v2025_v11 = vpop.eup %2024  ;;  %v606_v12 = vmul.f32 0.044715, %v2727_v7  ;;  %v730_v15 = vmul.f32 0.7978846, %v698_v9  ;;  %v668_v16 = vmul.f32 %v636_v6, %v2713_v43 }
 0x194   : > { %v2027_v18 = vpop.eup %2026  ;;  %v607_v19 = vmul.f32 0.044715, %v2732_v10  ;;  %v505_v20 = vpop.f32.mrb[12].mxu0  ;;  %v788_v21 = vadd.f32 1.0, %v2025_v11  ;;  %v731_v22 = vmul.f32 0.7978846, %v699_v62  ;;  %v669_v23 = vmul.f32 %v637_v60, %v2718_v49 }
 0x195   : > { %v2741_v24 = vadd.f32 %v505_v20, %v2669_v57  ;;  %v507_v25 = vpop.f32.mrb[13].mxu0  ;;  %v789_v26 = vadd.f32 1.0, %v2027_v18  ;;  %2036 = vtanh.f32 %v730_v15  ;;  %v638_v33 = vmul.f32 %v606_v12, %v2727_v7 }
 0x196   : > { %v639_v4 = vmul.f32 %v607_v19, %v2732_v10  ;;  %v2746_v29 = vadd.f32 %v507_v25, %v2673_v58  ;;  %2038 = vtanh.f32 %v731_v22  ;;  %v701_v35 = vadd.f32 %v669_v23, %v2718_v49 }
 0x197   : > { %v2029_v32 = vpop.eup %2028  ;;  %v821_v34 = vmul.f32 %v789_v26, %v565_v2  ;;  %v700_v36 = vadd.f32 %v668_v16, %v2713_v43  ;;  %v820_v39 = vmul.f32 %v788_v21, %v564_v55  ;;  %v608_v45 = vmul.f32 0.044715, %v2741_v24 }
 0x198   : > { %v2031_v37 = vpop.eup %2030  ;;  %v609_v0 = vmul.f32 0.044715, %v2746_v29  ;;  %v511_v38 = vpop.f32.mrb[14].mxu0  ;;  %v790_v40 = vadd.f32 1.0, %v2029_v32  ;;  %v671_v44 = vmul.f32 %v639_v4, %v2732_v10  ;;  %v733_v50 = vmul.f32 0.7978846, %v701_v35 }
 0x199   : > { %v513_v13 = vpop.f32.mrb[15].mxu0  ;;  %992 = vmatprep.mubr.f32.mxu1 %v821_v34  ;;  %v791_v46 = vadd.f32 1.0, %v2031_v37  ;;  %v2757_v59 = vadd.f32 %v511_v38, %v2669_v57  ;;  %v732_v63 = vmul.f32 0.7978846, %v700_v36  ;;  %v670_v60 = vmul.f32 %v638_v33, %v2727_v7 }
 0x19a   : > { %v641_v52 = vmul.f32 %v609_v0, %v2746_v29  ;;  %v2760_v61 = vadd.f32 %v513_v13, %v2673_v58  ;;  %993 = vmatmul.mubr.f32.vlgmr.msra.gmra.mrb[0].mxu1 %v820_v39  ;;  %v822_v2 = vmul.f32 %v790_v40, %v566_v14  ;;  %2040 = vtanh.f32 %v733_v50 }
 0x19b   : > { %v2033_v55 = vpop.eup %2032  ;;  %v823_v1 = vmul.f32 %v791_v46, %v567_v28  ;;  %v703_v3 = vadd.f32 %v671_v44, %v2732_v10  ;;  %1932 = vmatpush3.bf16.msra.mxu1 %v2645_v41  ;;  %2042 = vtanh.f32 %v732_v63  ;;  %v569_v12 = vmul.f32 0.5, %v2691_v17 }
 0x19c   : > { %v2035_v5 = vpop.eup %2034  ;;  %v611_v6 = vmul.f32 0.044715, %v2760_v61  ;;  %v517_v8 = vpop.f32.mrb[16].mxu0  ;;  %v792_v9 = vadd.f32 1.0, %v2033_v55  ;;  %1925 = vmatprep.subr.bf16.mxu1 %v2647_v42  ;;  %v640_v41 = vmul.f32 %v608_v45, %v2741_v24  ;;  %v570_v18 = vmul.f32 0.5, %v2699_v27 }
 0x19d   : > { %v2768_v62 = vadd.f32 %v517_v8, %v2669_v57  ;;  %v519_v11 = vpop.f32.mrb[17].mxu0  ;;  %998 = vmatprep.mubr.f32.mxu1 %v823_v1  ;;  %v793_v14 = vadd.f32 1.0, %v2035_v5  ;;  %v735_v15 = vmul.f32 0.7978846, %v703_v3  ;;  %v702_v19 = vadd.f32 %v670_v60, %v2727_v7 }
 0x19e   : > { %v2773_v16 = vadd.f32 %v519_v11, %v2673_v58  ;;  %999 = vmatmul.mubr.f32.gmra.mrb[2].mxu1 %v822_v2  ;;  %v610_v20 = vmul.f32 0.044715, %v2757_v59  ;;  %v643_v21 = vmul.f32 %v611_v6, %v2760_v61  ;;  %v824_v25 = vmul.f32 %v792_v9, %v568_v30 }
 0x19f   : > { %v2037_v42 = vpop.eup %2036  ;;  %v825_v22 = vmul.f32 %v793_v14, %v569_v12  ;;  %2044 = vtanh.f32 %v735_v15  ;;  %1933 = vmatpush3.bf16.msra.mxu1 %v2650_v47  ;;  %v734_v28 = vmul.f32 0.7978846, %v702_v19  ;;  %v673_v4 = vmul.f32 %v641_v52, %v2746_v29 }
 0x1a0   : > { %v2039_v17 = vpop.eup %2038  ;;  %v523_v23 = vpop.f32.mrb[18].mxu0  ;;  %v794_v26 = vadd.f32 1.0, %v2037_v42  ;;  %1926 = vmatprep.subr.bf16.mxu1 %v2653_v48  ;;  %v612_v27 = vmul.f32 0.044715, %v2768_v62  ;;  %v571_v33 = vmul.f32 0.5, %v2704_v31  ;;  %v572_v35 = vmul.f32 0.5, %v2713_v43 }
 0x1a1   : > { %v525_v32 = vpop.f32.mrb[19].mxu0  ;;  %1004 = vmatprep.mubr.f32.mxu1 %v825_v22  ;;  %v795_v34 = vadd.f32 1.0, %v2039_v17  ;;  %v613_v47 = vmul.f32 0.044715, %v2773_v16  ;;  %v573_v30 = vmul.f32 0.5, %v2718_v49  ;;  %v2788_v36 = vmul.f32 0.5, %v2727_v7 }
 0x1a2   : > { %1005 = vmatmul.mubr.f32.gmra.mrb[4].mxu1 %v824_v25  ;;  %2046 = vtanh.f32 %v734_v28  ;;  %v575_v48 = vmul.f32 0.5, %v2732_v10  ;;  %v705_v0 = vadd.f32 %v673_v4, %v2746_v29  ;;  %v672_v38 = vmul.f32 %v640_v41, %v2741_v24 }
 0x1a3   : > { %v827_v37 = vmul.f32 %v795_v34, %v571_v33  ;;  %1934 = vmatpush3.bf16.msra.mxu1 %v2656_v51  ;;  %v642_v31 = vmul.f32 %v610_v20, %v2757_v59  ;;  %v2796_v43 = vadd.f32 %v525_v32, %v2673_v58  ;;  %v826_v49 = vmul.f32 %v794_v26, %v570_v18 }
 0x1a4   : > { %v529_v39 = vpop.f32.mrb[20].mxu0  ;;  %v675_v7 = vmul.f32 %v643_v21, %v2760_v61  ;;  %v2041_v40 = vpop.eup %2040  ;;  %v644_v44 = vmul.f32 %v612_v27, %v2768_v62  ;;  %v2801_v10 = vadd.f32 %v523_v23, %v2669_v57  ;;  %v737_v13 = vmul.f32 0.7978846, %v705_v0 }
 0x1a5   : > { %v531_v45 = vpop.f32.mrb[21].mxu0  ;;  %1010 = vmatprep.mubr.f32.mxu1 %v827_v37  ;;  %v704_v51 = vadd.f32 %v672_v38, %v2741_v24  ;;  %v2043_v46 = vpop.eup %2042  ;;  %v645_v50 = vmul.f32 %v613_v47, %v2773_v16  ;;  %v2806_v52 = vadd.f32 %v529_v39, %v2669_v57  ;;  %v797_v63 = vadd.f32 1.0, %v2041_v40 }
 0x1a6   : > { %1011 = vmatmul.mubr.f32.gmra.mrb[6].mxu1 %v826_v49  ;;  %v707_v55 = vadd.f32 %v675_v7, %v2760_v61  ;;  %v2810_v1 = vadd.f32 %v531_v45, %v2673_v58  ;;  %v796_v2 = vadd.f32 1.0, %v2043_v46  ;;  %2048 = vtanh.f32 %v737_v13 }
 0x1a7   : > { %v736_v3 = vmul.f32 0.7978846, %v704_v51  ;;  %v615_v5 = vmul.f32 0.044715, %v2796_v43  ;;  %v829_v8 = vmul.f32 %v797_v63, %v573_v30  ;;  %v674_v60 = vmul.f32 %v642_v31, %v2757_v59 }
 0x1a8   : > { %v535_v6 = vpop.f32.mrb[22].mxu0  ;;  %v739_v9 = vmul.f32 0.7978846, %v707_v55  ;;  %v614_v12 = vmul.f32 0.044715, %v2801_v10  ;;  %v828_v15 = vmul.f32 %v796_v2, %v572_v35  ;;  %v577_v41 = vmul.f32 0.5, %v2746_v29 }
 0x1a9   : > { %v2045_v11 = vpop.eup %2044  ;;  %v537_v14 = vpop.f32.mrb[23].mxu0  ;;  %2050 = vtanh.f32 %v736_v3  ;;  %v616_v18 = vmul.f32 0.044715, %v2806_v52  ;;  %1016 = vmatprep.mubr.f32.mxu1 %v829_v8  ;;  %v576_v42 = vmul.f32 0.5, %v2741_v24  ;;  %v617_v20 = vmul.f32 0.044715, %v2810_v1 }
 0x1aa   : > { %v799_v19 = vadd.f32 1.0, %v2045_v11  ;;  %2052 = vtanh.f32 %v739_v9  ;;  %v2820_v21 = vadd.f32 %v535_v6, %v2669_v57  ;;  %1017 = vmatmul.mubr.f32.gmra.mrb[8].mxu1 %v828_v15  ;;  %v706_v22 = vadd.f32 %v674_v60, %v2757_v59 }
 0x1ab   : > { %v677_v17 = vmul.f32 %v645_v50, %v2773_v16  ;;  %v647_v29 = vmul.f32 %v615_v5, %v2796_v43  ;;  %v2826_v25 = vadd.f32 %v537_v14, %v2673_v58  ;;  %v676_v24 = vmul.f32 %v644_v44, %v2768_v62 }
 0x1ac   : > { %v2047_v23 = vpop.eup %2046  ;;  %v541_v26 = vpop.f32.mrb[24].mxu0  ;;  %v831_v28 = vmul.f32 %v799_v19, %v575_v48  ;;  %v646_v4 = vmul.f32 %v614_v12, %v2801_v10  ;;  %v579_v33 = vmul.f32 0.5, %v2760_v61  ;;  %v738_v34 = vmul.f32 0.7978846, %v706_v22 }
 0x1ad   : > { %v543_v27 = vpop.f32.mrb[25].mxu0  ;;  %v798_v32 = vadd.f32 1.0, %v2047_v23  ;;  %v648_v35 = vmul.f32 %v616_v18, %v2806_v52  ;;  %v2833_v47 = vmul.f32 0.5, %v2757_v59  ;;  %v709_v30 = vadd.f32 %v677_v17, %v2773_v16 }
 0x1ae   : > { %1022 = vmatprep.mubr.f32.mxu1 %v831_v28  ;;  %v708_v37 = vadd.f32 %v676_v24, %v2768_v62  ;;  %v649_v48 = vmul.f32 %v617_v20, %v2810_v1  ;;  %v618_v0 = vmul.f32 0.044715, %v2820_v21  ;;  %2054 = vtanh.f32 %v738_v34 }
 0x1af   : > { %v830_v38 = vmul.f32 %v798_v32, %v2788_v36  ;;  %v619_v61 = vmul.f32 0.044715, %v2826_v25  ;;  %v2842_v39 = vmul.f32 0.5, %v2773_v16  ;;  %v741_v49 = vmul.f32 0.7978846, %v709_v30 }
 0x1b0   : > { %v547_v31 = vpop.f32.mrb[26].mxu0  ;;  %v679_v59 = vmul.f32 %v647_v29, %v2796_v43  ;;  %v2049_v7 = vpop.eup %2048  ;;  %v2846_v40 = vadd.f32 %v541_v26, %v2669_v57  ;;  %v740_v36 = vmul.f32 0.7978846, %v708_v37  ;;  %v678_v13 = vmul.f32 %v646_v4, %v2801_v10 }
 0x1b1   : > { %1023 = vmatmul.mubr.f32.gmra.mrb[10].mxu1 %v830_v38  ;;  %v2849_v44 = vadd.f32 %v547_v31, %v2669_v57  ;;  %v549_v45 = vpop.f32.mrb[27].mxu0  ;;  %v2853_v51 = vadd.f32 %v543_v27, %v2673_v58  ;;  %v801_v16 = vadd.f32 1.0, %v2049_v7  ;;  %2056 = vtanh.f32 %v741_v49 }
 0x1b2   : > { %v2856_v46 = vmul.f32 0.5, %v2768_v62  ;;  %v650_v63 = vmul.f32 %v618_v0, %v2820_v21  ;;  %2058 = vtanh.f32 %v740_v36  ;;  %v711_v55 = vadd.f32 %v679_v59, %v2796_v43 }
 0x1b3   : > { %v2051_v50 = vpop.eup %2050  ;;  %v710_v2 = vadd.f32 %v678_v13, %v2801_v10  ;;  %v651_v5 = vmul.f32 %v619_v61, %v2826_v25  ;;  %v2863_v6 = vadd.f32 %v549_v45, %v2673_v58  ;;  %v833_v8 = vmul.f32 %v801_v16, %v577_v41 }
 0x1b4   : > { %v2053_v3 = vpop.eup %2052  ;;  %v800_v9 = vadd.f32 1.0, %v2051_v50  ;;  %v553_v60 = vpop.f32.mrb[28].mxu0  ;;  %v620_v62 = vmul.f32 0.044715, %v2846_v40  ;;  %v743_v15 = vmul.f32 0.7978846, %v711_v55  ;;  %v681_v23 = vmul.f32 %v649_v48, %v2810_v1 }
 0x1b5   : > { %v2867_v11 = vadd.f32 %v553_v60, %v2669_v57  ;;  %v555_v12 = vpop.f32.mrb[29].mxu0  ;;  %v803_v14 = vadd.f32 1.0, %v2053_v3  ;;  %v621_v18 = vmul.f32 0.044715, %v2853_v51  ;;  %1028 = vmatprep.mubr.f32.mxu1 %v833_v8  ;;  %v742_v22 = vmul.f32 0.7978846, %v710_v2 }
 0x1b6   : > { %v832_v19 = vmul.f32 %v800_v9, %v576_v42  ;;  %v2871_v20 = vadd.f32 %v555_v12, %v2673_v58  ;;  %v622_v41 = vmul.f32 0.044715, %v2849_v44  ;;  %2060 = vtanh.f32 %v743_v15 }
 0x1b7   : > { %v835_v17 = vmul.f32 %v803_v14, %v579_v33  ;;  %v623_v29 = vmul.f32 0.044715, %v2863_v6  ;;  %v583_v28 = vmul.f32 0.5, %v2796_v43  ;;  %2062 = vtanh.f32 %v742_v22 }
 0x1b8   : > { %1029 = vmatmul.mubr.f32.gmra.mrb[12].mxu1 %v832_v19  ;;  %v559_v26 = vpop.f32.mrb[30].mxu0  ;;  %v680_v24 = vmul.f32 %v648_v35, %v2806_v52  ;;  %v2055_v42 = vpop.eup %2054  ;;  %v652_v4 = vmul.f32 %v620_v62, %v2846_v40  ;;  %v582_v33 = vmul.f32 0.5, %v2801_v10  ;;  %v713_v34 = vadd.f32 %v681_v23, %v2810_v1 }
 0x1b9   : > { %1034 = vmatprep.mubr.f32.mxu1 %v835_v17  ;;  %v2880_v27 = vadd.f32 %v559_v26, %v2669_v57  ;;  %v561_v32 = vpop.f32.mrb[31].mxu0  ;;  %v653_v30 = vmul.f32 %v621_v18, %v2853_v51  ;;  %v802_v37 = vadd.f32 1.0, %v2055_v42  ;;  %v654_v48 = vmul.f32 %v622_v41, %v2849_v44 }
 0x1ba   : > { %v2886_v43 = vadd.f32 %v561_v32, %v2673_v58  ;;  %v712_v35 = vadd.f32 %v680_v24, %v2806_v52  ;;  %v625_v0 = vmul.f32 0.044715, %v2871_v20  ;;  %v745_v38 = vmul.f32 0.7978846, %v713_v34 }
 0x1bb   : > { %v683_v57 = vmul.f32 %v651_v5, %v2826_v25  ;;  %v2057_v61 = vpop.eup %2056  ;;  %v655_v10 = vmul.f32 %v623_v29, %v2863_v6  ;;  %v834_v31 = vmul.f32 %v802_v37, %v2833_v47  ;;  %v682_v59 = vmul.f32 %v650_v63, %v2820_v21 }
 0x1bc   : > { %v744_v49 = vmul.f32 0.7978846, %v712_v35  ;;  %v2059_v7 = vpop.eup %2058  ;;  %v624_v58 = vmul.f32 0.044715, %v2867_v11  ;;  %v805_v45 = vadd.f32 1.0, %v2057_v61  ;;  %2064 = vtanh.f32 %v745_v38 }
 0x1bd   : > { %v715_v36 = vadd.f32 %v683_v57, %v2826_v25  ;;  %1035 = vmatmul.mubr.f32.gmra.mrb[14].mxu1 %v834_v31  ;;  %v627_v13 = vmul.f32 0.044715, %v2886_v43  ;;  %v804_v16 = vadd.f32 1.0, %v2059_v7  ;;  %v714_v50 = vadd.f32 %v682_v59, %v2820_v21 }
 0x1be   : > { %2066 = vtanh.f32 %v744_v49  ;;  %v657_v55 = vmul.f32 %v625_v0, %v2871_v20  ;;  %v837_v47 = vmul.f32 %v805_v45, %v2842_v39  ;;  %v685_v63 = vmul.f32 %v653_v30, %v2853_v51 }
 0x1bf   : > { %v747_v2 = vmul.f32 0.7978846, %v715_v36  ;;  %v626_v3 = vmul.f32 0.044715, %v2880_v27  ;;  %v836_v5 = vmul.f32 %v804_v16, %v2856_v46  ;;  %v746_v8 = vmul.f32 0.7978846, %v714_v50 }
 0x1c0   : > { %v684_v9 = vmul.f32 %v652_v4, %v2846_v40  ;;  %v2061_v60 = vpop.eup %2060  ;;  %v656_v62 = vmul.f32 %v624_v58, %v2867_v11  ;;  %1040 = vmatprep.mubr.f32.mxu1 %v837_v47  ;;  %v717_v12 = vadd.f32 %v685_v63, %v2853_v51  ;;  %v687_v14 = vmul.f32 %v655_v10, %v2863_v6 }
 0x1c1   : > { %2068 = vtanh.f32 %v747_v2  ;;  %v2063_v39 = vpop.eup %2062  ;;  %v659_v15 = vmul.f32 %v627_v13, %v2886_v43  ;;  %1041 = vmatmul.mubr.f32.gmra.mrb[16].mxu1 %v836_v5  ;;  %v807_v18 = vadd.f32 1.0, %v2061_v60  ;;  %v686_v17 = vmul.f32 %v654_v48, %v2849_v44 }
 0x1c2   : > { %2070 = vtanh.f32 %v746_v8  ;;  %v716_v46 = vadd.f32 %v684_v9, %v2846_v40  ;;  %v806_v19 = vadd.f32 1.0, %v2063_v39  ;;  %v749_v22 = vmul.f32 0.7978846, %v717_v12 }
 0x1c3   : > { %v719_v41 = vadd.f32 %v687_v14, %v2863_v6  ;;  %v658_v23 = vmul.f32 %v626_v3, %v2880_v27  ;;  %v839_v29 = vmul.f32 %v807_v18, %v583_v28  ;;  %v689_v24 = vmul.f32 %v657_v55, %v2871_v20 }
 0x1c4   : > { %v748_v26 = vmul.f32 0.7978846, %v716_v46  ;;  %v838_v42 = vmul.f32 %v806_v19, %v582_v33  ;;  %2072 = vtanh.f32 %v749_v22  ;;  %v718_v32 = vadd.f32 %v686_v17, %v2849_v44 }
 0x1c5   : > { %v751_v4 = vmul.f32 0.7978846, %v719_v41  ;;  %1046 = vmatprep.mubr.f32.mxu1 %v839_v29  ;;  %v721_v34 = vadd.f32 %v689_v24, %v2871_v20  ;;  %v688_v30 = vmul.f32 %v656_v62, %v2867_v11  ;;  %v585_v35 = vmul.f32 0.5, %v2810_v1 }
 0x1c6   : > { %2074 = vtanh.f32 %v748_v26  ;;  %v2065_v37 = vpop.eup %2064  ;;  %1047 = vmatmul.mubr.f32.gmra.mrb[18].mxu1 %v838_v42  ;;  %v750_v28 = vmul.f32 0.7978846, %v718_v32  ;;  %v691_v48 = vmul.f32 %v659_v15, %v2886_v43  ;;  %v584_v38 = vmul.f32 0.5, %v2806_v52 }
 0x1c7   : > { %2076 = vtanh.f32 %v751_v4  ;;  %v809_v33 = vadd.f32 1.0, %v2065_v37  ;;  %v753_v57 = vmul.f32 0.7978846, %v721_v34  ;;  %v720_v61 = vadd.f32 %v688_v30, %v2867_v11  ;;  %v1399_v37 = vld [vmem:[#allocation8 + $0xb0] sm:$0xff] }
 0x1c8   : > { %v2067_v0 = vpop.eup %2066  ;;  %2078 = vtanh.f32 %v750_v28  ;;  %v723_v31 = vadd.f32 %v691_v48, %v2886_v43  ;;  %v690_v49 = vmul.f32 %v658_v23, %v2880_v27  ;;  %v587_v52 = vmul.f32 0.5, %v2826_v25  ;;  %v1383_v28 = vld [vmem:[#allocation8 + $0x30] sm:$0xff] }
 0x1c9   : > { %v808_v10 = vadd.f32 1.0, %v2067_v0  ;;  %v841_v59 = vmul.f32 %v809_v33, %v585_v35  ;;  %2080 = vtanh.f32 %v753_v57  ;;  %v752_v1 = vmul.f32 0.7978846, %v720_v61  ;;  %v1400_v35 = vld [vmem:[#allocation8 + $0xb8] sm:$0xff]  ;;  %v1402_v33 = vld [vmem:[#allocation8 + $0xc8] sm:$0xff] }
 0x1ca   : > { %v755_v45 = vmul.f32 0.7978846, %v723_v31  ;;  %v722_v36 = vadd.f32 %v690_v49, %v2880_v27  ;;  %v586_v50 = vmul.f32 0.5, %v2820_v21  ;;  %v589_v8 = vmul.f32 0.5, %v2853_v51  ;;  %v1386_v61 = vld [vmem:[#allocation8 + $0x48] sm:$0xff]  ;;  %v1404_v31 = vld [vmem:[#allocation8 + $0xd8] sm:$0xff] }
 0x1cb   : > { %v2069_v7 = vpop.eup %2068  ;;  %v840_v58 = vmul.f32 %v808_v10, %v584_v38  ;;  %1052 = vmatprep.mubr.f32.mxu1 %v841_v59  ;;  %2082 = vtanh.f32 %v752_v1  ;;  %v588_v25 = vmul.f32 0.5, %v2846_v40  ;;  %v591_v21 = vmul.f32 0.5, %v2863_v6  ;;  %v1385_v38 = vld [vmem:[#allocation8 + $0x40] sm:$0xff]  ;;  %v1387_v49 = vld [vmem:[#allocation8 + $0x50] sm:$0xff]  ;;  %v1388_v1 = vld [vmem:[#allocation8 + $0x58] sm:$0xff] }
 0x1cc   : > { %v2071_v13 = vpop.eup %2070  ;;  %v811_v16 = vadd.f32 1.0, %v2069_v7  ;;  %2084 = vtanh.f32 %v755_v45  ;;  %v754_v47 = vmul.f32 0.7978846, %v722_v36  ;;  %v590_v22 = vmul.f32 0.5, %v2849_v44  ;;  %v1406_v45 = vld [vmem:[#allocation8 + $0xe8] sm:$0xff]  ;;  %v1389_v36 = vld [vmem:[#allocation8 + $0x60] sm:$0xff] }
 0x1cd   : > { %1053 = vmatmul.mubr.f32.gmra.mrb[20].mxu1 %v840_v58  ;;  %v810_v55 = vadd.f32 1.0, %v2071_v13  ;;  %v593_v51 = vmul.f32 0.5, %v2871_v20  ;;  %v595_v6 = vmul.f32 0.5, %v2886_v43  ;;  %v592_v4 = vmul.f32 0.5, %v2867_v11  ;;  %v1384_v43 = vld [vmem:[#allocation8 + $0x38] sm:$0xff]  ;;  %v1401_v11 = vld [vmem:[#allocation8 + $0xc0] sm:$0xff] }
 0x1ce   : > { %v843_v2 = vmul.f32 %v811_v16, %v587_v52  ;;  %v2073_v63 = vpop.eup %2072  ;;  %2086 = vtanh.f32 %v754_v47  ;;  %v594_v20 = vmul.f32 0.5, %v2880_v27  ;;  %v1904_v48 = vpack.c.bf16 %v1400_v35, %v1399_v37  ;;  %v1403_v27 = vld [vmem:[#allocation8 + $0xd0] sm:$0xff]  ;;  %v1405_v58 = vld [vmem:[#allocation8 + $0xe0] sm:$0xff]  ;;  %v1390_v52 = vld [vmem:[#allocation8 + $0x68] sm:$0xff] }
 0x1cf   : > { %v842_v3 = vmul.f32 %v810_v55, %v586_v50  ;;  %v813_v9 = vadd.f32 1.0, %v2073_v63  ;;  %v1906_v0 = vpack.c.bf16 %v1384_v43, %v1383_v28  ;;  %v1908_v57 = vpack.c.bf16 %v1402_v33, %v1401_v11  ;;  %v1407_v50 = vld [vmem:[#allocation8 + $0xf0] sm:$0xff]  ;;  %v1408_v55 = vld [vmem:[#allocation8 + $0xf8] sm:$0xff] }
 0x1d0   : > { %v2075_v5 = vpop.eup %2074  ;;  %1058 = vmatprep.mubr.f32.mxu1 %v843_v2  ;;  %1905 = vmatprep.subr.bf16.mxu0 %v1904_v48  ;;  %v1910_v10 = vpack.c.bf16 %v1386_v61, %v1385_v38  ;;  %v1912_v59 = vpack.c.bf16 %v1404_v31, %v1403_v27  ;;  %v1914_v7 = vpack.c.bf16 %v1388_v1, %v1387_v49  ;;  %v1391_v47 = vld [vmem:[#allocation8 + $0x70] sm:$0xff]  ;;  %v1392_v63 = vld [vmem:[#allocation8 + $0x78] sm:$0xff] }
 0x1d1   : > { %v2077_v60 = vpop.eup %2076  ;;  %1059 = vmatmul.mubr.f32.gmra.mrb[22].mxu1 %v842_v3  ;;  %v812_v62 = vadd.f32 1.0, %v2075_v5  ;;  %v845_v12 = vmul.f32 %v813_v9, %v589_v8  ;;  %1927 = vmatprep.subr.bf16.mxu1 %v1904_v48  ;;  %v1916_v13 = vpack.c.bf16 %v1406_v45, %v1405_v58  ;;  %v1918_v16 = vpack.c.bf16 %v1390_v52, %v1389_v36  ;;  %v916_v5 = vld [vmem:[%s3297_s4] sm:$0x3] }
 0x1d2   : > { %v815_v14 = vadd.f32 1.0, %v2077_v60  ;;  %v2079_v39 = vpop.eup %2078  ;;  %1907 = vmatpush3.bf16.msra.mxu0 %v1906_v0  ;;  %1935 = vmatpush3.bf16.msra.mxu1 %v1906_v0  ;;  %v1920_v2 = vpack.c.bf16 %v1408_v55, %v1407_v50  ;;  %v1922_v3 = vpack.c.bf16 %v1392_v63, %v1391_v47  ;;  %v2939_v8 = vrot.slane %v916_v5, %v395_v54 }
 0x1d3   : > { %v844_v15 = vmul.f32 %v812_v62, %v588_v25  ;;  %v2081_v18 = vpop.eup %2080  ;;  %1064 = vmatprep.mubr.f32.mxu1 %v845_v12  ;;  %v814_v19 = vadd.f32 1.0, %v2079_v39  ;;  %1909 = vmatprep.subr.bf16.mxu0 %v1908_v57  ;;  %v2943_v9 = vrot.slane %v916_v5, %v399_v56 }
 0x1d4   : > { %v847_v46 = vmul.f32 %v815_v14, %v591_v21  ;;  %v817_v41 = vadd.f32 1.0, %v2081_v18  ;;  %1928 = vmatprep.subr.bf16.mxu1 %v1908_v57 }
 0x1d5   : > { %1065 = vmatmul.mubr.f32.gmra.mrb[24].mxu1 %v844_v15  ;;  %v2083_v17 = vpop.eup %2082  ;;  %v846_v23 = vmul.f32 %v814_v19, %v590_v22 }
 0x1d6   : > { %1070 = vmatprep.mubr.f32.mxu1 %v847_v46  ;;  %v2085_v40 = vpop.eup %2084  ;;  %v849_v29 = vmul.f32 %v817_v41, %v593_v51  ;;  %v816_v26 = vadd.f32 1.0, %v2083_v17  ;;  %1911 = vmatpush3.bf16.msra.mxu0 %v1910_v10 }
 0x1d7   : > { %v819_v24 = vadd.f32 1.0, %v2085_v40  ;;  %1936 = vmatpush3.bf16.msra.mxu1 %v1910_v10  ;;  %1913 = vmatprep.subr.bf16.mxu0 %v1912_v59 }
 0x1d8   : > { %v2087_v42 = vpop.eup %2086  ;;  %v848_v34 = vmul.f32 %v816_v26, %v592_v4  ;;  %1929 = vmatprep.subr.bf16.mxu1 %v1912_v59 }
 0x1d9   : > { %1071 = vmatmul.mubr.f32.gmra.mrb[26].mxu1 %v846_v23  ;;  %v851_v32 = vmul.f32 %v819_v24, %v595_v6  ;;  %v818_v44 = vadd.f32 1.0, %v2087_v42 }
 0x1da   : > { %1076 = vmatprep.mubr.f32.mxu1 %v849_v29  ;;  %1915 = vmatpush3.bf16.msra.mxu0 %v1914_v7 }
 0x1db   : > { %v850_v30 = vmul.f32 %v818_v44, %v594_v20  ;;  %1937 = vmatpush3.bf16.msra.mxu1 %v1914_v7  ;;  %1917 = vmatprep.subr.bf16.mxu0 %v1916_v13 }
 0x1dc   : > { %1930 = vmatprep.subr.bf16.mxu1 %v1916_v13 }
 0x1dd   : > { %1077 = vmatmul.mubr.f32.gmra.mrb[28].mxu1 %v848_v34 }
 0x1de   : > { %1082 = vmatprep.mubr.f32.mxu1 %v851_v32  ;;  %1919 = vmatpush3.bf16.msra.mxu0 %v1918_v16 }
 0x1df   : > { %1938 = vmatpush3.bf16.msra.mxu1 %v1918_v16  ;;  %1921 = vmatprep.subr.bf16.mxu0 %v1920_v2 }
 0x1e0   : > { %1931 = vmatprep.subr.bf16.mxu1 %v1920_v2 }
 0x1e1   : > { %1083 = vmatmul.mubr.f32.gmra.mrb[30].mxu1 %v850_v30 }
 0x1e2   : > { %1923 = vmatpush3.bf16.msra.mxu0 %v1922_v3 }
 0x1e3   : > { %1939 = vmatpush3.bf16.msra.mxu1 %v1922_v3 }
 0x26d   : > { %v994_v60 = vpop.f32.mrb[0].mxu1 }
 0x26e   : > { %v2946_v25 = vadd.f32 %v994_v60, %v2939_v8  ;;  %v996_v62 = vpop.f32.mrb[1].mxu1 }
 0x26f   : > { %v2949_v12 = vadd.f32 %v996_v62, %v2943_v9 }
 0x270   : > { %v1121_v21 = vmul.f32 0.044715, %v2946_v25 }
 0x271   : > { %v1122_v14 = vmul.f32 0.044715, %v2949_v12  ;;  %v1000_v39 = vpop.f32.mrb[2].mxu1 }
 0x272   : > { %v1153_v54 = vmul.f32 %v1121_v21, %v2946_v25  ;;  %v2955_v15 = vadd.f32 %v1000_v39, %v2939_v8  ;;  %v1002_v53 = vpop.f32.mrb[3].mxu1  ;;  %v1090_v21 = vmul.f32 0.5, %v2949_v12 }
 0x273   : > { %v1154_v56 = vmul.f32 %v1122_v14, %v2949_v12  ;;  %v2959_v18 = vadd.f32 %v1002_v53, %v2943_v9 }
 0x274   : > { %v1185_v46 = vmul.f32 %v1153_v54, %v2946_v25  ;;  %v1123_v19 = vmul.f32 0.044715, %v2955_v15 }
 0x275   : > { %v1124_v22 = vmul.f32 0.044715, %v2959_v18  ;;  %v1006_v51 = vpop.f32.mrb[4].mxu1  ;;  %v1186_v41 = vmul.f32 %v1154_v56, %v2949_v12 }
 0x276   : > { %v1217_v17 = vadd.f32 %v1185_v46, %v2946_v25  ;;  %v1155_v40 = vmul.f32 %v1123_v19, %v2955_v15  ;;  %v2968_v23 = vadd.f32 %v1006_v51, %v2939_v8  ;;  %v1008_v29 = vpop.f32.mrb[5].mxu1 }
 0x277   : > { %v1156_v26 = vmul.f32 %v1124_v22, %v2959_v18  ;;  %v2972_v6 = vadd.f32 %v1008_v29, %v2943_v9  ;;  %v1218_v24 = vadd.f32 %v1186_v41, %v2949_v12 }
 0x278   : > { %v1249_v42 = vmul.f32 0.7978846, %v1217_v17  ;;  %v1125_v4 = vmul.f32 0.044715, %v2968_v23  ;;  %v1187_v32 = vmul.f32 %v1155_v40, %v2955_v15  ;;  %v1089_v17 = vmul.f32 0.5, %v2946_v25 }
 0x279   : > { %v1126_v34 = vmul.f32 0.044715, %v2972_v6  ;;  %v1012_v44 = vpop.f32.mrb[6].mxu1  ;;  %v1250_v20 = vmul.f32 0.7978846, %v1218_v24  ;;  %v1188_v30 = vmul.f32 %v1156_v26, %v2959_v18  ;;  %v1092_v25 = vmul.f32 0.5, %v2959_v18 }
 0x27a   : > { %2088 = vtanh.f32 %v1249_v42  ;;  %v1157_v37 = vmul.f32 %v1125_v4, %v2968_v23  ;;  %v2981_v35 = vadd.f32 %v1012_v44, %v2939_v8  ;;  %v1014_v28 = vpop.f32.mrb[7].mxu1  ;;  %v1219_v48 = vadd.f32 %v1187_v32, %v2955_v15 }
 0x27b   : > { %v1158_v43 = vmul.f32 %v1126_v34, %v2972_v6  ;;  %v2986_v0 = vadd.f32 %v1014_v28, %v2943_v9  ;;  %2090 = vtanh.f32 %v1250_v20  ;;  %v1220_v11 = vadd.f32 %v1188_v30, %v2959_v18 }
 0x27c   : > { %v1127_v33 = vmul.f32 0.044715, %v2981_v35  ;;  %v1251_v38 = vmul.f32 0.7978846, %v1219_v48  ;;  %v1189_v57 = vmul.f32 %v1157_v37, %v2968_v23 }
 0x27d   : > { %v1128_v61 = vmul.f32 0.044715, %v2986_v0  ;;  %v1252_v10 = vmul.f32 0.7978846, %v1220_v11  ;;  %v1190_v27 = vmul.f32 %v1158_v43, %v2972_v6  ;;  %v1018_v49 = vpop.f32.mrb[8].mxu1  ;;  %v1091_v43 = vmul.f32 0.5, %v2955_v15 }
 0x27e   : > { %v1159_v31 = vmul.f32 %v1127_v33, %v2981_v35  ;;  %2092 = vtanh.f32 %v1251_v38  ;;  %v1221_v59 = vadd.f32 %v1189_v57, %v2968_v23  ;;  %v2997_v7 = vadd.f32 %v1018_v49, %v2939_v8  ;;  %v1020_v58 = vpop.f32.mrb[9].mxu1 }
 0x27f   : > { %v1160_v1 = vmul.f32 %v1128_v61, %v2986_v0  ;;  %2094 = vtanh.f32 %v1252_v10  ;;  %v1222_v45 = vadd.f32 %v1190_v27, %v2972_v6  ;;  %v3001_v36 = vadd.f32 %v1020_v58, %v2943_v9 }
 0x280   : > { %v1253_v13 = vmul.f32 0.7978846, %v1221_v59  ;;  %v1191_v52 = vmul.f32 %v1159_v31, %v2981_v35  ;;  %v1129_v16 = vmul.f32 0.044715, %v2997_v7 }
 0x281   : > { %v1254_v50 = vmul.f32 0.7978846, %v1222_v45  ;;  %v1192_v55 = vmul.f32 %v1160_v1, %v2986_v0  ;;  %v1130_v47 = vmul.f32 0.044715, %v3001_v36  ;;  %v1094_v1 = vmul.f32 0.5, %v2972_v6 }
 0x282   : > { %2096 = vtanh.f32 %v1253_v13  ;;  %v1223_v2 = vadd.f32 %v1191_v52, %v2981_v35  ;;  %v1161_v63 = vmul.f32 %v1129_v16, %v2997_v7  ;;  %v1093_v52 = vmul.f32 0.5, %v2968_v23 }
 0x283   : > { %2098 = vtanh.f32 %v1254_v50  ;;  %v1224_v3 = vadd.f32 %v1192_v55, %v2986_v0  ;;  %v1162_v60 = vmul.f32 %v1130_v47, %v3001_v36 }
 0x284   : > { %v2089_v5 = vpop.eup %2088  ;;  %v1024_v62 = vpop.f32.mrb[10].mxu1  ;;  %v1255_v14 = vmul.f32 0.7978846, %v1223_v2  ;;  %v1193_v19 = vmul.f32 %v1161_v63, %v2997_v7  ;;  %v1096_v2 = vmul.f32 0.5, %v2986_v0  ;;  %v1095_v0 = vmul.f32 0.5, %v2981_v35 }
 0x285   : > { %v2091_v39 = vpop.eup %2090  ;;  %v3013_v54 = vadd.f32 %v1024_v62, %v2939_v8  ;;  %v1026_v53 = vpop.f32.mrb[11].mxu1  ;;  %v1313_v56 = vadd.f32 1.0, %v2089_v5  ;;  %v1256_v46 = vmul.f32 0.7978846, %v1224_v3  ;;  %v1194_v41 = vmul.f32 %v1162_v60, %v3001_v36 }
 0x286   : > { %v3017_v22 = vadd.f32 %v1026_v53, %v2943_v9  ;;  %v1314_v51 = vadd.f32 1.0, %v2091_v39  ;;  %2100 = vtanh.f32 %v1255_v14  ;;  %v1225_v40 = vadd.f32 %v1193_v19, %v2997_v7 }
 0x287   : > { %v1131_v12 = vmul.f32 0.044715, %v3013_v54  ;;  %2102 = vtanh.f32 %v1256_v46  ;;  %v1226_v42 = vadd.f32 %v1194_v41, %v3001_v36  ;;  %v1345_v34 = vmul.f32 %v1313_v56, %v1089_v17 }
 0x288   : > { %v2093_v29 = vpop.eup %2092  ;;  %v1132_v26 = vmul.f32 0.044715, %v3017_v22  ;;  %v1346_v24 = vmul.f32 %v1314_v51, %v1090_v21  ;;  %v1257_v20 = vmul.f32 0.7978846, %v1225_v40 }
 0x289   : > { %v2095_v4 = vpop.eup %2094  ;;  %v1163_v32 = vmul.f32 %v1131_v12, %v3013_v54  ;;  %v1315_v44 = vadd.f32 1.0, %v2093_v29  ;;  %v1258_v28 = vmul.f32 0.7978846, %v1226_v42  ;;  %v1098_v29 = vmul.f32 0.5, %v3001_v36 }
 0x28a   : > { %v1164_v30 = vmul.f32 %v1132_v26, %v3017_v22  ;;  %1480 = vmatprep.mubr.f32.mxu0 %v1346_v24  ;;  %v1316_v37 = vadd.f32 1.0, %v2095_v4  ;;  %2104 = vtanh.f32 %v1257_v20 }
 0x28b   : > { %v1030_v48 = vpop.f32.mrb[12].mxu1  ;;  %1481 = vmatmul.mubr.f32.vlgmr.msra.gmra.mrb[32].mxu0 %v1345_v34  ;;  %v1195_v11 = vmul.f32 %v1163_v32, %v3013_v54  ;;  %2106 = vtanh.f32 %v1258_v28  ;;  %v1347_v31 = vmul.f32 %v1315_v44, %v1091_v43 }
 0x28c   : > { %v2097_v33 = vpop.eup %2096  ;;  %v3031_v38 = vadd.f32 %v1030_v48, %v2939_v8  ;;  %v1032_v57 = vpop.f32.mrb[13].mxu1  ;;  %v1348_v61 = vmul.f32 %v1316_v37, %v1092_v25  ;;  %v1196_v10 = vmul.f32 %v1164_v30, %v3017_v22  ;;  %v1097_v37 = vmul.f32 0.5, %v2997_v7 }
 0x28d   : > { %v2099_v27 = vpop.eup %2098  ;;  %v3035_v18 = vadd.f32 %v1032_v57, %v2943_v9  ;;  %v1317_v49 = vadd.f32 1.0, %v2097_v33  ;;  %v1227_v15 = vadd.f32 %v1195_v11, %v3013_v54 }
 0x28e   : > { %v1133_v59 = vmul.f32 0.044715, %v3031_v38  ;;  %1485 = vmatprep.mubr.f32.mxu0 %v1348_v61  ;;  %v1318_v58 = vadd.f32 1.0, %v2099_v27  ;;  %v1228_v45 = vadd.f32 %v1196_v10, %v3017_v22 }
 0x28f   : > { %v1134_v13 = vmul.f32 0.044715, %v3035_v18  ;;  %1486 = vmatmul.mubr.f32.gmra.mrb[34].mxu0 %v1347_v31  ;;  %v1259_v16 = vmul.f32 0.7978846, %v1227_v15  ;;  %v1349_v60 = vmul.f32 %v1317_v49, %v1093_v52  ;;  %v1100_v15 = vmul.f32 0.5, %v3017_v22 }
 0x290   : > { %v2101_v50 = vpop.eup %2100  ;;  %v1165_v55 = vmul.f32 %v1133_v59, %v3031_v38  ;;  %v1350_v47 = vmul.f32 %v1318_v58, %v1094_v1  ;;  %v1260_v63 = vmul.f32 0.7978846, %v1228_v45  ;;  %v1036_v6 = vpop.f32.mrb[14].mxu1  ;;  %v1099_v22 = vmul.f32 0.5, %v3013_v54 }
 0x291   : > { %v2103_v3 = vpop.eup %2102  ;;  %v1166_v5 = vmul.f32 %v1134_v13, %v3035_v18  ;;  %v1319_v62 = vadd.f32 1.0, %v2101_v50  ;;  %2108 = vtanh.f32 %v1259_v16  ;;  %v3047_v21 = vadd.f32 %v1036_v6, %v2939_v8  ;;  %v1038_v14 = vpop.f32.mrb[15].mxu1 }
 0x292   : > { %1490 = vmatprep.mubr.f32.mxu0 %v1350_v47  ;;  %v1320_v23 = vadd.f32 1.0, %v2103_v3  ;;  %2110 = vtanh.f32 %v1260_v63  ;;  %v1197_v39 = vmul.f32 %v1165_v55, %v3031_v38  ;;  %v3051_v53 = vadd.f32 %v1038_v14, %v2943_v9 }
 0x293   : > { %1491 = vmatmul.mubr.f32.gmra.mrb[36].mxu0 %v1349_v60  ;;  %v1198_v56 = vmul.f32 %v1166_v5, %v3035_v18  ;;  %v1135_v46 = vmul.f32 0.044715, %v3047_v21  ;;  %v1351_v40 = vmul.f32 %v1319_v62, %v1095_v0 }
 0x294   : > { %v1352_v19 = vmul.f32 %v1320_v23, %v1096_v2  ;;  %v1229_v51 = vadd.f32 %v1197_v39, %v3031_v38  ;;  %v2105_v41 = vpop.eup %2104  ;;  %v1136_v17 = vmul.f32 0.044715, %v3051_v53  ;;  %v1042_v12 = vpop.f32.mrb[16].mxu1 }
 0x295   : > { %v1230_v26 = vadd.f32 %v1198_v56, %v3035_v18  ;;  %v2107_v24 = vpop.eup %2106  ;;  %v1167_v42 = vmul.f32 %v1135_v46, %v3047_v21  ;;  %v3062_v35 = vadd.f32 %v1042_v12, %v2939_v8  ;;  %v1044_v4 = vpop.f32.mrb[17].mxu1  ;;  %v1321_v32 = vadd.f32 1.0, %v2105_v41 }
 0x296   : > { %1495 = vmatprep.mubr.f32.mxu0 %v1352_v19  ;;  %v1261_v34 = vmul.f32 0.7978846, %v1229_v51  ;;  %v1168_v44 = vmul.f32 %v1136_v17, %v3051_v53  ;;  %v3066_v20 = vadd.f32 %v1044_v4, %v2943_v9  ;;  %v1322_v30 = vadd.f32 1.0, %v2107_v24 }
 0x297   : > { %1496 = vmatmul.mubr.f32.gmra.mrb[38].mxu0 %v1351_v40  ;;  %v1262_v36 = vmul.f32 0.7978846, %v1230_v26  ;;  %v1137_v25 = vmul.f32 0.044715, %v3062_v35  ;;  %v1199_v28 = vmul.f32 %v1167_v42, %v3047_v21  ;;  %v1353_v61 = vmul.f32 %v1321_v32, %v1097_v37 }
 0x298   : > { %2112 = vtanh.f32 %v1261_v34  ;;  %v1138_v48 = vmul.f32 0.044715, %v3066_v20  ;;  %v1354_v43 = vmul.f32 %v1322_v30, %v1098_v29  ;;  %v1200_v11 = vmul.f32 %v1168_v44, %v3051_v53 }
 0x299   : > { %2114 = vtanh.f32 %v1262_v36  ;;  %v1169_v33 = vmul.f32 %v1137_v25, %v3062_v35  ;;  %v1048_v57 = vpop.f32.mrb[18].mxu1  ;;  %v1231_v10 = vadd.f32 %v1199_v28, %v3047_v21  ;;  %v1102_v24 = vmul.f32 0.5, %v3035_v18 }
 0x29a   : > { %v1170_v31 = vmul.f32 %v1138_v48, %v3066_v20  ;;  %v3077_v7 = vadd.f32 %v1048_v57, %v2939_v8  ;;  %v1050_v49 = vpop.f32.mrb[19].mxu1  ;;  %1500 = vmatprep.mubr.f32.mxu0 %v1354_v43  ;;  %v1232_v59 = vadd.f32 %v1200_v11, %v3051_v53  ;;  %v1101_v30 = vmul.f32 0.5, %v3031_v38 }
 0x29b   : > { %v2109_v27 = vpop.eup %2108  ;;  %v3082_v58 = vadd.f32 %v1050_v49, %v2943_v9  ;;  %1501 = vmatmul.mubr.f32.gmra.mrb[40].mxu0 %v1353_v61  ;;  %v1263_v13 = vmul.f32 0.7978846, %v1231_v10  ;;  %v1201_v52 = vmul.f32 %v1169_v33, %v3062_v35  ;;  %v1103_v38 = vmul.f32 0.5, %v3047_v21 }
 0x29c   : > { %v2111_v1 = vpop.eup %2110  ;;  %v1323_v45 = vadd.f32 1.0, %v2109_v27  ;;  %v1139_v16 = vmul.f32 0.044715, %v3077_v7  ;;  %v1264_v55 = vmul.f32 0.7978846, %v1232_v59  ;;  %v1202_v47 = vmul.f32 %v1170_v31, %v3066_v20 }
 0x29d   : > { %v1324_v50 = vadd.f32 1.0, %v2111_v1  ;;  %v1140_v2 = vmul.f32 0.044715, %v3082_v58  ;;  %2116 = vtanh.f32 %v1263_v13  ;;  %v1233_v63 = vadd.f32 %v1201_v52, %v3062_v35 }
 0x29e   : > { %v1171_v3 = vmul.f32 %v1139_v16, %v3077_v7  ;;  %2118 = vtanh.f32 %v1264_v55  ;;  %v1234_v6 = vadd.f32 %v1202_v47, %v3066_v20  ;;  %v1355_v14 = vmul.f32 %v1323_v45, %v1099_v22 }
 0x29f   : > { %v1356_v5 = vmul.f32 %v1324_v50, %v1100_v15  ;;  %v1172_v60 = vmul.f32 %v1140_v2, %v3082_v58  ;;  %v1265_v23 = vmul.f32 0.7978846, %v1233_v63  ;;  %v1104_v15 = vmul.f32 0.5, %v3051_v53 }
 0x2a0   : > { %v1054_v62 = vpop.f32.mrb[20].mxu1  ;;  %v1266_v54 = vmul.f32 0.7978846, %v1234_v6  ;;  %v1203_v56 = vmul.f32 %v1171_v3, %v3077_v7  ;;  %v1106_v55 = vmul.f32 0.5, %v3066_v20 }
 0x2a1   : > { %v3094_v39 = vadd.f32 %v1054_v62, %v2939_v8  ;;  %v1056_v0 = vpop.f32.mrb[21].mxu1  ;;  %1505 = vmatprep.mubr.f32.mxu0 %v1356_v5  ;;  %2120 = vtanh.f32 %v1265_v23  ;;  %v1204_v51 = vmul.f32 %v1172_v60, %v3082_v58 }
 0x2a2   : > { %v2113_v46 = vpop.eup %2112  ;;  %v3098_v19 = vadd.f32 %v1056_v0, %v2943_v9  ;;  %1506 = vmatmul.mubr.f32.gmra.mrb[42].mxu0 %v1355_v14  ;;  %2122 = vtanh.f32 %v1266_v54  ;;  %v1235_v40 = vadd.f32 %v1203_v56, %v3077_v7 }
 0x2a3   : > { %v2115_v41 = vpop.eup %2114  ;;  %v1141_v17 = vmul.f32 0.044715, %v3094_v39  ;;  %v1325_v12 = vadd.f32 1.0, %v2113_v46  ;;  %v1236_v4 = vadd.f32 %v1204_v51, %v3082_v58  ;;  %v1105_v46 = vmul.f32 0.5, %v3062_v35 }
 0x2a4   : > { %v1142_v29 = vmul.f32 0.044715, %v3098_v19  ;;  %v1060_v26 = vpop.f32.mrb[22].mxu1  ;;  %v1326_v42 = vadd.f32 1.0, %v2115_v41  ;;  %v1267_v36 = vmul.f32 0.7978846, %v1235_v40 }
 0x2a5   : > { %v1173_v32 = vmul.f32 %v1141_v17, %v3094_v39  ;;  %v3108_v34 = vadd.f32 %v1060_v26, %v2939_v8  ;;  %v1062_v44 = vpop.f32.mrb[23].mxu1  ;;  %v1268_v48 = vmul.f32 0.7978846, %v1236_v4  ;;  %v1357_v43 = vmul.f32 %v1325_v12, %v1101_v30 }
 0x2a6   : > { %v1174_v25 = vmul.f32 %v1142_v29, %v3098_v19  ;;  %v3113_v37 = vadd.f32 %v1062_v44, %v2943_v9  ;;  %v1358_v28 = vmul.f32 %v1326_v42, %v1102_v24  ;;  %2124 = vtanh.f32 %v1267_v36 }
 0x2a7   : > { %v1143_v18 = vmul.f32 0.044715, %v3108_v34  ;;  %v1205_v11 = vmul.f32 %v1173_v32, %v3094_v39  ;;  %v2117_v33 = vpop.eup %2116  ;;  %2126 = vtanh.f32 %v1268_v48  ;;  %v1108_v51 = vmul.f32 0.5, %v3082_v58 }
 0x2a8   : > { %v1144_v57 = vmul.f32 0.044715, %v3113_v37  ;;  %v1066_v61 = vpop.f32.mrb[24].mxu1  ;;  %1510 = vmatprep.mubr.f32.mxu0 %v1358_v28  ;;  %v1206_v10 = vmul.f32 %v1174_v25, %v3098_v19  ;;  %v2119_v27 = vpop.eup %2118  ;;  %v1327_v59 = vadd.f32 1.0, %v2117_v33 }
 0x2a9   : > { %v3121_v31 = vadd.f32 %v1066_v61, %v2939_v8  ;;  %v1068_v49 = vpop.f32.mrb[25].mxu1  ;;  %1511 = vmatmul.mubr.f32.gmra.mrb[44].mxu0 %v1357_v43  ;;  %v1237_v1 = vadd.f32 %v1205_v11, %v3094_v39  ;;  %v1328_v21 = vadd.f32 1.0, %v2119_v27  ;;  %v1175_v16 = vmul.f32 %v1143_v18, %v3108_v34 }
 0x2aa   : > { %v1176_v45 = vmul.f32 %v1144_v57, %v3113_v37  ;;  %v3127_v13 = vadd.f32 %v1068_v49, %v2943_v9  ;;  %v1238_v52 = vadd.f32 %v1206_v10, %v3098_v19  ;;  %v1359_v63 = vmul.f32 %v1327_v59, %v1103_v38 }
 0x2ab   : > { %v1145_v50 = vmul.f32 0.044715, %v3121_v31  ;;  %v1269_v47 = vmul.f32 0.7978846, %v1237_v1  ;;  %v2121_v2 = vpop.eup %2120  ;;  %v1360_v22 = vmul.f32 %v1328_v21, %v1104_v15  ;;  %v1207_v26 = vmul.f32 %v1175_v16, %v3108_v34 }
 0x2ac   : > { %v1072_v53 = vpop.f32.mrb[26].mxu1  ;;  %v1270_v3 = vmul.f32 0.7978846, %v1238_v52  ;;  %v1208_v5 = vmul.f32 %v1176_v45, %v3113_v37  ;;  %v2123_v6 = vpop.eup %2122  ;;  %v1329_v23 = vadd.f32 1.0, %v2121_v2  ;;  %v1146_v0 = vmul.f32 0.044715, %v3127_v13 }
 0x2ad   : > { %v1177_v60 = vmul.f32 %v1145_v50, %v3121_v31  ;;  %v3136_v62 = vadd.f32 %v1072_v53, %v2939_v8  ;;  %v1074_v14 = vpop.f32.mrb[27].mxu1  ;;  %2128 = vtanh.f32 %v1269_v47  ;;  %1515 = vmatprep.mubr.f32.mxu0 %v1360_v22  ;;  %v1330_v54 = vadd.f32 1.0, %v2123_v6 }
 0x2ae   : > { %v3140_v20 = vadd.f32 %v1074_v14, %v2943_v9  ;;  %2130 = vtanh.f32 %v1270_v3  ;;  %1516 = vmatmul.mubr.f32.gmra.mrb[46].mxu0 %v1359_v63  ;;  %v1240_v41 = vadd.f32 %v1208_v5, %v3113_v37  ;;  %v1361_v35 = vmul.f32 %v1329_v23, %v1105_v46 }
 0x2af   : > { %v1209_v56 = vmul.f32 %v1177_v60, %v3121_v31  ;;  %v1147_v17 = vmul.f32 0.044715, %v3136_v62  ;;  %v1362_v29 = vmul.f32 %v1330_v54, %v1106_v55  ;;  %v1178_v30 = vmul.f32 %v1146_v0, %v3127_v13 }
 0x2b0   : > { %v1148_v12 = vmul.f32 0.044715, %v3140_v20  ;;  %v1078_v40 = vpop.f32.mrb[28].mxu1  ;;  %v2125_v24 = vpop.eup %2124  ;;  %v1272_v44 = vmul.f32 0.7978846, %v1240_v41  ;;  %v1239_v28 = vadd.f32 %v1207_v26, %v3108_v34  ;;  %v1107_v61 = vmul.f32 0.5, %v3077_v7 }
 0x2b1   : > { %v1241_v42 = vadd.f32 %v1209_v56, %v3121_v31  ;;  %v3151_v4 = vadd.f32 %v1078_v40, %v2939_v8  ;;  %v1080_v32 = vpop.f32.mrb[29].mxu1  ;;  %v2127_v58 = vpop.eup %2126  ;;  %1520 = vmatprep.mubr.f32.mxu0 %v1362_v29  ;;  %v1331_v25 = vadd.f32 1.0, %v2125_v24  ;;  %v1179_v11 = vmul.f32 %v1147_v17, %v3136_v62 }
 0x2b2   : > { %v3155_v36 = vadd.f32 %v1080_v32, %v2943_v9  ;;  %v1180_v48 = vmul.f32 %v1148_v12, %v3140_v20  ;;  %1521 = vmatmul.mubr.f32.gmra.mrb[48].mxu0 %v1361_v35  ;;  %v1332_v43 = vadd.f32 1.0, %v2127_v58  ;;  %2132 = vtanh.f32 %v1272_v44 }
 0x2b3   : > { %v1149_v18 = vmul.f32 0.044715, %v3151_v4  ;;  %v1271_v38 = vmul.f32 0.7978846, %v1239_v28  ;;  %v1273_v10 = vmul.f32 0.7978846, %v1241_v42  ;;  %v1363_v45 = vmul.f32 %v1331_v25, %v1107_v61 }
 0x2b4   : > { %v1150_v33 = vmul.f32 0.044715, %v3155_v36  ;;  %v1084_v57 = vpop.f32.mrb[30].mxu1  ;;  %v1364_v15 = vmul.f32 %v1332_v43, %v1108_v51  ;;  %v1110_v59 = vmul.f32 0.5, %v3098_v19  ;;  %v1210_v21 = vmul.f32 %v1178_v30, %v3127_v13 }
 0x2b5   : > { %v3164_v27 = vadd.f32 %v1084_v57, %v2939_v8  ;;  %v1086_v49 = vpop.f32.mrb[31].mxu1  ;;  %2134 = vtanh.f32 %v1271_v38  ;;  %v1181_v16 = vmul.f32 %v1149_v18, %v3151_v4  ;;  %v1212_v8 = vmul.f32 %v1180_v48, %v3140_v20 }
 0x2b6   : > { %v3168_v1 = vadd.f32 %v1086_v49, %v2943_v9  ;;  %v1182_v7 = vmul.f32 %v1150_v33, %v3155_v36  ;;  %1525 = vmatprep.mubr.f32.mxu0 %v1364_v15  ;;  %v1242_v47 = vadd.f32 %v1210_v21, %v3127_v13  ;;  %v1211_v2 = vmul.f32 %v1179_v11, %v3136_v62 }
 0x2b7   : > { %v2129_v52 = vpop.eup %2128  ;;  %v1151_v50 = vmul.f32 0.044715, %v3164_v27  ;;  %1526 = vmatmul.mubr.f32.gmra.mrb[50].mxu0 %v1363_v45  ;;  %2136 = vtanh.f32 %v1273_v10  ;;  %v1109_v22 = vmul.f32 0.5, %v3094_v39  ;;  %v1244_v63 = vadd.f32 %v1212_v8, %v3140_v20 }
 0x2b8   : > { %v2131_v55 = vpop.eup %2130  ;;  %v1152_v19 = vmul.f32 0.044715, %v3168_v1  ;;  %v1333_v9 = vadd.f32 1.0, %v2129_v52  ;;  %v1274_v6 = vmul.f32 0.7978846, %v1242_v47  ;;  %v1243_v60 = vadd.f32 %v1211_v2, %v3136_v62 }
 0x2b9   : > { %v1334_v53 = vadd.f32 1.0, %v2131_v55  ;;  %v1183_v3 = vmul.f32 %v1151_v50, %v3164_v27  ;;  %v1276_v23 = vmul.f32 0.7978846, %v1244_v63  ;;  %v1214_v0 = vmul.f32 %v1182_v7, %v3155_v36 }
 0x2ba   : > { %v1184_v5 = vmul.f32 %v1152_v19, %v3168_v1  ;;  %v1365_v54 = vmul.f32 %v1333_v9, %v1109_v22  ;;  %2138 = vtanh.f32 %v1274_v6  ;;  %v1275_v56 = vmul.f32 0.7978846, %v1243_v60 }
 0x2bb   : > { %v1366_v14 = vmul.f32 %v1334_v53, %v1110_v59  ;;  %v1213_v46 = vmul.f32 %v1181_v16, %v3151_v4  ;;  %v1112_v39 = vmul.f32 0.5, %v3113_v37  ;;  %2140 = vtanh.f32 %v1276_v23 }
 0x2bc   : > { %v2133_v51 = vpop.eup %2132  ;;  %v1246_v41 = vadd.f32 %v1214_v0, %v3155_v36  ;;  %v1216_v17 = vmul.f32 %v1184_v5, %v3168_v1  ;;  %2142 = vtanh.f32 %v1275_v56  ;;  %v1215_v29 = vmul.f32 %v1183_v3, %v3164_v27  ;;  %v3204_v3 = vld [vmem:[%s3299_s6] ss:$0 sm:$0xff] }
 0x2bd   : > { %1530 = vmatprep.mubr.f32.mxu0 %v1366_v14  ;;  %v1336_v12 = vadd.f32 1.0, %v2133_v51  ;;  %v1245_v40 = vadd.f32 %v1213_v46, %v3151_v4  ;;  %v1111_v44 = vmul.f32 0.5, %v3108_v34  ;;  %v1114_v33 = vmul.f32 0.5, %v3127_v13 }
 0x2be   : > { %1531 = vmatmul.mubr.f32.gmra.mrb[52].mxu0 %v1365_v54  ;;  %v1278_v26 = vmul.f32 0.7978846, %v1246_v41  ;;  %v1248_v24 = vadd.f32 %v1216_v17, %v3168_v1  ;;  %v1247_v37 = vadd.f32 %v1215_v29, %v3164_v27  ;;  %v1113_v34 = vmul.f32 0.5, %v3121_v31 }
 0x2bf   : > { %v2135_v42 = vpop.eup %2134  ;;  %v1368_v32 = vmul.f32 %v1336_v12, %v1112_v39  ;;  %v1277_v35 = vmul.f32 0.7978846, %v1245_v40  ;;  %v1116_v38 = vmul.f32 0.5, %v3140_v20  ;;  %v1115_v16 = vmul.f32 0.5, %v3136_v62 }
 0x2c0   : > { %v1335_v58 = vadd.f32 1.0, %v2135_v42  ;;  %2144 = vtanh.f32 %v1278_v26  ;;  %v1280_v30 = vmul.f32 0.7978846, %v1248_v24  ;;  %v1279_v25 = vmul.f32 0.7978846, %v1247_v37 }
 0x2c1   : > { %1535 = vmatprep.mubr.f32.mxu0 %v1368_v32  ;;  %2146 = vtanh.f32 %v1277_v35  ;;  %v2137_v28 = vpop.eup %2136  ;;  %v1118_v7 = vmul.f32 0.5, %v3155_v36  ;;  %v1120_v9 = vmul.f32 0.5, %v3168_v1  ;;  %v1117_v47 = vmul.f32 0.5, %v3151_v4 }
 0x2c2   : > { %v1367_v48 = vmul.f32 %v1335_v58, %v1111_v44  ;;  %2148 = vtanh.f32 %v1280_v30  ;;  %v1337_v43 = vadd.f32 1.0, %v2137_v28  ;;  %v1119_v36 = vmul.f32 0.5, %v3164_v27 }
 0x2c3   : > { %2150 = vtanh.f32 %v1279_v25 }
 0x2c4   : > { %1536 = vmatmul.mubr.f32.gmra.mrb[54].mxu0 %v1367_v48  ;;  %v2139_v18 = vpop.eup %2138  ;;  %v1369_v15 = vmul.f32 %v1337_v43, %v1113_v34 }
 0x2c5   : > { %v2141_v11 = vpop.eup %2140  ;;  %v1338_v57 = vadd.f32 1.0, %v2139_v18 }
 0x2c6   : > { %v2143_v61 = vpop.eup %2142  ;;  %v1340_v10 = vadd.f32 1.0, %v2141_v11 }
 0x2c7   : > { %v1370_v49 = vmul.f32 %v1338_v57, %v1114_v33  ;;  %v1339_v45 = vadd.f32 1.0, %v2143_v61 }
 0x2c8   : > { %v1372_v59 = vmul.f32 %v1340_v10, %v1116_v38 }
 0x2c9   : > { %1540 = vmatprep.mubr.f32.mxu1 %v1370_v49  ;;  %v1371_v8 = vmul.f32 %v1339_v45, %v1115_v16 }
 0x2ca   : > { %v2145_v21 = vpop.eup %2144  ;;  %1541 = vmatmul.mubr.f32.vlgmr.msra.gmra.mrb[32].mxu1 %v1369_v15 }
 0x2cb   : > { %v2147_v52 = vpop.eup %2146  ;;  %v1342_v13 = vadd.f32 1.0, %v2145_v21  ;;  %1545 = vmatprep.mubr.f32.mxu1 %v1372_v59 }
 0x2cc   : > { %v2149_v50 = vpop.eup %2148  ;;  %v1341_v55 = vadd.f32 1.0, %v2147_v52 }
 0x2cd   : > { %v1374_v31 = vmul.f32 %v1342_v13, %v1118_v7  ;;  %v1344_v20 = vadd.f32 1.0, %v2149_v50  ;;  %v2151_v19 = vpop.eup %2150 }
 0x2ce   : > { %1546 = vmatmul.mubr.f32.gmra.mrb[34].mxu1 %v1371_v8  ;;  %v1373_v53 = vmul.f32 %v1341_v55, %v1117_v47  ;;  %v1343_v62 = vadd.f32 1.0, %v2151_v19 }
 0x2cf   : > { %1550 = vmatprep.mubr.f32.mxu1 %v1374_v31  ;;  %v1376_v2 = vmul.f32 %v1344_v20, %v1120_v9 }
 0x2d0   : > { %v1375_v22 = vmul.f32 %v1343_v62, %v1119_v36 }
 0x2d2   : > { %1551 = vmatmul.mubr.f32.gmra.mrb[36].mxu1 %v1373_v53 }
 0x2d3   : > { %1555 = vmatprep.mubr.f32.mxu1 %v1376_v2 }
 0x2d6   : > { %1556 = vmatmul.mubr.f32.gmra.mrb[38].mxu1 %v1375_v22 }
 0x35e   : > { %v1748_v63 = vpop.f32.mrb[32].mxu0 }
 0x35f   : > { %v1749_v1 = vpop.f32.mrb[33].mxu0 }
 0x360   : > { %v1750_v5 = vadd.f32 %v1749_v1, %v1748_v63 }
 0x362   : > { %v1483_v4 = vadd.f32 %v1750_v5, %v3204_v3  ;;  %v1751_v6 = vpop.f32.mrb[34].mxu0 }
 0x363   : > { %v1752_v60 = vpop.f32.mrb[35].mxu0 }
 0x364   : > { %1561 = vst [vmem:[%s3209_s17] sm:$0xff] %v1483_v4  ;;  %v1753_v27 = vadd.f32 %v1752_v60, %v1751_v6 }
 0x366   : > { %v1488_v14 = vadd.f32 %v1753_v27, %v3204_v3  ;;  %v1754_v23 = vpop.f32.mrb[36].mxu0 }
 0x367   : > { %v1755_v0 = vpop.f32.mrb[37].mxu0 }
 0x368   : > { %1562 = vst [vmem:[%s3209_s17 + $0x8] sm:$0xff] %v1488_v14  ;;  %v1756_v54 = vadd.f32 %v1755_v0, %v1754_v23 }
 0x36a   : > { %v1493_v56 = vadd.f32 %v1756_v54, %v3204_v3  ;;  %v1757_v46 = vpop.f32.mrb[38].mxu0 }
 0x36b   : > { %v1758_v51 = vpop.f32.mrb[39].mxu0 }
 0x36c   : > { %1563 = vst [vmem:[%s3209_s17 + $0x10] sm:$0xff] %v1493_v56  ;;  %v1759_v39 = vadd.f32 %v1758_v51, %v1757_v46 }
 0x36e   : > { %v1498_v41 = vadd.f32 %v1759_v39, %v3204_v3  ;;  %v1760_v17 = vpop.f32.mrb[40].mxu0 }
 0x36f   : > { %v1761_v12 = vpop.f32.mrb[41].mxu0 }
 0x370   : > { %1564 = vst [vmem:[%s3209_s17 + $0x18] sm:$0xff] %v1498_v41  ;;  %v1762_v40 = vadd.f32 %v1761_v12, %v1760_v17 }
 0x372   : > { %v1503_v29 = vadd.f32 %v1762_v40, %v3204_v3 }
 0x374   : > { %1565 = vst [vmem:[%s3209_s17 + $0x20] sm:$0xff] %v1503_v29 }
 0x375   : > { %v1763_v26 = vpop.f32.mrb[42].mxu0 }
 0x376   : > { %v1764_v24 = vpop.f32.mrb[43].mxu0 }
 0x377   : > { %v1765_v42 = vadd.f32 %v1764_v24, %v1763_v26 }
 0x379   : > { %v1508_v32 = vadd.f32 %v1765_v42, %v3204_v3 }
 0x37b   : > { %1566 = vst [vmem:[%s3209_s17 + $0x28] sm:$0xff] %v1508_v32 }
 0x37c   : > { %v1766_v35 = vpop.f32.mrb[44].mxu0 }
 0x37d   : > { %v1767_v37 = vpop.f32.mrb[45].mxu0 }
 0x37e   : > { %v1768_v44 = vadd.f32 %v1767_v37, %v1766_v35 }
 0x380   : > { %v1513_v58 = vadd.f32 %v1768_v44, %v3204_v3 }
 0x381   : > { %v1769_v30 = vpop.f32.mrb[46].mxu0 }
 0x382   : > { %1567 = vst [vmem:[%s3209_s17 + $0x30] sm:$0xff] %v1513_v58  ;;  %v1770_v25 = vpop.f32.mrb[47].mxu0 }
 0x383   : > { %v1771_v28 = vadd.f32 %v1770_v25, %v1769_v30 }
 0x385   : > { %v1518_v48 = vadd.f32 %v1771_v28, %v3204_v3  ;;  %v1772_v18 = vpop.f32.mrb[48].mxu0 }
 0x386   : > { %v1773_v43 = vpop.f32.mrb[49].mxu0 }
 0x387   : > { %1568 = vst [vmem:[%s3209_s17 + $0x38] sm:$0xff] %v1518_v48  ;;  %v1774_v11 = vadd.f32 %v1773_v43, %v1772_v18 }
 0x389   : > { %v1523_v33 = vadd.f32 %v1774_v11, %v3204_v3 }
 0x38a   : > { %v1775_v57 = vpop.f32.mrb[50].mxu0 }
 0x38b   : > { %1569 = vst [vmem:[%s3209_s17 + $0x40] sm:$0xff] %v1523_v33  ;;  %v1776_v61 = vpop.f32.mrb[51].mxu0 }
 0x38c   : > { %v1777_v34 = vadd.f32 %v1776_v61, %v1775_v57 }
 0x38e   : > { %v1528_v38 = vadd.f32 %v1777_v34, %v3204_v3 }
 0x390   : > { %1570 = vst [vmem:[%s3209_s17 + $0x48] sm:$0xff] %v1528_v38 }
 0x391   : > { %v1778_v10 = vpop.f32.mrb[52].mxu0 }
 0x392   : > { %v1779_v49 = vpop.f32.mrb[53].mxu0 }
 0x393   : > { %v1780_v15 = vadd.f32 %v1779_v49, %v1778_v10 }
 0x395   : > { %v1533_v59 = vadd.f32 %v1780_v15, %v3204_v3 }
 0x397   : > { %1571 = vst [vmem:[%s3209_s17 + $0x50] sm:$0xff] %v1533_v59  ;;  %v1781_v45 = vpop.f32.mrb[54].mxu0 }
 0x398   : > { %v1782_v21 = vpop.f32.mrb[55].mxu0 }
 0x399   : > { %v1783_v52 = vadd.f32 %v1782_v21, %v1781_v45 }
 0x39b   : > { %v1538_v16 = vadd.f32 %v1783_v52, %v3204_v3 }
 0x39d   : > { %1572 = vst [vmem:[%s3209_s17 + $0x58] sm:$0xff] %v1538_v16  ;;  %v1784_v7 = vpop.f32.mrb[32].mxu1 }
 0x39e   : > { %v1785_v13 = vpop.f32.mrb[33].mxu1 }
 0x39f   : > { %v1786_v50 = vadd.f32 %v1785_v13, %v1784_v7 }
 0x3a1   : > { %v1543_v8 = vadd.f32 %v1786_v50, %v3204_v3  ;;  %v1787_v31 = vpop.f32.mrb[34].mxu1 }
 0x3a2   : > { %v1788_v55 = vpop.f32.mrb[35].mxu1 }
 0x3a3   : > { %1573 = vst [vmem:[%s3209_s17 + $0x60] sm:$0xff] %v1543_v8  ;;  %v1789_v20 = vadd.f32 %v1788_v55, %v1787_v31 }
 0x3a5   : > { %v1548_v19 = vadd.f32 %v1789_v20, %v3204_v3  ;;  %v1790_v9 = vpop.f32.mrb[36].mxu1 }
 0x3a6   : > { %v1791_v47 = vpop.f32.mrb[37].mxu1 }
 0x3a7   : > { %1574 = vst [vmem:[%s3209_s17 + $0x68] sm:$0xff] %v1548_v19  ;;  %v1792_v2 = vadd.f32 %v1791_v47, %v1790_v9 }
 0x3a9   : > { %v1553_v53 = vadd.f32 %v1792_v2, %v3204_v3  ;;  %v1793_v62 = vpop.f32.mrb[38].mxu1 }
 0x3aa   : > { %v1794_v36 = vpop.f32.mrb[39].mxu1 }
 0x3ab   : > { %1575 = vst [vmem:[%s3209_s17 + $0x70] sm:$0xff] %v1553_v53  ;;  %v1795_v22 = vadd.f32 %v1794_v36, %v1793_v62 }
 0x3ad   : > { %v1558_v63 = vadd.f32 %v1795_v22, %v3204_v3 }
 0x3af   : > { %1576 = vst [vmem:[%s3209_s17 + $0x78] sm:$0xff] %v1558_v63 }
 0x3b0   : > { %2279 = shalt.err (!%p2276_p4)
}
 0x3b1   : > { %s2280_s14 = scalar_lea.hbm %s3245_s23, 2048  ;;  %s2284_s13 = scalar_lea.hbm %s3300_s7, 4096 }
 0x3b2   : > { %p2281_p9 = scmp.ne.s32.totalorder %s3245_s23, %s2280_s14  ;;  %p2285_p8 = scmp.lt.u32.totalorder %s3245_s23, %s3300_s7 }
 0x3b3   : > { %p2286_p13 = scmp.lt.u32.totalorder %s2284_s13, %s2280_s14  ;;  %p2288_p10 = scmp.lt.u32.totalorder %s2280_s14, %s3245_s23 }
 0x3b4   : > { %p2282_p0 = pnand %p2281_p9, %p2542_p5 }
 0x3b5   : > { %p2287_p6 = por %p2286_p13, %p2285_p8 }
 0x3b6   : > { %p2283_p11 = pneg %p2282_p0 }
 0x3b7   : > { %p2289_p3 = por %p2288_p10, %p2287_p6 }
 0x3b9   : > { %p2290_p7 = pnand %p2289_p3, %p2283_p11 }
 0x3bb   : > { %2293 = shalt.err (!%p2290_p7)
}
 0x3bc   : > { %s2352_s16 = smov 128   ;;  %s2353_s29 = smov 8  }
 0x3bd   : > { %1954 = dma.vmem_to_hbm [thread:$0]  (%p2542_p5), %s3247_s21, 2048, %s3245_s23, %s1578_s11, %s2352_s16, %s2352_s16, %s2353_s29  }
 0x3be PF: > { %s3320_s15 = sld [smem:[#allocation15_spill]]  ;;  %s1606_s28 = sand.u32 1, %s2328_s24  }
 0x3bf   : > { %p3322_p2 = scmp.ge.s32.totalorder %s2340_s27, 2  ;;  %s1607_s30 = scalar_lea.sflag [#allocation4], %s1606_s28 }
 0x3c4   : > { %p3321_p12 = scmp.ne.s32.totalorder %s3320_s15, 0 }
 0x3c6   : > { %p1971_p1 = pnand %p3322_p2, %p3321_p12 }
 0x3c8   : > { %2323 = dma.done.wait (!%p1971_p1), %s1607_s30, 2048  }
 0x3c9   : > { %2325 = vsyncadd (!%p1971_p1), %s1607_s30, 4294965248  ;;  %p22_p4 = scmp.ge.s32.totalorder %s2528_s8, 4   ;;  %s3323_s24 = smov %s2332_s25 }
 0x3ca   : > { %s3324_s25 = smov %s2336_s26  ;;  %s3325_s26 = smov %s2538_s19 }
 0x3cb   : > { %s3326_s27 = smov %s2528_s8  ;;  %24 = sbr.rel (!%p22_p4) target bundleno = 7 (0x7), region = 105 }
 0x3d2   :  { %1612 = vsyncpa [#allocation3], 1 }
 0x3d3   :  { %1614 = vsyncpa [#allocation3 + $0x1], 1 }
 0x3d4   :  { %1615 = vsyncpa [#allocation6], 1 }
 0x3d5   :  { %1616 = vsyncpa [#allocation9], 1 }
 0x3d6   :  { %1617 = vsyncpa [#allocation4], 1 }
 0x3d7   :  { %1619 = vsyncpa [#allocation4 + $0x1], 1 }

</bundles_post_ra>
